<compile_context>
chip_gen: v6e
topology: v6e:2x2x1
jax: 0.10.0
libtpu: 0.0.40
codegen_flags: <defaults>
</compile_context>

<pallas_src>
import functools
import math

import jax
import jax.numpy as jnp
import numpy as np
from jax import lax
from jax.experimental import pallas as pl
from jax.experimental.pallas import tpu as pltpu

_EPS = 1e-5
_CONV_NAMES = ["spatial", "c13", "c31", "c15", "c51", "c17", "c71"]
_CONV_SHAPES = {
    "spatial": (1, 2, 7, 7),
    "c13": (1, 2, 1, 3),
    "c31": (1, 1, 3, 1),
    "c15": (1, 2, 1, 5),
    "c51": (1, 1, 5, 1),
    "c17": (1, 2, 1, 7),
    "c71": (1, 1, 7, 1),
}
_CONV_RELU = {"spatial": False, "c13": True, "c31": True, "c15": True,
              "c51": True, "c17": True, "c71": True}
_CONV_PAD = {"spatial": (3, 3), "c13": (0, 1), "c31": (1, 0), "c15": (0, 2),
             "c51": (2, 0), "c17": (0, 3), "c71": (3, 0)}


# --------------------------------------------------------------------------
# Pallas kernel
# --------------------------------------------------------------------------
def _csam_kernel(x_ref, wp_ref, o_ref, *, C, H, W, k_eca, offs):
    Bt = x_ref.shape[0]
    HW = H * W
    x = x_ref[...].astype(jnp.float32)                    # (Bt, C, H*W), lane-dense

    # ---------------- Channel gate (ECAAPMP) ----------------
    avg = jnp.mean(x, axis=2, keepdims=True)              # (Bt, C, 1)
    mx = jnp.max(x, axis=2, keepdims=True)                # (Bt, C, 1)
    p = k_eca // 2
    if p > 0:
        zc = jnp.zeros((Bt, p, 1), jnp.float32)
        avg_p = jnp.concatenate([zc, avg, zc], axis=1)
        mx_p = jnp.concatenate([zc, mx, zc], axis=1)
    else:
        avg_p, mx_p = avg, mx
    o_eca = offs["eca"]
    logits = jnp.zeros((Bt, C, 1), jnp.float32)
    for t in range(k_eca):                                # shift-and-MAC over channels
        logits = logits + wp_ref[o_eca + t] * avg_p[:, t:t + C, :]
        logits = logits + wp_ref[o_eca + k_eca + t] * mx_p[:, t:t + C, :]
    gate = jax.nn.sigmoid(logits)                         # (Bt, C, 1)

    y = x * gate                                          # channel-gated features

    # ---------------- Spatial gate ----------------
    # ChannelPool (max / mean over C), kept flattened over H*W (lane-dense).
    cmax = jnp.max(y, axis=1)                             # (Bt, H*W)
    cmean = jnp.mean(y, axis=1)                           # (Bt, H*W)

    halo = 3 * W + 3                                      # max |dy|*W + |dx| (7x7)

    def pad_flat(v, pf):
        z = jnp.zeros((Bt, pf), jnp.float32)
        return jnp.concatenate([z, v, z], axis=1)

    cmax_p = pad_flat(cmax, halo)
    cmean_p = pad_flat(cmean, halo)

    # Column-validity masks for horizontal offsets: a flattened shift by dx
    # would wrap across row boundaries; mask emulates zero 'same' padding in W.
    col = lax.broadcasted_iota(jnp.int32, (1, HW), 1) % W
    masks = {0: None}
    for d in range(1, 4):
        masks[d] = col < (W - d)
        masks[-d] = col >= d

    def tap(v_pad, pf, dy_off, dx_off):
        s = pf + dy_off * W + dx_off
        t = v_pad[:, s:s + HW]
        m = masks[dx_off]
        return t if m is None else jnp.where(m, t, 0.0)

    ob = offs["bias"]

    # 7x7 BasicConv branch (BN folded, no ReLU) -> accumulate into spatial logit.
    idx = offs["spatial"]
    s_logit = jnp.zeros((Bt, HW), jnp.float32) + wp_ref[ob + 0]
    for v_pad in (cmax_p, cmean_p):                       # channel 0 = max, 1 = mean
        for dy in range(7):
            for dx in range(7):
                s_logit = s_logit + wp_ref[idx] * tap(v_pad, halo, dy - 3, dx - 3)
                idx += 1

    def hconv(woff, kw, bias_idx):                        # (1,kw) conv on cp, BN+ReLU
        pw = (kw - 1) // 2
        out = jnp.zeros((Bt, HW), jnp.float32) + wp_ref[ob + bias_idx]
        widx = woff
        for v_pad in (cmax_p, cmean_p):
            for dx in range(kw):
                out = out + wp_ref[widx] * tap(v_pad, halo, 0, dx - pw)
                widx += 1
        return jnp.maximum(out, 0.0)

    def vconv(src, woff, kh, bias_idx):                   # (kh,1) conv, BN+ReLU
        ph = (kh - 1) // 2
        pf = ph * W
        src_p = pad_flat(src, pf)
        out = jnp.zeros((Bt, HW), jnp.float32) + wp_ref[ob + bias_idx]
        widx = woff
        for dy in range(kh):
            start = pf + (dy - ph) * W                    # row shifts never wrap
            out = out + wp_ref[widx] * src_p[:, start:start + HW]
            widx += 1
        return jnp.maximum(out, 0.0)

    s_logit = s_logit + vconv(hconv(offs["c13"], 3, 1), offs["c31"], 3, 2)
    s_logit = s_logit + vconv(hconv(offs["c15"], 5, 3), offs["c51"], 5, 4)
    s_logit = s_logit + vconv(hconv(offs["c17"], 7, 5), offs["c71"], 7, 6)

    scale = jax.nn.sigmoid(s_logit)                       # (Bt, H*W)
    o_ref[...] = (y * scale[:, None, :]).astype(o_ref.dtype)   # one full-block store


# --------------------------------------------------------------------------
# Parameter init / packing (plain-JAX glue)
# --------------------------------------------------------------------------
def eca_kernel_size(channel, gamma=2, b=1):
    k = int(abs((math.log(channel, 2) + b) / gamma))
    return k if k % 2 else k + 1


def init_params(C, key):
    k = eca_kernel_size(C)
    keys = jax.random.split(key, 1 + 5 * len(_CONV_NAMES))
    params = {"w_eca": 0.5 * jax.random.normal(keys[0], (1, 2, k), jnp.float32)}
    ki = 1
    for name in _CONV_NAMES:
        params[name + "_w"] = 0.2 * jax.random.normal(keys[ki], _CONV_SHAPES[name], jnp.float32); ki += 1
        params[name + "_gamma"] = jax.random.uniform(keys[ki], (1,), jnp.float32, 0.5, 1.5); ki += 1
        params[name + "_beta"] = 0.1 * jax.random.normal(keys[ki], (1,), jnp.float32); ki += 1
        params[name + "_mean"] = 0.1 * jax.random.normal(keys[ki], (1,), jnp.float32); ki += 1
        params[name + "_var"] = jax.random.uniform(keys[ki], (1,), jnp.float32, 0.5, 1.5); ki += 1
    return params


def pack_kernel_params(params):
    """Fold BN into conv weights/bias and flatten everything into one f32 vector."""
    flats, biases, offs = [], [], {}
    off = 0
    for name in _CONV_NAMES:
        bn_scale = params[name + "_gamma"] / jnp.sqrt(params[name + "_var"] + _EPS)
        wf = (params[name + "_w"] * bn_scale).reshape(-1)
        biases.append(params[name + "_beta"] - params[name + "_mean"] * bn_scale)
        offs[name] = off
        off += int(np.prod(_CONV_SHAPES[name]))
        flats.append(wf)
    offs["bias"] = off
    off += len(_CONV_NAMES)
    offs["eca"] = off
    k_eca = params["w_eca"].shape[-1]
    wp = jnp.concatenate(flats + [jnp.concatenate(biases), params["w_eca"].reshape(-1)])
    return wp.astype(jnp.float32), offs, k_eca


def _pick_block_b(B, C, HW, budget_bytes=2 << 20):
    # in + out blocks, double-buffered, f32
    per_elem = C * HW * 4 * 4
    fits = [d for d in range(1, B + 1) if B % d == 0 and d * per_elem <= budget_bytes]
    if not fits:
        return 1
    # Prefer keeping >= 2 grid steps so v7x can use both TensorCores.
    multi_step = [d for d in fits if B // d >= 2]
    return max(multi_step) if multi_step else max(fits)


def csam_new2_pallas(x, params, block_b=None):
    B, C, H, W = x.shape
    HW = H * W
    wp, offs, k_eca = pack_kernel_params(params)
    if block_b is None:
        block_b = _pick_block_b(B, C, HW)
    assert B % block_b == 0
    x2 = x.reshape(B, C, HW)                              # lane-dense layout
    kernel = functools.partial(_csam_kernel, C=C, H=H, W=W, k_eca=k_eca, offs=offs)
    out = pl.pallas_call(
        kernel,
        out_shape=jax.ShapeDtypeStruct((B, C, HW), x.dtype),
        grid_spec=pltpu.PrefetchScalarGridSpec(
            num_scalar_prefetch=0,
            grid=(B // block_b,),
            in_specs=[
                pl.BlockSpec((block_b, C, HW), lambda b: (b, 0, 0)),
                pl.BlockSpec(memory_space=pltpu.MemorySpace.SMEM),
            ],
            out_specs=pl.BlockSpec((block_b, C, HW), lambda b: (b, 0, 0)),
        ),
        compiler_params=pltpu.CompilerParams(
            dimension_semantics=("parallel",),
            vmem_limit_bytes=32 * 1024 * 1024,
        ),
    )(x2, wp)
    return out.reshape(B, C, H, W)


# --------------------------------------------------------------------------
# Pure-JAX reference (mirrors the PyTorch module, BN in eval mode)
# --------------------------------------------------------------------------
def ref_forward(x, params):
    B, C, H, W = x.shape
    # ECAAPMP
    avg = jnp.mean(x, axis=(2, 3))
    mx = jnp.max(x, axis=(2, 3))
    inp = jnp.stack([avg, mx], axis=1)                     # (B, 2, C)
    w = params["w_eca"]
    p = w.shape[-1] // 2
    out = lax.conv_general_dilated(inp, w, (1,), [(p, p)],
                                   dimension_numbers=("NCH", "OIH", "NCH"))
    gate = jax.nn.sigmoid(out).reshape(B, C, 1, 1)
    y = x * gate
    # SpatialGate_new
    cp = jnp.stack([jnp.max(y, axis=1), jnp.mean(y, axis=1)], axis=1)   # (B, 2, H, W)

    def cbr(z, name):
        ph, pw = _CONV_PAD[name]
        o = lax.conv_general_dilated(z, params[name + "_w"], (1, 1),
                                     [(ph, ph), (pw, pw)],
                                     dimension_numbers=("NCHW", "OIHW", "NCHW"))
        g = params[name + "_gamma"].reshape(1, -1, 1, 1)
        b = params[name + "_beta"].reshape(1, -1, 1, 1)
        m = params[name + "_mean"].reshape(1, -1, 1, 1)
        v = params[name + "_var"].reshape(1, -1, 1, 1)
        o = (o - m) / jnp.sqrt(v + _EPS) * g + b
        if _CONV_RELU[name]:
            o = jnp.maximum(o, 0.0)
        return o

    x1 = cbr(cp, "spatial")
    x3 = cbr(cbr(cp, "c13"), "c31")
    x5 = cbr(cbr(cp, "c15"), "c51")
    x7 = cbr(cbr(cp, "c17"), "c71")
    scale = jax.nn.sigmoid(x1 + x3 + x5 + x7)
    return y * scale


if __name__ == "__main__":
    B, C, H, W = 2, 32, 16, 16
    key = jax.random.PRNGKey(0)
    kx, kp = jax.random.split(key)
    x = jax.random.normal(kx, (B, C, H, W), jnp.float32)
    params = init_params(C, kp)

    out = csam_new2_pallas(x, params)
    out = jax.block_until_ready(out)

    ref = ref_forward(x, params)
    err = float(jnp.max(jnp.abs(out - ref)))
    assert err < 3e-3, f"kernel/reference mismatch: max abs err = {err}"
    print("KERNEL_OK")
</pallas_src>

<mosaic_0001>
module attributes {stable_mosaic.version = 11 : i64} {
  func.func @_csam_kernel(%arg0: i32, %arg1: memref<1x32x256xf32, #tpu.memory_space<vmem>>, %arg2: memref<156xf32, #tpu.memory_space<smem>>, %arg3: memref<1x32x256xf32, #tpu.memory_space<vmem>>) attributes {dimension_semantics = [#tpu.dimension_semantics<parallel>], iteration_bounds = array<i64: 2>, scalar_prefetch = 0 : i64, scratch_operands = 0 : i64, tpu.core_type = #tpu.core_type<tc>, window_params = [{transform_indices = @transform_0, window_bounds = array<i64: 1, 32, 256>}, {transform_indices = @transform_1, window_bounds = array<i64: 156>}, {transform_indices = @transform_2, window_bounds = array<i64: 1, 32, 256>}]} {
    %c0 = arith.constant 0 : index
    %c0_0 = arith.constant 0 : index
    %c0_1 = arith.constant 0 : index
    %0 = vector.load %arg1[%c0, %c0_0, %c0_1] : memref<1x32x256xf32, #tpu.memory_space<vmem>>, vector<1x32x256xf32>
    %cst = arith.constant dense<0.000000e+00> : vector<1x32xf32>
    %1 = vector.multi_reduction <add>, %0, %cst [2] : vector<1x32x256xf32> to vector<1x32xf32>
    %2 = vector.shape_cast %1 : vector<1x32xf32> to vector<1x32x1xf32>
    %cst_2 = arith.constant 2.560000e+02 : f32
    %3 = vector.broadcast %cst_2 : f32 to vector<1x32x1xf32>
    %4 = arith.divf %2, %3 : vector<1x32x1xf32>
    %cst_3 = arith.constant dense<0xFF800000> : vector<1x32xf32>
    %5 = vector.multi_reduction <maximumf>, %0, %cst_3 [2] : vector<1x32x256xf32> to vector<1x32xf32>
    %6 = vector.shape_cast %5 : vector<1x32xf32> to vector<1x32x1xf32>
    %cst_4 = arith.constant 0.000000e+00 : f32
    %7 = vector.broadcast %cst_4 : f32 to vector<1x1x1xf32>
    %8 = tpu.concatenate %7, %4, %7 in 1 : vector<1x1x1xf32>, vector<1x32x1xf32>, vector<1x1x1xf32> -> vector<1x34x1xf32>
    %9 = tpu.concatenate %7, %6, %7 in 1 : vector<1x1x1xf32>, vector<1x32x1xf32>, vector<1x1x1xf32> -> vector<1x34x1xf32>
    %cst_5 = arith.constant 0.000000e+00 : f32
    %10 = vector.broadcast %cst_5 : f32 to vector<1x32x1xf32>
    %c150 = arith.constant 150 : index
    %11 = memref.load %arg2[%c150] : memref<156xf32, #tpu.memory_space<smem>>
    %12 = vector.extract_strided_slice %8 {offsets = [0, 0, 0], sizes = [1, 32, 1], strides = [1, 1, 1]} : vector<1x34x1xf32> to vector<1x32x1xf32>
    %13 = vector.broadcast %11 : f32 to vector<1x32x1xf32>
    %14 = arith.mulf %13, %12 : vector<1x32x1xf32>
    %15 = arith.addf %10, %14 : vector<1x32x1xf32>
    %c153 = arith.constant 153 : index
    %16 = memref.load %arg2[%c153] : memref<156xf32, #tpu.memory_space<smem>>
    %17 = vector.extract_strided_slice %9 {offsets = [0, 0, 0], sizes = [1, 32, 1], strides = [1, 1, 1]} : vector<1x34x1xf32> to vector<1x32x1xf32>
    %18 = vector.broadcast %16 : f32 to vector<1x32x1xf32>
    %19 = arith.mulf %18, %17 : vector<1x32x1xf32>
    %20 = arith.addf %15, %19 : vector<1x32x1xf32>
    %c151 = arith.constant 151 : index
    %21 = memref.load %arg2[%c151] : memref<156xf32, #tpu.memory_space<smem>>
    %22 = vector.extract_strided_slice %8 {offsets = [0, 1, 0], sizes = [1, 32, 1], strides = [1, 1, 1]} : vector<1x34x1xf32> to vector<1x32x1xf32>
    %23 = vector.broadcast %21 : f32 to vector<1x32x1xf32>
    %24 = arith.mulf %23, %22 : vector<1x32x1xf32>
    %25 = arith.addf %20, %24 : vector<1x32x1xf32>
    %c154 = arith.constant 154 : index
    %26 = memref.load %arg2[%c154] : memref<156xf32, #tpu.memory_space<smem>>
    %27 = vector.extract_strided_slice %9 {offsets = [0, 1, 0], sizes = [1, 32, 1], strides = [1, 1, 1]} : vector<1x34x1xf32> to vector<1x32x1xf32>
    %28 = vector.broadcast %26 : f32 to vector<1x32x1xf32>
    %29 = arith.mulf %28, %27 : vector<1x32x1xf32>
    %30 = arith.addf %25, %29 : vector<1x32x1xf32>
    %c152 = arith.constant 152 : index
    %31 = memref.load %arg2[%c152] : memref<156xf32, #tpu.memory_space<smem>>
    %32 = vector.extract_strided_slice %8 {offsets = [0, 2, 0], sizes = [1, 32, 1], strides = [1, 1, 1]} : vector<1x34x1xf32> to vector<1x32x1xf32>
    %33 = vector.broadcast %31 : f32 to vector<1x32x1xf32>
    %34 = arith.mulf %33, %32 : vector<1x32x1xf32>
    %35 = arith.addf %30, %34 : vector<1x32x1xf32>
    %c155 = arith.constant 155 : index
    %36 = memref.load %arg2[%c155] : memref<156xf32, #tpu.memory_space<smem>>
    %37 = vector.extract_strided_slice %9 {offsets = [0, 2, 0], sizes = [1, 32, 1], strides = [1, 1, 1]} : vector<1x34x1xf32> to vector<1x32x1xf32>
    %38 = vector.broadcast %36 : f32 to vector<1x32x1xf32>
    %39 = arith.mulf %38, %37 : vector<1x32x1xf32>
    %40 = arith.addf %35, %39 : vector<1x32x1xf32>
    %41 = arith.negf %40 : vector<1x32x1xf32>
    %42 = math.exp %41 : vector<1x32x1xf32>
    %cst_6 = arith.constant 1.000000e+00 : f32
    %43 = vector.broadcast %cst_6 : f32 to vector<1x32x1xf32>
    %44 = arith.addf %43, %42 : vector<1x32x1xf32>
    %45 = arith.divf %43, %44 : vector<1x32x1xf32>
    %46 = vector.broadcast %45 : vector<1x32x1xf32> to vector<1x32x256xf32>
    %47 = arith.mulf %0, %46 : vector<1x32x256xf32>
    %cst_7 = arith.constant dense<0xFF800000> : vector<1x256xf32>
    %48 = vector.multi_reduction <maximumf>, %47, %cst_7 [1] : vector<1x32x256xf32> to vector<1x256xf32>
    %cst_8 = arith.constant dense<0.000000e+00> : vector<1x256xf32>
    %49 = vector.multi_reduction <add>, %47, %cst_8 [1] : vector<1x32x256xf32> to vector<1x256xf32>
    %cst_9 = arith.constant 3.200000e+01 : f32
    %50 = vector.broadcast %cst_9 : f32 to vector<1x256xf32>
    %51 = arith.divf %49, %50 : vector<1x256xf32>
    %cst_10 = arith.constant 0.000000e+00 : f32
    %52 = vector.broadcast %cst_10 : f32 to vector<1x51xf32>
    %53 = tpu.concatenate %52, %48, %52 in 1 : vector<1x51xf32>, vector<1x256xf32>, vector<1x51xf32> -> vector<1x358xf32>
    %cst_11 = arith.constant 0.000000e+00 : f32
    %54 = vector.broadcast %cst_11 : f32 to vector<1x51xf32>
    %55 = tpu.concatenate %54, %51, %54 in 1 : vector<1x51xf32>, vector<1x256xf32>, vector<1x51xf32> -> vector<1x358xf32>
    %56 = tpu.iota {dimensions = array<i32: 1>} : vector<1x256xi32>
    %c16_i32 = arith.constant 16 : i32
    %c0_i32 = arith.constant 0 : i32
    %57 = arith.cmpi eq, %c16_i32, %c0_i32 : i32
    %c1_i32 = arith.constant 1 : i32
    %58 = arith.select %57, %c1_i32, %c16_i32 : i32
    %59 = vector.broadcast %58 : i32 to vector<1x256xi32>
    %60 = arith.remsi %56, %59 : vector<1x256xi32>
    %c0_i32_12 = arith.constant 0 : i32
    %61 = vector.broadcast %c0_i32_12 : i32 to vector<1x256xi32>
    %62 = arith.cmpi ne, %60, %61 : vector<1x256xi32>
    %c0_i32_13 = arith.constant 0 : i32
    %63 = vector.broadcast %c0_i32_13 : i32 to vector<1x256xi32>
    %64 = arith.cmpi slt, %60, %63 : vector<1x256xi32>
    %c0_i32_14 = arith.constant 0 : i32
    %65 = arith.cmpi slt, %58, %c0_i32_14 : i32
    %66 = vector.broadcast %65 : i1 to vector<1x256xi1>
    %67 = vector.broadcast %66 : vector<1x256xi1> to vector<1x256xi1>
    %68 = arith.xori %64, %67 : vector<1x256xi1>
    %69 = arith.andi %68, %62 : vector<1x256xi1>
    %70 = vector.broadcast %58 : i32 to vector<1x256xi32>
    %71 = arith.addi %60, %70 : vector<1x256xi32>
    %72 = arith.select %69, %71, %60 : vector<1x256xi1>, vector<1x256xi32>
    %c15_i32 = arith.constant 15 : i32
    %73 = vector.broadcast %c15_i32 : i32 to vector<1x256xi32>
    %74 = arith.cmpi slt, %72, %73 : vector<1x256xi32>
    %c1_i32_15 = arith.constant 1 : i32
    %75 = vector.broadcast %c1_i32_15 : i32 to vector<1x256xi32>
    %76 = arith.cmpi sge, %72, %75 : vector<1x256xi32>
    %c14_i32 = arith.constant 14 : i32
    %77 = vector.broadcast %c14_i32 : i32 to vector<1x256xi32>
    %78 = arith.cmpi slt, %72, %77 : vector<1x256xi32>
    %c2_i32 = arith.constant 2 : i32
    %79 = vector.broadcast %c2_i32 : i32 to vector<1x256xi32>
    %80 = arith.cmpi sge, %72, %79 : vector<1x256xi32>
    %c13_i32 = arith.constant 13 : i32
    %81 = vector.broadcast %c13_i32 : i32 to vector<1x256xi32>
    %82 = arith.cmpi slt, %72, %81 : vector<1x256xi32>
    %c3_i32 = arith.constant 3 : i32
    %83 = vector.broadcast %c3_i32 : i32 to vector<1x256xi32>
    %84 = arith.cmpi sge, %72, %83 : vector<1x256xi32>
    %cst_16 = arith.constant 0.000000e+00 : f32
    %85 = vector.broadcast %cst_16 : f32 to vector<1x256xf32>
    %c143 = arith.constant 143 : index
    %86 = memref.load %arg2[%c143] : memref<156xf32, #tpu.memory_space<smem>>
    %87 = vector.broadcast %86 : f32 to vector<1x256xf32>
    %88 = arith.addf %85, %87 : vector<1x256xf32>
    %c0_17 = arith.constant 0 : index
    %89 = memref.load %arg2[%c0_17] : memref<156xf32, #tpu.memory_space<smem>>
    %90 = vector.extract_strided_slice %53 {offsets = [0, 0], sizes = [1, 256], strides = [1, 1]} : vector<1x358xf32> to vector<1x256xf32>
    %cst_18 = arith.constant 0.000000e+00 : f32
    %91 = vector.broadcast %cst_18 : f32 to vector<1x256xf32>
    %92 = arith.select %84, %90, %91 : vector<1x256xi1>, vector<1x256xf32>
    %93 = vector.broadcast %89 : f32 to vector<1x256xf32>
    %94 = arith.mulf %93, %92 : vector<1x256xf32>
    %95 = arith.addf %88, %94 : vector<1x256xf32>
    %c1 = arith.constant 1 : index
    %96 = memref.load %arg2[%c1] : memref<156xf32, #tpu.memory_space<smem>>
    %97 = vector.extract_strided_slice %53 {offsets = [0, 1], sizes = [1, 256], strides = [1, 1]} : vector<1x358xf32> to vector<1x256xf32>
    %cst_19 = arith.constant 0.000000e+00 : f32
    %98 = vector.broadcast %cst_19 : f32 to vector<1x256xf32>
    %99 = arith.select %80, %97, %98 : vector<1x256xi1>, vector<1x256xf32>
    %100 = vector.broadcast %96 : f32 to vector<1x256xf32>
    %101 = arith.mulf %100, %99 : vector<1x256xf32>
    %102 = arith.addf %95, %101 : vector<1x256xf32>
    %c2 = arith.constant 2 : index
    %103 = memref.load %arg2[%c2] : memref<156xf32, #tpu.memory_space<smem>>
    %104 = vector.extract_strided_slice %53 {offsets = [0, 2], sizes = [1, 256], strides = [1, 1]} : vector<1x358xf32> to vector<1x256xf32>
    %cst_20 = arith.constant 0.000000e+00 : f32
    %105 = vector.broadcast %cst_20 : f32 to vector<1x256xf32>
    %106 = arith.select %76, %104, %105 : vector<1x256xi1>, vector<1x256xf32>
    %107 = vector.broadcast %103 : f32 to vector<1x256xf32>
    %108 = arith.mulf %107, %106 : vector<1x256xf32>
    %109 = arith.addf %102, %108 : vector<1x256xf32>
    %c3 = arith.constant 3 : index
    %110 = memref.load %arg2[%c3] : memref<156xf32, #tpu.memory_space<smem>>
    %111 = vector.extract_strided_slice %53 {offsets = [0, 3], sizes = [1, 256], strides = [1, 1]} : vector<1x358xf32> to vector<1x256xf32>
    %112 = vector.broadcast %110 : f32 to vector<1x256xf32>
    %113 = arith.mulf %112, %111 : vector<1x256xf32>
    %114 = arith.addf %109, %113 : vector<1x256xf32>
    %c4 = arith.constant 4 : index
    %115 = memref.load %arg2[%c4] : memref<156xf32, #tpu.memory_space<smem>>
    %116 = vector.extract_strided_slice %53 {offsets = [0, 4], sizes = [1, 256], strides = [1, 1]} : vector<1x358xf32> to vector<1x256xf32>
    %cst_21 = arith.constant 0.000000e+00 : f32
    %117 = vector.broadcast %cst_21 : f32 to vector<1x256xf32>
    %118 = arith.select %74, %116, %117 : vector<1x256xi1>, vector<1x256xf32>
    %119 = vector.broadcast %115 : f32 to vector<1x256xf32>
    %120 = arith.mulf %119, %118 : vector<1x256xf32>
    %121 = arith.addf %114, %120 : vector<1x256xf32>
    %c5 = arith.constant 5 : index
    %122 = memref.load %arg2[%c5] : memref<156xf32, #tpu.memory_space<smem>>
    %123 = vector.extract_strided_slice %53 {offsets = [0, 5], sizes = [1, 256], strides = [1, 1]} : vector<1x358xf32> to vector<1x256xf32>
    %cst_22 = arith.constant 0.000000e+00 : f32
    %124 = vector.broadcast %cst_22 : f32 to vector<1x256xf32>
    %125 = arith.select %78, %123, %124 : vector<1x256xi1>, vector<1x256xf32>
    %126 = vector.broadcast %122 : f32 to vector<1x256xf32>
    %127 = arith.mulf %126, %125 : vector<1x256xf32>
    %128 = arith.addf %121, %127 : vector<1x256xf32>
    %c6 = arith.constant 6 : index
    %129 = memref.load %arg2[%c6] : memref<156xf32, #tpu.memory_space<smem>>
    %130 = vector.extract_strided_slice %53 {offsets = [0, 6], sizes = [1, 256], strides = [1, 1]} : vector<1x358xf32> to vector<1x256xf32>
    %cst_23 = arith.constant 0.000000e+00 : f32
    %131 = vector.broadcast %cst_23 : f32 to vector<1x256xf32>
    %132 = arith.select %82, %130, %131 : vector<1x256xi1>, vector<1x256xf32>
    %133 = vector.broadcast %129 : f32 to vector<1x256xf32>
    %134 = arith.mulf %133, %132 : vector<1x256xf32>
    %135 = arith.addf %128, %134 : vector<1x256xf32>
    %c7 = arith.constant 7 : index
    %136 = memref.load %arg2[%c7] : memref<156xf32, #tpu.memory_space<smem>>
    %137 = vector.extract_strided_slice %53 {offsets = [0, 16], sizes = [1, 256], strides = [1, 1]} : vector<1x358xf32> to vector<1x256xf32>
    %cst_24 = arith.constant 0.000000e+00 : f32
    %138 = vector.broadcast %cst_24 : f32 to vector<1x256xf32>
    %139 = arith.select %84, %137, %138 : vector<1x256xi1>, vector<1x256xf32>
    %140 = vector.broadcast %136 : f32 to vector<1x256xf32>
    %141 = arith.mulf %140, %139 : vector<1x256xf32>
    %142 = arith.addf %135, %141 : vector<1x256xf32>
    %c8 = arith.constant 8 : index
    %143 = memref.load %arg2[%c8] : memref<156xf32, #tpu.memory_space<smem>>
    %144 = vector.extract_strided_slice %53 {offsets = [0, 17], sizes = [1, 256], strides = [1, 1]} : vector<1x358xf32> to vector<1x256xf32>
    %cst_25 = arith.constant 0.000000e+00 : f32
    %145 = vector.broadcast %cst_25 : f32 to vector<1x256xf32>
    %146 = arith.select %80, %144, %145 : vector<1x256xi1>, vector<1x256xf32>
    %147 = vector.broadcast %143 : f32 to vector<1x256xf32>
    %148 = arith.mulf %147, %146 : vector<1x256xf32>
    %149 = arith.addf %142, %148 : vector<1x256xf32>
    %c9 = arith.constant 9 : index
    %150 = memref.load %arg2[%c9] : memref<156xf32, #tpu.memory_space<smem>>
    %151 = vector.extract_strided_slice %53 {offsets = [0, 18], sizes = [1, 256], strides = [1, 1]} : vector<1x358xf32> to vector<1x256xf32>
    %cst_26 = arith.constant 0.000000e+00 : f32
    %152 = vector.broadcast %cst_26 : f32 to vector<1x256xf32>
    %153 = arith.select %76, %151, %152 : vector<1x256xi1>, vector<1x256xf32>
    %154 = vector.broadcast %150 : f32 to vector<1x256xf32>
    %155 = arith.mulf %154, %153 : vector<1x256xf32>
    %156 = arith.addf %149, %155 : vector<1x256xf32>
    %c10 = arith.constant 10 : index
    %157 = memref.load %arg2[%c10] : memref<156xf32, #tpu.memory_space<smem>>
    %158 = vector.extract_strided_slice %53 {offsets = [0, 19], sizes = [1, 256], strides = [1, 1]} : vector<1x358xf32> to vector<1x256xf32>
    %159 = vector.broadcast %157 : f32 to vector<1x256xf32>
    %160 = arith.mulf %159, %158 : vector<1x256xf32>
    %161 = arith.addf %156, %160 : vector<1x256xf32>
    %c11 = arith.constant 11 : index
    %162 = memref.load %arg2[%c11] : memref<156xf32, #tpu.memory_space<smem>>
    %163 = vector.extract_strided_slice %53 {offsets = [0, 20], sizes = [1, 256], strides = [1, 1]} : vector<1x358xf32> to vector<1x256xf32>
    %cst_27 = arith.constant 0.000000e+00 : f32
    %164 = vector.broadcast %cst_27 : f32 to vector<1x256xf32>
    %165 = arith.select %74, %163, %164 : vector<1x256xi1>, vector<1x256xf32>
    %166 = vector.broadcast %162 : f32 to vector<1x256xf32>
    %167 = arith.mulf %166, %165 : vector<1x256xf32>
    %168 = arith.addf %161, %167 : vector<1x256xf32>
    %c12 = arith.constant 12 : index
    %169 = memref.load %arg2[%c12] : memref<156xf32, #tpu.memory_space<smem>>
    %170 = vector.extract_strided_slice %53 {offsets = [0, 21], sizes = [1, 256], strides = [1, 1]} : vector<1x358xf32> to vector<1x256xf32>
    %cst_28 = arith.constant 0.000000e+00 : f32
    %171 = vector.broadcast %cst_28 : f32 to vector<1x256xf32>
    %172 = arith.select %78, %170, %171 : vector<1x256xi1>, vector<1x256xf32>
    %173 = vector.broadcast %169 : f32 to vector<1x256xf32>
    %174 = arith.mulf %173, %172 : vector<1x256xf32>
    %175 = arith.addf %168, %174 : vector<1x256xf32>
    %c13 = arith.constant 13 : index
    %176 = memref.load %arg2[%c13] : memref<156xf32, #tpu.memory_space<smem>>
    %177 = vector.extract_strided_slice %53 {offsets = [0, 22], sizes = [1, 256], strides = [1, 1]} : vector<1x358xf32> to vector<1x256xf32>
    %cst_29 = arith.constant 0.000000e+00 : f32
    %178 = vector.broadcast %cst_29 : f32 to vector<1x256xf32>
    %179 = arith.select %82, %177, %178 : vector<1x256xi1>, vector<1x256xf32>
    %180 = vector.broadcast %176 : f32 to vector<1x256xf32>
    %181 = arith.mulf %180, %179 : vector<1x256xf32>
    %182 = arith.addf %175, %181 : vector<1x256xf32>
    %c14 = arith.constant 14 : index
    %183 = memref.load %arg2[%c14] : memref<156xf32, #tpu.memory_space<smem>>
    %184 = vector.extract_strided_slice %53 {offsets = [0, 32], sizes = [1, 256], strides = [1, 1]} : vector<1x358xf32> to vector<1x256xf32>
    %cst_30 = arith.constant 0.000000e+00 : f32
    %185 = vector.broadcast %cst_30 : f32 to vector<1x256xf32>
    %186 = arith.select %84, %184, %185 : vector<1x256xi1>, vector<1x256xf32>
    %187 = vector.broadcast %183 : f32 to vector<1x256xf32>
    %188 = arith.mulf %187, %186 : vector<1x256xf32>
    %189 = arith.addf %182, %188 : vector<1x256xf32>
    %c15 = arith.constant 15 : index
    %190 = memref.load %arg2[%c15] : memref<156xf32, #tpu.memory_space<smem>>
    %191 = vector.extract_strided_slice %53 {offsets = [0, 33], sizes = [1, 256], strides = [1, 1]} : vector<1x358xf32> to vector<1x256xf32>
    %cst_31 = arith.constant 0.000000e+00 : f32
    %192 = vector.broadcast %cst_31 : f32 to vector<1x256xf32>
    %193 = arith.select %80, %191, %192 : vector<1x256xi1>, vector<1x256xf32>
    %194 = vector.broadcast %190 : f32 to vector<1x256xf32>
    %195 = arith.mulf %194, %193 : vector<1x256xf32>
    %196 = arith.addf %189, %195 : vector<1x256xf32>
    %c16 = arith.constant 16 : index
    %197 = memref.load %arg2[%c16] : memref<156xf32, #tpu.memory_space<smem>>
    %198 = vector.extract_strided_slice %53 {offsets = [0, 34], sizes = [1, 256], strides = [1, 1]} : vector<1x358xf32> to vector<1x256xf32>
    %cst_32 = arith.constant 0.000000e+00 : f32
    %199 = vector.broadcast %cst_32 : f32 to vector<1x256xf32>
    %200 = arith.select %76, %198, %199 : vector<1x256xi1>, vector<1x256xf32>
    %201 = vector.broadcast %197 : f32 to vector<1x256xf32>
    %202 = arith.mulf %201, %200 : vector<1x256xf32>
    %203 = arith.addf %196, %202 : vector<1x256xf32>
    %c17 = arith.constant 17 : index
    %204 = memref.load %arg2[%c17] : memref<156xf32, #tpu.memory_space<smem>>
    %205 = vector.extract_strided_slice %53 {offsets = [0, 35], sizes = [1, 256], strides = [1, 1]} : vector<1x358xf32> to vector<1x256xf32>
    %206 = vector.broadcast %204 : f32 to vector<1x256xf32>
    %207 = arith.mulf %206, %205 : vector<1x256xf32>
    %208 = arith.addf %203, %207 : vector<1x256xf32>
    %c18 = arith.constant 18 : index
    %209 = memref.load %arg2[%c18] : memref<156xf32, #tpu.memory_space<smem>>
    %210 = vector.extract_strided_slice %53 {offsets = [0, 36], sizes = [1, 256], strides = [1, 1]} : vector<1x358xf32> to vector<1x256xf32>
    %cst_33 = arith.constant 0.000000e+00 : f32
    %211 = vector.broadcast %cst_33 : f32 to vector<1x256xf32>
    %212 = arith.select %74, %210, %211 : vector<1x256xi1>, vector<1x256xf32>
    %213 = vector.broadcast %209 : f32 to vector<1x256xf32>
    %214 = arith.mulf %213, %212 : vector<1x256xf32>
    %215 = arith.addf %208, %214 : vector<1x256xf32>
    %c19 = arith.constant 19 : index
    %216 = memref.load %arg2[%c19] : memref<156xf32, #tpu.memory_space<smem>>
    %217 = vector.extract_strided_slice %53 {offsets = [0, 37], sizes = [1, 256], strides = [1, 1]} : vector<1x358xf32> to vector<1x256xf32>
    %cst_34 = arith.constant 0.000000e+00 : f32
    %218 = vector.broadcast %cst_34 : f32 to vector<1x256xf32>
    %219 = arith.select %78, %217, %218 : vector<1x256xi1>, vector<1x256xf32>
    %220 = vector.broadcast %216 : f32 to vector<1x256xf32>
    %221 = arith.mulf %220, %219 : vector<1x256xf32>
    %222 = arith.addf %215, %221 : vector<1x256xf32>
    %c20 = arith.constant 20 : index
    %223 = memref.load %arg2[%c20] : memref<156xf32, #tpu.memory_space<smem>>
    %224 = vector.extract_strided_slice %53 {offsets = [0, 38], sizes = [1, 256], strides = [1, 1]} : vector<1x358xf32> to vector<1x256xf32>
    %cst_35 = arith.constant 0.000000e+00 : f32
    %225 = vector.broadcast %cst_35 : f32 to vector<1x256xf32>
    %226 = arith.select %82, %224, %225 : vector<1x256xi1>, vector<1x256xf32>
    %227 = vector.broadcast %223 : f32 to vector<1x256xf32>
    %228 = arith.mulf %227, %226 : vector<1x256xf32>
    %229 = arith.addf %222, %228 : vector<1x256xf32>
    %c21 = arith.constant 21 : index
    %230 = memref.load %arg2[%c21] : memref<156xf32, #tpu.memory_space<smem>>
    %231 = vector.extract_strided_slice %53 {offsets = [0, 48], sizes = [1, 256], strides = [1, 1]} : vector<1x358xf32> to vector<1x256xf32>
    %cst_36 = arith.constant 0.000000e+00 : f32
    %232 = vector.broadcast %cst_36 : f32 to vector<1x256xf32>
    %233 = arith.select %84, %231, %232 : vector<1x256xi1>, vector<1x256xf32>
    %234 = vector.broadcast %230 : f32 to vector<1x256xf32>
    %235 = arith.mulf %234, %233 : vector<1x256xf32>
    %236 = arith.addf %229, %235 : vector<1x256xf32>
    %c22 = arith.constant 22 : index
    %237 = memref.load %arg2[%c22] : memref<156xf32, #tpu.memory_space<smem>>
    %238 = vector.extract_strided_slice %53 {offsets = [0, 49], sizes = [1, 256], strides = [1, 1]} : vector<1x358xf32> to vector<1x256xf32>
    %cst_37 = arith.constant 0.000000e+00 : f32
    %239 = vector.broadcast %cst_37 : f32 to vector<1x256xf32>
    %240 = arith.select %80, %238, %239 : vector<1x256xi1>, vector<1x256xf32>
    %241 = vector.broadcast %237 : f32 to vector<1x256xf32>
    %242 = arith.mulf %241, %240 : vector<1x256xf32>
    %243 = arith.addf %236, %242 : vector<1x256xf32>
    %c23 = arith.constant 23 : index
    %244 = memref.load %arg2[%c23] : memref<156xf32, #tpu.memory_space<smem>>
    %245 = vector.extract_strided_slice %53 {offsets = [0, 50], sizes = [1, 256], strides = [1, 1]} : vector<1x358xf32> to vector<1x256xf32>
    %cst_38 = arith.constant 0.000000e+00 : f32
    %246 = vector.broadcast %cst_38 : f32 to vector<1x256xf32>
    %247 = arith.select %76, %245, %246 : vector<1x256xi1>, vector<1x256xf32>
    %248 = vector.broadcast %244 : f32 to vector<1x256xf32>
    %249 = arith.mulf %248, %247 : vector<1x256xf32>
    %250 = arith.addf %243, %249 : vector<1x256xf32>
    %c24 = arith.constant 24 : index
    %251 = memref.load %arg2[%c24] : memref<156xf32, #tpu.memory_space<smem>>
    %252 = vector.extract_strided_slice %53 {offsets = [0, 51], sizes = [1, 256], strides = [1, 1]} : vector<1x358xf32> to vector<1x256xf32>
    %253 = vector.broadcast %251 : f32 to vector<1x256xf32>
    %254 = arith.mulf %253, %252 : vector<1x256xf32>
    %255 = arith.addf %250, %254 : vector<1x256xf32>
    %c25 = arith.constant 25 : index
    %256 = memref.load %arg2[%c25] : memref<156xf32, #tpu.memory_space<smem>>
    %257 = vector.extract_strided_slice %53 {offsets = [0, 52], sizes = [1, 256], strides = [1, 1]} : vector<1x358xf32> to vector<1x256xf32>
    %cst_39 = arith.constant 0.000000e+00 : f32
    %258 = vector.broadcast %cst_39 : f32 to vector<1x256xf32>
    %259 = arith.select %74, %257, %258 : vector<1x256xi1>, vector<1x256xf32>
    %260 = vector.broadcast %256 : f32 to vector<1x256xf32>
    %261 = arith.mulf %260, %259 : vector<1x256xf32>
    %262 = arith.addf %255, %261 : vector<1x256xf32>
    %c26 = arith.constant 26 : index
    %263 = memref.load %arg2[%c26] : memref<156xf32, #tpu.memory_space<smem>>
    %264 = vector.extract_strided_slice %53 {offsets = [0, 53], sizes = [1, 256], strides = [1, 1]} : vector<1x358xf32> to vector<1x256xf32>
    %cst_40 = arith.constant 0.000000e+00 : f32
    %265 = vector.broadcast %cst_40 : f32 to vector<1x256xf32>
    %266 = arith.select %78, %264, %265 : vector<1x256xi1>, vector<1x256xf32>
    %267 = vector.broadcast %263 : f32 to vector<1x256xf32>
    %268 = arith.mulf %267, %266 : vector<1x256xf32>
    %269 = arith.addf %262, %268 : vector<1x256xf32>
    %c27 = arith.constant 27 : index
    %270 = memref.load %arg2[%c27] : memref<156xf32, #tpu.memory_space<smem>>
    %271 = vector.extract_strided_slice %53 {offsets = [0, 54], sizes = [1, 256], strides = [1, 1]} : vector<1x358xf32> to vector<1x256xf32>
    %cst_41 = arith.constant 0.000000e+00 : f32
    %272 = vector.broadcast %cst_41 : f32 to vector<1x256xf32>
    %273 = arith.select %82, %271, %272 : vector<1x256xi1>, vector<1x256xf32>
    %274 = vector.broadcast %270 : f32 to vector<1x256xf32>
    %275 = arith.mulf %274, %273 : vector<1x256xf32>
    %276 = arith.addf %269, %275 : vector<1x256xf32>
    %c28 = arith.constant 28 : index
    %277 = memref.load %arg2[%c28] : memref<156xf32, #tpu.memory_space<smem>>
    %278 = vector.extract_strided_slice %53 {offsets = [0, 64], sizes = [1, 256], strides = [1, 1]} : vector<1x358xf32> to vector<1x256xf32>
    %cst_42 = arith.constant 0.000000e+00 : f32
    %279 = vector.broadcast %cst_42 : f32 to vector<1x256xf32>
    %280 = arith.select %84, %278, %279 : vector<1x256xi1>, vector<1x256xf32>
    %281 = vector.broadcast %277 : f32 to vector<1x256xf32>
    %282 = arith.mulf %281, %280 : vector<1x256xf32>
    %283 = arith.addf %276, %282 : vector<1x256xf32>
    %c29 = arith.constant 29 : index
    %284 = memref.load %arg2[%c29] : memref<156xf32, #tpu.memory_space<smem>>
    %285 = vector.extract_strided_slice %53 {offsets = [0, 65], sizes = [1, 256], strides = [1, 1]} : vector<1x358xf32> to vector<1x256xf32>
    %cst_43 = arith.constant 0.000000e+00 : f32
    %286 = vector.broadcast %cst_43 : f32 to vector<1x256xf32>
    %287 = arith.select %80, %285, %286 : vector<1x256xi1>, vector<1x256xf32>
    %288 = vector.broadcast %284 : f32 to vector<1x256xf32>
    %289 = arith.mulf %288, %287 : vector<1x256xf32>
    %290 = arith.addf %283, %289 : vector<1x256xf32>
    %c30 = arith.constant 30 : index
    %291 = memref.load %arg2[%c30] : memref<156xf32, #tpu.memory_space<smem>>
    %292 = vector.extract_strided_slice %53 {offsets = [0, 66], sizes = [1, 256], strides = [1, 1]} : vector<1x358xf32> to vector<1x256xf32>
    %cst_44 = arith.constant 0.000000e+00 : f32
    %293 = vector.broadcast %cst_44 : f32 to vector<1x256xf32>
    %294 = arith.select %76, %292, %293 : vector<1x256xi1>, vector<1x256xf32>
    %295 = vector.broadcast %291 : f32 to vector<1x256xf32>
    %296 = arith.mulf %295, %294 : vector<1x256xf32>
    %297 = arith.addf %290, %296 : vector<1x256xf32>
    %c31 = arith.constant 31 : index
    %298 = memref.load %arg2[%c31] : memref<156xf32, #tpu.memory_space<smem>>
    %299 = vector.extract_strided_slice %53 {offsets = [0, 67], sizes = [1, 256], strides = [1, 1]} : vector<1x358xf32> to vector<1x256xf32>
    %300 = vector.broadcast %298 : f32 to vector<1x256xf32>
    %301 = arith.mulf %300, %299 : vector<1x256xf32>
    %302 = arith.addf %297, %301 : vector<1x256xf32>
    %c32 = arith.constant 32 : index
    %303 = memref.load %arg2[%c32] : memref<156xf32, #tpu.memory_space<smem>>
    %304 = vector.extract_strided_slice %53 {offsets = [0, 68], sizes = [1, 256], strides = [1, 1]} : vector<1x358xf32> to vector<1x256xf32>
    %cst_45 = arith.constant 0.000000e+00 : f32
    %305 = vector.broadcast %cst_45 : f32 to vector<1x256xf32>
    %306 = arith.select %74, %304, %305 : vector<1x256xi1>, vector<1x256xf32>
    %307 = vector.broadcast %303 : f32 to vector<1x256xf32>
    %308 = arith.mulf %307, %306 : vector<1x256xf32>
    %309 = arith.addf %302, %308 : vector<1x256xf32>
    %c33 = arith.constant 33 : index
    %310 = memref.load %arg2[%c33] : memref<156xf32, #tpu.memory_space<smem>>
    %311 = vector.extract_strided_slice %53 {offsets = [0, 69], sizes = [1, 256], strides = [1, 1]} : vector<1x358xf32> to vector<1x256xf32>
    %cst_46 = arith.constant 0.000000e+00 : f32
    %312 = vector.broadcast %cst_46 : f32 to vector<1x256xf32>
    %313 = arith.select %78, %311, %312 : vector<1x256xi1>, vector<1x256xf32>
    %314 = vector.broadcast %310 : f32 to vector<1x256xf32>
    %315 = arith.mulf %314, %313 : vector<1x256xf32>
    %316 = arith.addf %309, %315 : vector<1x256xf32>
    %c34 = arith.constant 34 : index
    %317 = memref.load %arg2[%c34] : memref<156xf32, #tpu.memory_space<smem>>
    %318 = vector.extract_strided_slice %53 {offsets = [0, 70], sizes = [1, 256], strides = [1, 1]} : vector<1x358xf32> to vector<1x256xf32>
    %cst_47 = arith.constant 0.000000e+00 : f32
    %319 = vector.broadcast %cst_47 : f32 to vector<1x256xf32>
    %320 = arith.select %82, %318, %319 : vector<1x256xi1>, vector<1x256xf32>
    %321 = vector.broadcast %317 : f32 to vector<1x256xf32>
    %322 = arith.mulf %321, %320 : vector<1x256xf32>
    %323 = arith.addf %316, %322 : vector<1x256xf32>
    %c35 = arith.constant 35 : index
    %324 = memref.load %arg2[%c35] : memref<156xf32, #tpu.memory_space<smem>>
    %325 = vector.extract_strided_slice %53 {offsets = [0, 80], sizes = [1, 256], strides = [1, 1]} : vector<1x358xf32> to vector<1x256xf32>
    %cst_48 = arith.constant 0.000000e+00 : f32
    %326 = vector.broadcast %cst_48 : f32 to vector<1x256xf32>
    %327 = arith.select %84, %325, %326 : vector<1x256xi1>, vector<1x256xf32>
    %328 = vector.broadcast %324 : f32 to vector<1x256xf32>
    %329 = arith.mulf %328, %327 : vector<1x256xf32>
    %330 = arith.addf %323, %329 : vector<1x256xf32>
    %c36 = arith.constant 36 : index
    %331 = memref.load %arg2[%c36] : memref<156xf32, #tpu.memory_space<smem>>
    %332 = vector.extract_strided_slice %53 {offsets = [0, 81], sizes = [1, 256], strides = [1, 1]} : vector<1x358xf32> to vector<1x256xf32>
    %cst_49 = arith.constant 0.000000e+00 : f32
    %333 = vector.broadcast %cst_49 : f32 to vector<1x256xf32>
    %334 = arith.select %80, %332, %333 : vector<1x256xi1>, vector<1x256xf32>
    %335 = vector.broadcast %331 : f32 to vector<1x256xf32>
    %336 = arith.mulf %335, %334 : vector<1x256xf32>
    %337 = arith.addf %330, %336 : vector<1x256xf32>
    %c37 = arith.constant 37 : index
    %338 = memref.load %arg2[%c37] : memref<156xf32, #tpu.memory_space<smem>>
    %339 = vector.extract_strided_slice %53 {offsets = [0, 82], sizes = [1, 256], strides = [1, 1]} : vector<1x358xf32> to vector<1x256xf32>
    %cst_50 = arith.constant 0.000000e+00 : f32
    %340 = vector.broadcast %cst_50 : f32 to vector<1x256xf32>
    %341 = arith.select %76, %339, %340 : vector<1x256xi1>, vector<1x256xf32>
    %342 = vector.broadcast %338 : f32 to vector<1x256xf32>
    %343 = arith.mulf %342, %341 : vector<1x256xf32>
    %344 = arith.addf %337, %343 : vector<1x256xf32>
    %c38 = arith.constant 38 : index
    %345 = memref.load %arg2[%c38] : memref<156xf32, #tpu.memory_space<smem>>
    %346 = vector.extract_strided_slice %53 {offsets = [0, 83], sizes = [1, 256], strides = [1, 1]} : vector<1x358xf32> to vector<1x256xf32>
    %347 = vector.broadcast %345 : f32 to vector<1x256xf32>
    %348 = arith.mulf %347, %346 : vector<1x256xf32>
    %349 = arith.addf %344, %348 : vector<1x256xf32>
    %c39 = arith.constant 39 : index
    %350 = memref.load %arg2[%c39] : memref<156xf32, #tpu.memory_space<smem>>
    %351 = vector.extract_strided_slice %53 {offsets = [0, 84], sizes = [1, 256], strides = [1, 1]} : vector<1x358xf32> to vector<1x256xf32>
    %cst_51 = arith.constant 0.000000e+00 : f32
    %352 = vector.broadcast %cst_51 : f32 to vector<1x256xf32>
    %353 = arith.select %74, %351, %352 : vector<1x256xi1>, vector<1x256xf32>
    %354 = vector.broadcast %350 : f32 to vector<1x256xf32>
    %355 = arith.mulf %354, %353 : vector<1x256xf32>
    %356 = arith.addf %349, %355 : vector<1x256xf32>
    %c40 = arith.constant 40 : index
    %357 = memref.load %arg2[%c40] : memref<156xf32, #tpu.memory_space<smem>>
    %358 = vector.extract_strided_slice %53 {offsets = [0, 85], sizes = [1, 256], strides = [1, 1]} : vector<1x358xf32> to vector<1x256xf32>
    %cst_52 = arith.constant 0.000000e+00 : f32
    %359 = vector.broadcast %cst_52 : f32 to vector<1x256xf32>
    %360 = arith.select %78, %358, %359 : vector<1x256xi1>, vector<1x256xf32>
    %361 = vector.broadcast %357 : f32 to vector<1x256xf32>
    %362 = arith.mulf %361, %360 : vector<1x256xf32>
    %363 = arith.addf %356, %362 : vector<1x256xf32>
    %c41 = arith.constant 41 : index
    %364 = memref.load %arg2[%c41] : memref<156xf32, #tpu.memory_space<smem>>
    %365 = vector.extract_strided_slice %53 {offsets = [0, 86], sizes = [1, 256], strides = [1, 1]} : vector<1x358xf32> to vector<1x256xf32>
    %cst_53 = arith.constant 0.000000e+00 : f32
    %366 = vector.broadcast %cst_53 : f32 to vector<1x256xf32>
    %367 = arith.select %82, %365, %366 : vector<1x256xi1>, vector<1x256xf32>
    %368 = vector.broadcast %364 : f32 to vector<1x256xf32>
    %369 = arith.mulf %368, %367 : vector<1x256xf32>
    %370 = arith.addf %363, %369 : vector<1x256xf32>
    %c42 = arith.constant 42 : index
    %371 = memref.load %arg2[%c42] : memref<156xf32, #tpu.memory_space<smem>>
    %372 = vector.extract_strided_slice %53 {offsets = [0, 96], sizes = [1, 256], strides = [1, 1]} : vector<1x358xf32> to vector<1x256xf32>
    %cst_54 = arith.constant 0.000000e+00 : f32
    %373 = vector.broadcast %cst_54 : f32 to vector<1x256xf32>
    %374 = arith.select %84, %372, %373 : vector<1x256xi1>, vector<1x256xf32>
    %375 = vector.broadcast %371 : f32 to vector<1x256xf32>
    %376 = arith.mulf %375, %374 : vector<1x256xf32>
    %377 = arith.addf %370, %376 : vector<1x256xf32>
    %c43 = arith.constant 43 : index
    %378 = memref.load %arg2[%c43] : memref<156xf32, #tpu.memory_space<smem>>
    %379 = vector.extract_strided_slice %53 {offsets = [0, 97], sizes = [1, 256], strides = [1, 1]} : vector<1x358xf32> to vector<1x256xf32>
    %cst_55 = arith.constant 0.000000e+00 : f32
    %380 = vector.broadcast %cst_55 : f32 to vector<1x256xf32>
    %381 = arith.select %80, %379, %380 : vector<1x256xi1>, vector<1x256xf32>
    %382 = vector.broadcast %378 : f32 to vector<1x256xf32>
    %383 = arith.mulf %382, %381 : vector<1x256xf32>
    %384 = arith.addf %377, %383 : vector<1x256xf32>
    %c44 = arith.constant 44 : index
    %385 = memref.load %arg2[%c44] : memref<156xf32, #tpu.memory_space<smem>>
    %386 = vector.extract_strided_slice %53 {offsets = [0, 98], sizes = [1, 256], strides = [1, 1]} : vector<1x358xf32> to vector<1x256xf32>
    %cst_56 = arith.constant 0.000000e+00 : f32
    %387 = vector.broadcast %cst_56 : f32 to vector<1x256xf32>
    %388 = arith.select %76, %386, %387 : vector<1x256xi1>, vector<1x256xf32>
    %389 = vector.broadcast %385 : f32 to vector<1x256xf32>
    %390 = arith.mulf %389, %388 : vector<1x256xf32>
    %391 = arith.addf %384, %390 : vector<1x256xf32>
    %c45 = arith.constant 45 : index
    %392 = memref.load %arg2[%c45] : memref<156xf32, #tpu.memory_space<smem>>
    %393 = vector.extract_strided_slice %53 {offsets = [0, 99], sizes = [1, 256], strides = [1, 1]} : vector<1x358xf32> to vector<1x256xf32>
    %394 = vector.broadcast %392 : f32 to vector<1x256xf32>
    %395 = arith.mulf %394, %393 : vector<1x256xf32>
    %396 = arith.addf %391, %395 : vector<1x256xf32>
    %c46 = arith.constant 46 : index
    %397 = memref.load %arg2[%c46] : memref<156xf32, #tpu.memory_space<smem>>
    %398 = vector.extract_strided_slice %53 {offsets = [0, 100], sizes = [1, 256], strides = [1, 1]} : vector<1x358xf32> to vector<1x256xf32>
    %cst_57 = arith.constant 0.000000e+00 : f32
    %399 = vector.broadcast %cst_57 : f32 to vector<1x256xf32>
    %400 = arith.select %74, %398, %399 : vector<1x256xi1>, vector<1x256xf32>
    %401 = vector.broadcast %397 : f32 to vector<1x256xf32>
    %402 = arith.mulf %401, %400 : vector<1x256xf32>
    %403 = arith.addf %396, %402 : vector<1x256xf32>
    %c47 = arith.constant 47 : index
    %404 = memref.load %arg2[%c47] : memref<156xf32, #tpu.memory_space<smem>>
    %405 = vector.extract_strided_slice %53 {offsets = [0, 101], sizes = [1, 256], strides = [1, 1]} : vector<1x358xf32> to vector<1x256xf32>
    %cst_58 = arith.constant 0.000000e+00 : f32
    %406 = vector.broadcast %cst_58 : f32 to vector<1x256xf32>
    %407 = arith.select %78, %405, %406 : vector<1x256xi1>, vector<1x256xf32>
    %408 = vector.broadcast %404 : f32 to vector<1x256xf32>
    %409 = arith.mulf %408, %407 : vector<1x256xf32>
    %410 = arith.addf %403, %409 : vector<1x256xf32>
    %c48 = arith.constant 48 : index
    %411 = memref.load %arg2[%c48] : memref<156xf32, #tpu.memory_space<smem>>
    %412 = vector.extract_strided_slice %53 {offsets = [0, 102], sizes = [1, 256], strides = [1, 1]} : vector<1x358xf32> to vector<1x256xf32>
    %cst_59 = arith.constant 0.000000e+00 : f32
    %413 = vector.broadcast %cst_59 : f32 to vector<1x256xf32>
    %414 = arith.select %82, %412, %413 : vector<1x256xi1>, vector<1x256xf32>
    %415 = vector.broadcast %411 : f32 to vector<1x256xf32>
    %416 = arith.mulf %415, %414 : vector<1x256xf32>
    %417 = arith.addf %410, %416 : vector<1x256xf32>
    %c49 = arith.constant 49 : index
    %418 = memref.load %arg2[%c49] : memref<156xf32, #tpu.memory_space<smem>>
    %419 = vector.extract_strided_slice %55 {offsets = [0, 0], sizes = [1, 256], strides = [1, 1]} : vector<1x358xf32> to vector<1x256xf32>
    %cst_60 = arith.constant 0.000000e+00 : f32
    %420 = vector.broadcast %cst_60 : f32 to vector<1x256xf32>
    %421 = arith.select %84, %419, %420 : vector<1x256xi1>, vector<1x256xf32>
    %422 = vector.broadcast %418 : f32 to vector<1x256xf32>
    %423 = arith.mulf %422, %421 : vector<1x256xf32>
    %424 = arith.addf %417, %423 : vector<1x256xf32>
    %c50 = arith.constant 50 : index
    %425 = memref.load %arg2[%c50] : memref<156xf32, #tpu.memory_space<smem>>
    %426 = vector.extract_strided_slice %55 {offsets = [0, 1], sizes = [1, 256], strides = [1, 1]} : vector<1x358xf32> to vector<1x256xf32>
    %cst_61 = arith.constant 0.000000e+00 : f32
    %427 = vector.broadcast %cst_61 : f32 to vector<1x256xf32>
    %428 = arith.select %80, %426, %427 : vector<1x256xi1>, vector<1x256xf32>
    %429 = vector.broadcast %425 : f32 to vector<1x256xf32>
    %430 = arith.mulf %429, %428 : vector<1x256xf32>
    %431 = arith.addf %424, %430 : vector<1x256xf32>
    %c51 = arith.constant 51 : index
    %432 = memref.load %arg2[%c51] : memref<156xf32, #tpu.memory_space<smem>>
    %433 = vector.extract_strided_slice %55 {offsets = [0, 2], sizes = [1, 256], strides = [1, 1]} : vector<1x358xf32> to vector<1x256xf32>
    %cst_62 = arith.constant 0.000000e+00 : f32
    %434 = vector.broadcast %cst_62 : f32 to vector<1x256xf32>
    %435 = arith.select %76, %433, %434 : vector<1x256xi1>, vector<1x256xf32>
    %436 = vector.broadcast %432 : f32 to vector<1x256xf32>
    %437 = arith.mulf %436, %435 : vector<1x256xf32>
    %438 = arith.addf %431, %437 : vector<1x256xf32>
    %c52 = arith.constant 52 : index
    %439 = memref.load %arg2[%c52] : memref<156xf32, #tpu.memory_space<smem>>
    %440 = vector.extract_strided_slice %55 {offsets = [0, 3], sizes = [1, 256], strides = [1, 1]} : vector<1x358xf32> to vector<1x256xf32>
    %441 = vector.broadcast %439 : f32 to vector<1x256xf32>
    %442 = arith.mulf %441, %440 : vector<1x256xf32>
    %443 = arith.addf %438, %442 : vector<1x256xf32>
    %c53 = arith.constant 53 : index
    %444 = memref.load %arg2[%c53] : memref<156xf32, #tpu.memory_space<smem>>
    %445 = vector.extract_strided_slice %55 {offsets = [0, 4], sizes = [1, 256], strides = [1, 1]} : vector<1x358xf32> to vector<1x256xf32>
    %cst_63 = arith.constant 0.000000e+00 : f32
    %446 = vector.broadcast %cst_63 : f32 to vector<1x256xf32>
    %447 = arith.select %74, %445, %446 : vector<1x256xi1>, vector<1x256xf32>
    %448 = vector.broadcast %444 : f32 to vector<1x256xf32>
    %449 = arith.mulf %448, %447 : vector<1x256xf32>
    %450 = arith.addf %443, %449 : vector<1x256xf32>
    %c54 = arith.constant 54 : index
    %451 = memref.load %arg2[%c54] : memref<156xf32, #tpu.memory_space<smem>>
    %452 = vector.extract_strided_slice %55 {offsets = [0, 5], sizes = [1, 256], strides = [1, 1]} : vector<1x358xf32> to vector<1x256xf32>
    %cst_64 = arith.constant 0.000000e+00 : f32
    %453 = vector.broadcast %cst_64 : f32 to vector<1x256xf32>
    %454 = arith.select %78, %452, %453 : vector<1x256xi1>, vector<1x256xf32>
    %455 = vector.broadcast %451 : f32 to vector<1x256xf32>
    %456 = arith.mulf %455, %454 : vector<1x256xf32>
    %457 = arith.addf %450, %456 : vector<1x256xf32>
    %c55 = arith.constant 55 : index
    %458 = memref.load %arg2[%c55] : memref<156xf32, #tpu.memory_space<smem>>
    %459 = vector.extract_strided_slice %55 {offsets = [0, 6], sizes = [1, 256], strides = [1, 1]} : vector<1x358xf32> to vector<1x256xf32>
    %cst_65 = arith.constant 0.000000e+00 : f32
    %460 = vector.broadcast %cst_65 : f32 to vector<1x256xf32>
    %461 = arith.select %82, %459, %460 : vector<1x256xi1>, vector<1x256xf32>
    %462 = vector.broadcast %458 : f32 to vector<1x256xf32>
    %463 = arith.mulf %462, %461 : vector<1x256xf32>
    %464 = arith.addf %457, %463 : vector<1x256xf32>
    %c56 = arith.constant 56 : index
    %465 = memref.load %arg2[%c56] : memref<156xf32, #tpu.memory_space<smem>>
    %466 = vector.extract_strided_slice %55 {offsets = [0, 16], sizes = [1, 256], strides = [1, 1]} : vector<1x358xf32> to vector<1x256xf32>
    %cst_66 = arith.constant 0.000000e+00 : f32
    %467 = vector.broadcast %cst_66 : f32 to vector<1x256xf32>
    %468 = arith.select %84, %466, %467 : vector<1x256xi1>, vector<1x256xf32>
    %469 = vector.broadcast %465 : f32 to vector<1x256xf32>
    %470 = arith.mulf %469, %468 : vector<1x256xf32>
    %471 = arith.addf %464, %470 : vector<1x256xf32>
    %c57 = arith.constant 57 : index
    %472 = memref.load %arg2[%c57] : memref<156xf32, #tpu.memory_space<smem>>
    %473 = vector.extract_strided_slice %55 {offsets = [0, 17], sizes = [1, 256], strides = [1, 1]} : vector<1x358xf32> to vector<1x256xf32>
    %cst_67 = arith.constant 0.000000e+00 : f32
    %474 = vector.broadcast %cst_67 : f32 to vector<1x256xf32>
    %475 = arith.select %80, %473, %474 : vector<1x256xi1>, vector<1x256xf32>
    %476 = vector.broadcast %472 : f32 to vector<1x256xf32>
    %477 = arith.mulf %476, %475 : vector<1x256xf32>
    %478 = arith.addf %471, %477 : vector<1x256xf32>
    %c58 = arith.constant 58 : index
    %479 = memref.load %arg2[%c58] : memref<156xf32, #tpu.memory_space<smem>>
    %480 = vector.extract_strided_slice %55 {offsets = [0, 18], sizes = [1, 256], strides = [1, 1]} : vector<1x358xf32> to vector<1x256xf32>
    %cst_68 = arith.constant 0.000000e+00 : f32
    %481 = vector.broadcast %cst_68 : f32 to vector<1x256xf32>
    %482 = arith.select %76, %480, %481 : vector<1x256xi1>, vector<1x256xf32>
    %483 = vector.broadcast %479 : f32 to vector<1x256xf32>
    %484 = arith.mulf %483, %482 : vector<1x256xf32>
    %485 = arith.addf %478, %484 : vector<1x256xf32>
    %c59 = arith.constant 59 : index
    %486 = memref.load %arg2[%c59] : memref<156xf32, #tpu.memory_space<smem>>
    %487 = vector.extract_strided_slice %55 {offsets = [0, 19], sizes = [1, 256], strides = [1, 1]} : vector<1x358xf32> to vector<1x256xf32>
    %488 = vector.broadcast %486 : f32 to vector<1x256xf32>
    %489 = arith.mulf %488, %487 : vector<1x256xf32>
    %490 = arith.addf %485, %489 : vector<1x256xf32>
    %c60 = arith.constant 60 : index
    %491 = memref.load %arg2[%c60] : memref<156xf32, #tpu.memory_space<smem>>
    %492 = vector.extract_strided_slice %55 {offsets = [0, 20], sizes = [1, 256], strides = [1, 1]} : vector<1x358xf32> to vector<1x256xf32>
    %cst_69 = arith.constant 0.000000e+00 : f32
    %493 = vector.broadcast %cst_69 : f32 to vector<1x256xf32>
    %494 = arith.select %74, %492, %493 : vector<1x256xi1>, vector<1x256xf32>
    %495 = vector.broadcast %491 : f32 to vector<1x256xf32>
    %496 = arith.mulf %495, %494 : vector<1x256xf32>
    %497 = arith.addf %490, %496 : vector<1x256xf32>
    %c61 = arith.constant 61 : index
    %498 = memref.load %arg2[%c61] : memref<156xf32, #tpu.memory_space<smem>>
    %499 = vector.extract_strided_slice %55 {offsets = [0, 21], sizes = [1, 256], strides = [1, 1]} : vector<1x358xf32> to vector<1x256xf32>
    %cst_70 = arith.constant 0.000000e+00 : f32
    %500 = vector.broadcast %cst_70 : f32 to vector<1x256xf32>
    %501 = arith.select %78, %499, %500 : vector<1x256xi1>, vector<1x256xf32>
    %502 = vector.broadcast %498 : f32 to vector<1x256xf32>
    %503 = arith.mulf %502, %501 : vector<1x256xf32>
    %504 = arith.addf %497, %503 : vector<1x256xf32>
    %c62 = arith.constant 62 : index
    %505 = memref.load %arg2[%c62] : memref<156xf32, #tpu.memory_space<smem>>
    %506 = vector.extract_strided_slice %55 {offsets = [0, 22], sizes = [1, 256], strides = [1, 1]} : vector<1x358xf32> to vector<1x256xf32>
    %cst_71 = arith.constant 0.000000e+00 : f32
    %507 = vector.broadcast %cst_71 : f32 to vector<1x256xf32>
    %508 = arith.select %82, %506, %507 : vector<1x256xi1>, vector<1x256xf32>
    %509 = vector.broadcast %505 : f32 to vector<1x256xf32>
    %510 = arith.mulf %509, %508 : vector<1x256xf32>
    %511 = arith.addf %504, %510 : vector<1x256xf32>
    %c63 = arith.constant 63 : index
    %512 = memref.load %arg2[%c63] : memref<156xf32, #tpu.memory_space<smem>>
    %513 = vector.extract_strided_slice %55 {offsets = [0, 32], sizes = [1, 256], strides = [1, 1]} : vector<1x358xf32> to vector<1x256xf32>
    %cst_72 = arith.constant 0.000000e+00 : f32
    %514 = vector.broadcast %cst_72 : f32 to vector<1x256xf32>
    %515 = arith.select %84, %513, %514 : vector<1x256xi1>, vector<1x256xf32>
    %516 = vector.broadcast %512 : f32 to vector<1x256xf32>
    %517 = arith.mulf %516, %515 : vector<1x256xf32>
    %518 = arith.addf %511, %517 : vector<1x256xf32>
    %c64 = arith.constant 64 : index
    %519 = memref.load %arg2[%c64] : memref<156xf32, #tpu.memory_space<smem>>
    %520 = vector.extract_strided_slice %55 {offsets = [0, 33], sizes = [1, 256], strides = [1, 1]} : vector<1x358xf32> to vector<1x256xf32>
    %cst_73 = arith.constant 0.000000e+00 : f32
    %521 = vector.broadcast %cst_73 : f32 to vector<1x256xf32>
    %522 = arith.select %80, %520, %521 : vector<1x256xi1>, vector<1x256xf32>
    %523 = vector.broadcast %519 : f32 to vector<1x256xf32>
    %524 = arith.mulf %523, %522 : vector<1x256xf32>
    %525 = arith.addf %518, %524 : vector<1x256xf32>
    %c65 = arith.constant 65 : index
    %526 = memref.load %arg2[%c65] : memref<156xf32, #tpu.memory_space<smem>>
    %527 = vector.extract_strided_slice %55 {offsets = [0, 34], sizes = [1, 256], strides = [1, 1]} : vector<1x358xf32> to vector<1x256xf32>
    %cst_74 = arith.constant 0.000000e+00 : f32
    %528 = vector.broadcast %cst_74 : f32 to vector<1x256xf32>
    %529 = arith.select %76, %527, %528 : vector<1x256xi1>, vector<1x256xf32>
    %530 = vector.broadcast %526 : f32 to vector<1x256xf32>
    %531 = arith.mulf %530, %529 : vector<1x256xf32>
    %532 = arith.addf %525, %531 : vector<1x256xf32>
    %c66 = arith.constant 66 : index
    %533 = memref.load %arg2[%c66] : memref<156xf32, #tpu.memory_space<smem>>
    %534 = vector.extract_strided_slice %55 {offsets = [0, 35], sizes = [1, 256], strides = [1, 1]} : vector<1x358xf32> to vector<1x256xf32>
    %535 = vector.broadcast %533 : f32 to vector<1x256xf32>
    %536 = arith.mulf %535, %534 : vector<1x256xf32>
    %537 = arith.addf %532, %536 : vector<1x256xf32>
    %c67 = arith.constant 67 : index
    %538 = memref.load %arg2[%c67] : memref<156xf32, #tpu.memory_space<smem>>
    %539 = vector.extract_strided_slice %55 {offsets = [0, 36], sizes = [1, 256], strides = [1, 1]} : vector<1x358xf32> to vector<1x256xf32>
    %cst_75 = arith.constant 0.000000e+00 : f32
    %540 = vector.broadcast %cst_75 : f32 to vector<1x256xf32>
    %541 = arith.select %74, %539, %540 : vector<1x256xi1>, vector<1x256xf32>
    %542 = vector.broadcast %538 : f32 to vector<1x256xf32>
    %543 = arith.mulf %542, %541 : vector<1x256xf32>
    %544 = arith.addf %537, %543 : vector<1x256xf32>
    %c68 = arith.constant 68 : index
    %545 = memref.load %arg2[%c68] : memref<156xf32, #tpu.memory_space<smem>>
    %546 = vector.extract_strided_slice %55 {offsets = [0, 37], sizes = [1, 256], strides = [1, 1]} : vector<1x358xf32> to vector<1x256xf32>
    %cst_76 = arith.constant 0.000000e+00 : f32
    %547 = vector.broadcast %cst_76 : f32 to vector<1x256xf32>
    %548 = arith.select %78, %546, %547 : vector<1x256xi1>, vector<1x256xf32>
    %549 = vector.broadcast %545 : f32 to vector<1x256xf32>
    %550 = arith.mulf %549, %548 : vector<1x256xf32>
    %551 = arith.addf %544, %550 : vector<1x256xf32>
    %c69 = arith.constant 69 : index
    %552 = memref.load %arg2[%c69] : memref<156xf32, #tpu.memory_space<smem>>
    %553 = vector.extract_strided_slice %55 {offsets = [0, 38], sizes = [1, 256], strides = [1, 1]} : vector<1x358xf32> to vector<1x256xf32>
    %cst_77 = arith.constant 0.000000e+00 : f32
    %554 = vector.broadcast %cst_77 : f32 to vector<1x256xf32>
    %555 = arith.select %82, %553, %554 : vector<1x256xi1>, vector<1x256xf32>
    %556 = vector.broadcast %552 : f32 to vector<1x256xf32>
    %557 = arith.mulf %556, %555 : vector<1x256xf32>
    %558 = arith.addf %551, %557 : vector<1x256xf32>
    %c70 = arith.constant 70 : index
    %559 = memref.load %arg2[%c70] : memref<156xf32, #tpu.memory_space<smem>>
    %560 = vector.extract_strided_slice %55 {offsets = [0, 48], sizes = [1, 256], strides = [1, 1]} : vector<1x358xf32> to vector<1x256xf32>
    %cst_78 = arith.constant 0.000000e+00 : f32
    %561 = vector.broadcast %cst_78 : f32 to vector<1x256xf32>
    %562 = arith.select %84, %560, %561 : vector<1x256xi1>, vector<1x256xf32>
    %563 = vector.broadcast %559 : f32 to vector<1x256xf32>
    %564 = arith.mulf %563, %562 : vector<1x256xf32>
    %565 = arith.addf %558, %564 : vector<1x256xf32>
    %c71 = arith.constant 71 : index
    %566 = memref.load %arg2[%c71] : memref<156xf32, #tpu.memory_space<smem>>
    %567 = vector.extract_strided_slice %55 {offsets = [0, 49], sizes = [1, 256], strides = [1, 1]} : vector<1x358xf32> to vector<1x256xf32>
    %cst_79 = arith.constant 0.000000e+00 : f32
    %568 = vector.broadcast %cst_79 : f32 to vector<1x256xf32>
    %569 = arith.select %80, %567, %568 : vector<1x256xi1>, vector<1x256xf32>
    %570 = vector.broadcast %566 : f32 to vector<1x256xf32>
    %571 = arith.mulf %570, %569 : vector<1x256xf32>
    %572 = arith.addf %565, %571 : vector<1x256xf32>
    %c72 = arith.constant 72 : index
    %573 = memref.load %arg2[%c72] : memref<156xf32, #tpu.memory_space<smem>>
    %574 = vector.extract_strided_slice %55 {offsets = [0, 50], sizes = [1, 256], strides = [1, 1]} : vector<1x358xf32> to vector<1x256xf32>
    %cst_80 = arith.constant 0.000000e+00 : f32
    %575 = vector.broadcast %cst_80 : f32 to vector<1x256xf32>
    %576 = arith.select %76, %574, %575 : vector<1x256xi1>, vector<1x256xf32>
    %577 = vector.broadcast %573 : f32 to vector<1x256xf32>
    %578 = arith.mulf %577, %576 : vector<1x256xf32>
    %579 = arith.addf %572, %578 : vector<1x256xf32>
    %c73 = arith.constant 73 : index
    %580 = memref.load %arg2[%c73] : memref<156xf32, #tpu.memory_space<smem>>
    %581 = vector.extract_strided_slice %55 {offsets = [0, 51], sizes = [1, 256], strides = [1, 1]} : vector<1x358xf32> to vector<1x256xf32>
    %582 = vector.broadcast %580 : f32 to vector<1x256xf32>
    %583 = arith.mulf %582, %581 : vector<1x256xf32>
    %584 = arith.addf %579, %583 : vector<1x256xf32>
    %c74 = arith.constant 74 : index
    %585 = memref.load %arg2[%c74] : memref<156xf32, #tpu.memory_space<smem>>
    %586 = vector.extract_strided_slice %55 {offsets = [0, 52], sizes = [1, 256], strides = [1, 1]} : vector<1x358xf32> to vector<1x256xf32>
    %cst_81 = arith.constant 0.000000e+00 : f32
    %587 = vector.broadcast %cst_81 : f32 to vector<1x256xf32>
    %588 = arith.select %74, %586, %587 : vector<1x256xi1>, vector<1x256xf32>
    %589 = vector.broadcast %585 : f32 to vector<1x256xf32>
    %590 = arith.mulf %589, %588 : vector<1x256xf32>
    %591 = arith.addf %584, %590 : vector<1x256xf32>
    %c75 = arith.constant 75 : index
    %592 = memref.load %arg2[%c75] : memref<156xf32, #tpu.memory_space<smem>>
    %593 = vector.extract_strided_slice %55 {offsets = [0, 53], sizes = [1, 256], strides = [1, 1]} : vector<1x358xf32> to vector<1x256xf32>
    %cst_82 = arith.constant 0.000000e+00 : f32
    %594 = vector.broadcast %cst_82 : f32 to vector<1x256xf32>
    %595 = arith.select %78, %593, %594 : vector<1x256xi1>, vector<1x256xf32>
    %596 = vector.broadcast %592 : f32 to vector<1x256xf32>
    %597 = arith.mulf %596, %595 : vector<1x256xf32>
    %598 = arith.addf %591, %597 : vector<1x256xf32>
    %c76 = arith.constant 76 : index
    %599 = memref.load %arg2[%c76] : memref<156xf32, #tpu.memory_space<smem>>
    %600 = vector.extract_strided_slice %55 {offsets = [0, 54], sizes = [1, 256], strides = [1, 1]} : vector<1x358xf32> to vector<1x256xf32>
    %cst_83 = arith.constant 0.000000e+00 : f32
    %601 = vector.broadcast %cst_83 : f32 to vector<1x256xf32>
    %602 = arith.select %82, %600, %601 : vector<1x256xi1>, vector<1x256xf32>
    %603 = vector.broadcast %599 : f32 to vector<1x256xf32>
    %604 = arith.mulf %603, %602 : vector<1x256xf32>
    %605 = arith.addf %598, %604 : vector<1x256xf32>
    %c77 = arith.constant 77 : index
    %606 = memref.load %arg2[%c77] : memref<156xf32, #tpu.memory_space<smem>>
    %607 = vector.extract_strided_slice %55 {offsets = [0, 64], sizes = [1, 256], strides = [1, 1]} : vector<1x358xf32> to vector<1x256xf32>
    %cst_84 = arith.constant 0.000000e+00 : f32
    %608 = vector.broadcast %cst_84 : f32 to vector<1x256xf32>
    %609 = arith.select %84, %607, %608 : vector<1x256xi1>, vector<1x256xf32>
    %610 = vector.broadcast %606 : f32 to vector<1x256xf32>
    %611 = arith.mulf %610, %609 : vector<1x256xf32>
    %612 = arith.addf %605, %611 : vector<1x256xf32>
    %c78 = arith.constant 78 : index
    %613 = memref.load %arg2[%c78] : memref<156xf32, #tpu.memory_space<smem>>
    %614 = vector.extract_strided_slice %55 {offsets = [0, 65], sizes = [1, 256], strides = [1, 1]} : vector<1x358xf32> to vector<1x256xf32>
    %cst_85 = arith.constant 0.000000e+00 : f32
    %615 = vector.broadcast %cst_85 : f32 to vector<1x256xf32>
    %616 = arith.select %80, %614, %615 : vector<1x256xi1>, vector<1x256xf32>
    %617 = vector.broadcast %613 : f32 to vector<1x256xf32>
    %618 = arith.mulf %617, %616 : vector<1x256xf32>
    %619 = arith.addf %612, %618 : vector<1x256xf32>
    %c79 = arith.constant 79 : index
    %620 = memref.load %arg2[%c79] : memref<156xf32, #tpu.memory_space<smem>>
    %621 = vector.extract_strided_slice %55 {offsets = [0, 66], sizes = [1, 256], strides = [1, 1]} : vector<1x358xf32> to vector<1x256xf32>
    %cst_86 = arith.constant 0.000000e+00 : f32
    %622 = vector.broadcast %cst_86 : f32 to vector<1x256xf32>
    %623 = arith.select %76, %621, %622 : vector<1x256xi1>, vector<1x256xf32>
    %624 = vector.broadcast %620 : f32 to vector<1x256xf32>
    %625 = arith.mulf %624, %623 : vector<1x256xf32>
    %626 = arith.addf %619, %625 : vector<1x256xf32>
    %c80 = arith.constant 80 : index
    %627 = memref.load %arg2[%c80] : memref<156xf32, #tpu.memory_space<smem>>
    %628 = vector.extract_strided_slice %55 {offsets = [0, 67], sizes = [1, 256], strides = [1, 1]} : vector<1x358xf32> to vector<1x256xf32>
    %629 = vector.broadcast %627 : f32 to vector<1x256xf32>
    %630 = arith.mulf %629, %628 : vector<1x256xf32>
    %631 = arith.addf %626, %630 : vector<1x256xf32>
    %c81 = arith.constant 81 : index
    %632 = memref.load %arg2[%c81] : memref<156xf32, #tpu.memory_space<smem>>
    %633 = vector.extract_strided_slice %55 {offsets = [0, 68], sizes = [1, 256], strides = [1, 1]} : vector<1x358xf32> to vector<1x256xf32>
    %cst_87 = arith.constant 0.000000e+00 : f32
    %634 = vector.broadcast %cst_87 : f32 to vector<1x256xf32>
    %635 = arith.select %74, %633, %634 : vector<1x256xi1>, vector<1x256xf32>
    %636 = vector.broadcast %632 : f32 to vector<1x256xf32>
    %637 = arith.mulf %636, %635 : vector<1x256xf32>
    %638 = arith.addf %631, %637 : vector<1x256xf32>
    %c82 = arith.constant 82 : index
    %639 = memref.load %arg2[%c82] : memref<156xf32, #tpu.memory_space<smem>>
    %640 = vector.extract_strided_slice %55 {offsets = [0, 69], sizes = [1, 256], strides = [1, 1]} : vector<1x358xf32> to vector<1x256xf32>
    %cst_88 = arith.constant 0.000000e+00 : f32
    %641 = vector.broadcast %cst_88 : f32 to vector<1x256xf32>
    %642 = arith.select %78, %640, %641 : vector<1x256xi1>, vector<1x256xf32>
    %643 = vector.broadcast %639 : f32 to vector<1x256xf32>
    %644 = arith.mulf %643, %642 : vector<1x256xf32>
    %645 = arith.addf %638, %644 : vector<1x256xf32>
    %c83 = arith.constant 83 : index
    %646 = memref.load %arg2[%c83] : memref<156xf32, #tpu.memory_space<smem>>
    %647 = vector.extract_strided_slice %55 {offsets = [0, 70], sizes = [1, 256], strides = [1, 1]} : vector<1x358xf32> to vector<1x256xf32>
    %cst_89 = arith.constant 0.000000e+00 : f32
    %648 = vector.broadcast %cst_89 : f32 to vector<1x256xf32>
    %649 = arith.select %82, %647, %648 : vector<1x256xi1>, vector<1x256xf32>
    %650 = vector.broadcast %646 : f32 to vector<1x256xf32>
    %651 = arith.mulf %650, %649 : vector<1x256xf32>
    %652 = arith.addf %645, %651 : vector<1x256xf32>
    %c84 = arith.constant 84 : index
    %653 = memref.load %arg2[%c84] : memref<156xf32, #tpu.memory_space<smem>>
    %654 = vector.extract_strided_slice %55 {offsets = [0, 80], sizes = [1, 256], strides = [1, 1]} : vector<1x358xf32> to vector<1x256xf32>
    %cst_90 = arith.constant 0.000000e+00 : f32
    %655 = vector.broadcast %cst_90 : f32 to vector<1x256xf32>
    %656 = arith.select %84, %654, %655 : vector<1x256xi1>, vector<1x256xf32>
    %657 = vector.broadcast %653 : f32 to vector<1x256xf32>
    %658 = arith.mulf %657, %656 : vector<1x256xf32>
    %659 = arith.addf %652, %658 : vector<1x256xf32>
    %c85 = arith.constant 85 : index
    %660 = memref.load %arg2[%c85] : memref<156xf32, #tpu.memory_space<smem>>
    %661 = vector.extract_strided_slice %55 {offsets = [0, 81], sizes = [1, 256], strides = [1, 1]} : vector<1x358xf32> to vector<1x256xf32>
    %cst_91 = arith.constant 0.000000e+00 : f32
    %662 = vector.broadcast %cst_91 : f32 to vector<1x256xf32>
    %663 = arith.select %80, %661, %662 : vector<1x256xi1>, vector<1x256xf32>
    %664 = vector.broadcast %660 : f32 to vector<1x256xf32>
    %665 = arith.mulf %664, %663 : vector<1x256xf32>
    %666 = arith.addf %659, %665 : vector<1x256xf32>
    %c86 = arith.constant 86 : index
    %667 = memref.load %arg2[%c86] : memref<156xf32, #tpu.memory_space<smem>>
    %668 = vector.extract_strided_slice %55 {offsets = [0, 82], sizes = [1, 256], strides = [1, 1]} : vector<1x358xf32> to vector<1x256xf32>
    %cst_92 = arith.constant 0.000000e+00 : f32
    %669 = vector.broadcast %cst_92 : f32 to vector<1x256xf32>
    %670 = arith.select %76, %668, %669 : vector<1x256xi1>, vector<1x256xf32>
    %671 = vector.broadcast %667 : f32 to vector<1x256xf32>
    %672 = arith.mulf %671, %670 : vector<1x256xf32>
    %673 = arith.addf %666, %672 : vector<1x256xf32>
    %c87 = arith.constant 87 : index
    %674 = memref.load %arg2[%c87] : memref<156xf32, #tpu.memory_space<smem>>
    %675 = vector.extract_strided_slice %55 {offsets = [0, 83], sizes = [1, 256], strides = [1, 1]} : vector<1x358xf32> to vector<1x256xf32>
    %676 = vector.broadcast %674 : f32 to vector<1x256xf32>
    %677 = arith.mulf %676, %675 : vector<1x256xf32>
    %678 = arith.addf %673, %677 : vector<1x256xf32>
    %c88 = arith.constant 88 : index
    %679 = memref.load %arg2[%c88] : memref<156xf32, #tpu.memory_space<smem>>
    %680 = vector.extract_strided_slice %55 {offsets = [0, 84], sizes = [1, 256], strides = [1, 1]} : vector<1x358xf32> to vector<1x256xf32>
    %cst_93 = arith.constant 0.000000e+00 : f32
    %681 = vector.broadcast %cst_93 : f32 to vector<1x256xf32>
    %682 = arith.select %74, %680, %681 : vector<1x256xi1>, vector<1x256xf32>
    %683 = vector.broadcast %679 : f32 to vector<1x256xf32>
    %684 = arith.mulf %683, %682 : vector<1x256xf32>
    %685 = arith.addf %678, %684 : vector<1x256xf32>
    %c89 = arith.constant 89 : index
    %686 = memref.load %arg2[%c89] : memref<156xf32, #tpu.memory_space<smem>>
    %687 = vector.extract_strided_slice %55 {offsets = [0, 85], sizes = [1, 256], strides = [1, 1]} : vector<1x358xf32> to vector<1x256xf32>
    %cst_94 = arith.constant 0.000000e+00 : f32
    %688 = vector.broadcast %cst_94 : f32 to vector<1x256xf32>
    %689 = arith.select %78, %687, %688 : vector<1x256xi1>, vector<1x256xf32>
    %690 = vector.broadcast %686 : f32 to vector<1x256xf32>
    %691 = arith.mulf %690, %689 : vector<1x256xf32>
    %692 = arith.addf %685, %691 : vector<1x256xf32>
    %c90 = arith.constant 90 : index
    %693 = memref.load %arg2[%c90] : memref<156xf32, #tpu.memory_space<smem>>
    %694 = vector.extract_strided_slice %55 {offsets = [0, 86], sizes = [1, 256], strides = [1, 1]} : vector<1x358xf32> to vector<1x256xf32>
    %cst_95 = arith.constant 0.000000e+00 : f32
    %695 = vector.broadcast %cst_95 : f32 to vector<1x256xf32>
    %696 = arith.select %82, %694, %695 : vector<1x256xi1>, vector<1x256xf32>
    %697 = vector.broadcast %693 : f32 to vector<1x256xf32>
    %698 = arith.mulf %697, %696 : vector<1x256xf32>
    %699 = arith.addf %692, %698 : vector<1x256xf32>
    %c91 = arith.constant 91 : index
    %700 = memref.load %arg2[%c91] : memref<156xf32, #tpu.memory_space<smem>>
    %701 = vector.extract_strided_slice %55 {offsets = [0, 96], sizes = [1, 256], strides = [1, 1]} : vector<1x358xf32> to vector<1x256xf32>
    %cst_96 = arith.constant 0.000000e+00 : f32
    %702 = vector.broadcast %cst_96 : f32 to vector<1x256xf32>
    %703 = arith.select %84, %701, %702 : vector<1x256xi1>, vector<1x256xf32>
    %704 = vector.broadcast %700 : f32 to vector<1x256xf32>
    %705 = arith.mulf %704, %703 : vector<1x256xf32>
    %706 = arith.addf %699, %705 : vector<1x256xf32>
    %c92 = arith.constant 92 : index
    %707 = memref.load %arg2[%c92] : memref<156xf32, #tpu.memory_space<smem>>
    %708 = vector.extract_strided_slice %55 {offsets = [0, 97], sizes = [1, 256], strides = [1, 1]} : vector<1x358xf32> to vector<1x256xf32>
    %cst_97 = arith.constant 0.000000e+00 : f32
    %709 = vector.broadcast %cst_97 : f32 to vector<1x256xf32>
    %710 = arith.select %80, %708, %709 : vector<1x256xi1>, vector<1x256xf32>
    %711 = vector.broadcast %707 : f32 to vector<1x256xf32>
    %712 = arith.mulf %711, %710 : vector<1x256xf32>
    %713 = arith.addf %706, %712 : vector<1x256xf32>
    %c93 = arith.constant 93 : index
    %714 = memref.load %arg2[%c93] : memref<156xf32, #tpu.memory_space<smem>>
    %715 = vector.extract_strided_slice %55 {offsets = [0, 98], sizes = [1, 256], strides = [1, 1]} : vector<1x358xf32> to vector<1x256xf32>
    %cst_98 = arith.constant 0.000000e+00 : f32
    %716 = vector.broadcast %cst_98 : f32 to vector<1x256xf32>
    %717 = arith.select %76, %715, %716 : vector<1x256xi1>, vector<1x256xf32>
    %718 = vector.broadcast %714 : f32 to vector<1x256xf32>
    %719 = arith.mulf %718, %717 : vector<1x256xf32>
    %720 = arith.addf %713, %719 : vector<1x256xf32>
    %c94 = arith.constant 94 : index
    %721 = memref.load %arg2[%c94] : memref<156xf32, #tpu.memory_space<smem>>
    %722 = vector.extract_strided_slice %55 {offsets = [0, 99], sizes = [1, 256], strides = [1, 1]} : vector<1x358xf32> to vector<1x256xf32>
    %723 = vector.broadcast %721 : f32 to vector<1x256xf32>
    %724 = arith.mulf %723, %722 : vector<1x256xf32>
    %725 = arith.addf %720, %724 : vector<1x256xf32>
    %c95 = arith.constant 95 : index
    %726 = memref.load %arg2[%c95] : memref<156xf32, #tpu.memory_space<smem>>
    %727 = vector.extract_strided_slice %55 {offsets = [0, 100], sizes = [1, 256], strides = [1, 1]} : vector<1x358xf32> to vector<1x256xf32>
    %cst_99 = arith.constant 0.000000e+00 : f32
    %728 = vector.broadcast %cst_99 : f32 to vector<1x256xf32>
    %729 = arith.select %74, %727, %728 : vector<1x256xi1>, vector<1x256xf32>
    %730 = vector.broadcast %726 : f32 to vector<1x256xf32>
    %731 = arith.mulf %730, %729 : vector<1x256xf32>
    %732 = arith.addf %725, %731 : vector<1x256xf32>
    %c96 = arith.constant 96 : index
    %733 = memref.load %arg2[%c96] : memref<156xf32, #tpu.memory_space<smem>>
    %734 = vector.extract_strided_slice %55 {offsets = [0, 101], sizes = [1, 256], strides = [1, 1]} : vector<1x358xf32> to vector<1x256xf32>
    %cst_100 = arith.constant 0.000000e+00 : f32
    %735 = vector.broadcast %cst_100 : f32 to vector<1x256xf32>
    %736 = arith.select %78, %734, %735 : vector<1x256xi1>, vector<1x256xf32>
    %737 = vector.broadcast %733 : f32 to vector<1x256xf32>
    %738 = arith.mulf %737, %736 : vector<1x256xf32>
    %739 = arith.addf %732, %738 : vector<1x256xf32>
    %c97 = arith.constant 97 : index
    %740 = memref.load %arg2[%c97] : memref<156xf32, #tpu.memory_space<smem>>
    %741 = vector.extract_strided_slice %55 {offsets = [0, 102], sizes = [1, 256], strides = [1, 1]} : vector<1x358xf32> to vector<1x256xf32>
    %cst_101 = arith.constant 0.000000e+00 : f32
    %742 = vector.broadcast %cst_101 : f32 to vector<1x256xf32>
    %743 = arith.select %82, %741, %742 : vector<1x256xi1>, vector<1x256xf32>
    %744 = vector.broadcast %740 : f32 to vector<1x256xf32>
    %745 = arith.mulf %744, %743 : vector<1x256xf32>
    %746 = arith.addf %739, %745 : vector<1x256xf32>
    %cst_102 = arith.constant 0.000000e+00 : f32
    %747 = vector.broadcast %cst_102 : f32 to vector<1x256xf32>
    %c144 = arith.constant 144 : index
    %748 = memref.load %arg2[%c144] : memref<156xf32, #tpu.memory_space<smem>>
    %749 = vector.broadcast %748 : f32 to vector<1x256xf32>
    %750 = arith.addf %747, %749 : vector<1x256xf32>
    %c98 = arith.constant 98 : index
    %751 = memref.load %arg2[%c98] : memref<156xf32, #tpu.memory_space<smem>>
    %752 = vector.extract_strided_slice %53 {offsets = [0, 50], sizes = [1, 256], strides = [1, 1]} : vector<1x358xf32> to vector<1x256xf32>
    %cst_103 = arith.constant 0.000000e+00 : f32
    %753 = vector.broadcast %cst_103 : f32 to vector<1x256xf32>
    %754 = arith.select %76, %752, %753 : vector<1x256xi1>, vector<1x256xf32>
    %755 = vector.broadcast %751 : f32 to vector<1x256xf32>
    %756 = arith.mulf %755, %754 : vector<1x256xf32>
    %757 = arith.addf %750, %756 : vector<1x256xf32>
    %c99 = arith.constant 99 : index
    %758 = memref.load %arg2[%c99] : memref<156xf32, #tpu.memory_space<smem>>
    %759 = vector.extract_strided_slice %53 {offsets = [0, 51], sizes = [1, 256], strides = [1, 1]} : vector<1x358xf32> to vector<1x256xf32>
    %760 = vector.broadcast %758 : f32 to vector<1x256xf32>
    %761 = arith.mulf %760, %759 : vector<1x256xf32>
    %762 = arith.addf %757, %761 : vector<1x256xf32>
    %c100 = arith.constant 100 : index
    %763 = memref.load %arg2[%c100] : memref<156xf32, #tpu.memory_space<smem>>
    %764 = vector.extract_strided_slice %53 {offsets = [0, 52], sizes = [1, 256], strides = [1, 1]} : vector<1x358xf32> to vector<1x256xf32>
    %cst_104 = arith.constant 0.000000e+00 : f32
    %765 = vector.broadcast %cst_104 : f32 to vector<1x256xf32>
    %766 = arith.select %74, %764, %765 : vector<1x256xi1>, vector<1x256xf32>
    %767 = vector.broadcast %763 : f32 to vector<1x256xf32>
    %768 = arith.mulf %767, %766 : vector<1x256xf32>
    %769 = arith.addf %762, %768 : vector<1x256xf32>
    %c101 = arith.constant 101 : index
    %770 = memref.load %arg2[%c101] : memref<156xf32, #tpu.memory_space<smem>>
    %771 = vector.extract_strided_slice %55 {offsets = [0, 50], sizes = [1, 256], strides = [1, 1]} : vector<1x358xf32> to vector<1x256xf32>
    %cst_105 = arith.constant 0.000000e+00 : f32
    %772 = vector.broadcast %cst_105 : f32 to vector<1x256xf32>
    %773 = arith.select %76, %771, %772 : vector<1x256xi1>, vector<1x256xf32>
    %774 = vector.broadcast %770 : f32 to vector<1x256xf32>
    %775 = arith.mulf %774, %773 : vector<1x256xf32>
    %776 = arith.addf %769, %775 : vector<1x256xf32>
    %c102 = arith.constant 102 : index
    %777 = memref.load %arg2[%c102] : memref<156xf32, #tpu.memory_space<smem>>
    %778 = vector.extract_strided_slice %55 {offsets = [0, 51], sizes = [1, 256], strides = [1, 1]} : vector<1x358xf32> to vector<1x256xf32>
    %779 = vector.broadcast %777 : f32 to vector<1x256xf32>
    %780 = arith.mulf %779, %778 : vector<1x256xf32>
    %781 = arith.addf %776, %780 : vector<1x256xf32>
    %c103 = arith.constant 103 : index
    %782 = memref.load %arg2[%c103] : memref<156xf32, #tpu.memory_space<smem>>
    %783 = vector.extract_strided_slice %55 {offsets = [0, 52], sizes = [1, 256], strides = [1, 1]} : vector<1x358xf32> to vector<1x256xf32>
    %cst_106 = arith.constant 0.000000e+00 : f32
    %784 = vector.broadcast %cst_106 : f32 to vector<1x256xf32>
    %785 = arith.select %74, %783, %784 : vector<1x256xi1>, vector<1x256xf32>
    %786 = vector.broadcast %782 : f32 to vector<1x256xf32>
    %787 = arith.mulf %786, %785 : vector<1x256xf32>
    %788 = arith.addf %781, %787 : vector<1x256xf32>
    %cst_107 = arith.constant 0.000000e+00 : f32
    %789 = vector.broadcast %cst_107 : f32 to vector<1x256xf32>
    %790 = arith.maximumf %788, %789 : vector<1x256xf32>
    %cst_108 = arith.constant 0.000000e+00 : f32
    %791 = vector.broadcast %cst_108 : f32 to vector<1x16xf32>
    %792 = tpu.concatenate %791, %790, %791 in 1 : vector<1x16xf32>, vector<1x256xf32>, vector<1x16xf32> -> vector<1x288xf32>
    %cst_109 = arith.constant 0.000000e+00 : f32
    %793 = vector.broadcast %cst_109 : f32 to vector<1x256xf32>
    %c145 = arith.constant 145 : index
    %794 = memref.load %arg2[%c145] : memref<156xf32, #tpu.memory_space<smem>>
    %795 = vector.broadcast %794 : f32 to vector<1x256xf32>
    %796 = arith.addf %793, %795 : vector<1x256xf32>
    %c104 = arith.constant 104 : index
    %797 = memref.load %arg2[%c104] : memref<156xf32, #tpu.memory_space<smem>>
    %798 = vector.extract_strided_slice %792 {offsets = [0, 0], sizes = [1, 256], strides = [1, 1]} : vector<1x288xf32> to vector<1x256xf32>
    %799 = vector.broadcast %797 : f32 to vector<1x256xf32>
    %800 = arith.mulf %799, %798 : vector<1x256xf32>
    %801 = arith.addf %796, %800 : vector<1x256xf32>
    %c105 = arith.constant 105 : index
    %802 = memref.load %arg2[%c105] : memref<156xf32, #tpu.memory_space<smem>>
    %803 = vector.extract_strided_slice %792 {offsets = [0, 16], sizes = [1, 256], strides = [1, 1]} : vector<1x288xf32> to vector<1x256xf32>
    %804 = vector.broadcast %802 : f32 to vector<1x256xf32>
    %805 = arith.mulf %804, %803 : vector<1x256xf32>
    %806 = arith.addf %801, %805 : vector<1x256xf32>
    %c106 = arith.constant 106 : index
    %807 = memref.load %arg2[%c106] : memref<156xf32, #tpu.memory_space<smem>>
    %808 = vector.extract_strided_slice %792 {offsets = [0, 32], sizes = [1, 256], strides = [1, 1]} : vector<1x288xf32> to vector<1x256xf32>
    %809 = vector.broadcast %807 : f32 to vector<1x256xf32>
    %810 = arith.mulf %809, %808 : vector<1x256xf32>
    %811 = arith.addf %806, %810 : vector<1x256xf32>
    %cst_110 = arith.constant 0.000000e+00 : f32
    %812 = vector.broadcast %cst_110 : f32 to vector<1x256xf32>
    %813 = arith.maximumf %811, %812 : vector<1x256xf32>
    %814 = arith.addf %746, %813 : vector<1x256xf32>
    %cst_111 = arith.constant 0.000000e+00 : f32
    %815 = vector.broadcast %cst_111 : f32 to vector<1x256xf32>
    %c146 = arith.constant 146 : index
    %816 = memref.load %arg2[%c146] : memref<156xf32, #tpu.memory_space<smem>>
    %817 = vector.broadcast %816 : f32 to vector<1x256xf32>
    %818 = arith.addf %815, %817 : vector<1x256xf32>
    %c107 = arith.constant 107 : index
    %819 = memref.load %arg2[%c107] : memref<156xf32, #tpu.memory_space<smem>>
    %820 = vector.extract_strided_slice %53 {offsets = [0, 49], sizes = [1, 256], strides = [1, 1]} : vector<1x358xf32> to vector<1x256xf32>
    %cst_112 = arith.constant 0.000000e+00 : f32
    %821 = vector.broadcast %cst_112 : f32 to vector<1x256xf32>
    %822 = arith.select %80, %820, %821 : vector<1x256xi1>, vector<1x256xf32>
    %823 = vector.broadcast %819 : f32 to vector<1x256xf32>
    %824 = arith.mulf %823, %822 : vector<1x256xf32>
    %825 = arith.addf %818, %824 : vector<1x256xf32>
    %c108 = arith.constant 108 : index
    %826 = memref.load %arg2[%c108] : memref<156xf32, #tpu.memory_space<smem>>
    %827 = vector.extract_strided_slice %53 {offsets = [0, 50], sizes = [1, 256], strides = [1, 1]} : vector<1x358xf32> to vector<1x256xf32>
    %cst_113 = arith.constant 0.000000e+00 : f32
    %828 = vector.broadcast %cst_113 : f32 to vector<1x256xf32>
    %829 = arith.select %76, %827, %828 : vector<1x256xi1>, vector<1x256xf32>
    %830 = vector.broadcast %826 : f32 to vector<1x256xf32>
    %831 = arith.mulf %830, %829 : vector<1x256xf32>
    %832 = arith.addf %825, %831 : vector<1x256xf32>
    %c109 = arith.constant 109 : index
    %833 = memref.load %arg2[%c109] : memref<156xf32, #tpu.memory_space<smem>>
    %834 = vector.extract_strided_slice %53 {offsets = [0, 51], sizes = [1, 256], strides = [1, 1]} : vector<1x358xf32> to vector<1x256xf32>
    %835 = vector.broadcast %833 : f32 to vector<1x256xf32>
    %836 = arith.mulf %835, %834 : vector<1x256xf32>
    %837 = arith.addf %832, %836 : vector<1x256xf32>
    %c110 = arith.constant 110 : index
    %838 = memref.load %arg2[%c110] : memref<156xf32, #tpu.memory_space<smem>>
    %839 = vector.extract_strided_slice %53 {offsets = [0, 52], sizes = [1, 256], strides = [1, 1]} : vector<1x358xf32> to vector<1x256xf32>
    %cst_114 = arith.constant 0.000000e+00 : f32
    %840 = vector.broadcast %cst_114 : f32 to vector<1x256xf32>
    %841 = arith.select %74, %839, %840 : vector<1x256xi1>, vector<1x256xf32>
    %842 = vector.broadcast %838 : f32 to vector<1x256xf32>
    %843 = arith.mulf %842, %841 : vector<1x256xf32>
    %844 = arith.addf %837, %843 : vector<1x256xf32>
    %c111 = arith.constant 111 : index
    %845 = memref.load %arg2[%c111] : memref<156xf32, #tpu.memory_space<smem>>
    %846 = vector.extract_strided_slice %53 {offsets = [0, 53], sizes = [1, 256], strides = [1, 1]} : vector<1x358xf32> to vector<1x256xf32>
    %cst_115 = arith.constant 0.000000e+00 : f32
    %847 = vector.broadcast %cst_115 : f32 to vector<1x256xf32>
    %848 = arith.select %78, %846, %847 : vector<1x256xi1>, vector<1x256xf32>
    %849 = vector.broadcast %845 : f32 to vector<1x256xf32>
    %850 = arith.mulf %849, %848 : vector<1x256xf32>
    %851 = arith.addf %844, %850 : vector<1x256xf32>
    %c112 = arith.constant 112 : index
    %852 = memref.load %arg2[%c112] : memref<156xf32, #tpu.memory_space<smem>>
    %853 = vector.extract_strided_slice %55 {offsets = [0, 49], sizes = [1, 256], strides = [1, 1]} : vector<1x358xf32> to vector<1x256xf32>
    %cst_116 = arith.constant 0.000000e+00 : f32
    %854 = vector.broadcast %cst_116 : f32 to vector<1x256xf32>
    %855 = arith.select %80, %853, %854 : vector<1x256xi1>, vector<1x256xf32>
    %856 = vector.broadcast %852 : f32 to vector<1x256xf32>
    %857 = arith.mulf %856, %855 : vector<1x256xf32>
    %858 = arith.addf %851, %857 : vector<1x256xf32>
    %c113 = arith.constant 113 : index
    %859 = memref.load %arg2[%c113] : memref<156xf32, #tpu.memory_space<smem>>
    %860 = vector.extract_strided_slice %55 {offsets = [0, 50], sizes = [1, 256], strides = [1, 1]} : vector<1x358xf32> to vector<1x256xf32>
    %cst_117 = arith.constant 0.000000e+00 : f32
    %861 = vector.broadcast %cst_117 : f32 to vector<1x256xf32>
    %862 = arith.select %76, %860, %861 : vector<1x256xi1>, vector<1x256xf32>
    %863 = vector.broadcast %859 : f32 to vector<1x256xf32>
    %864 = arith.mulf %863, %862 : vector<1x256xf32>
    %865 = arith.addf %858, %864 : vector<1x256xf32>
    %c114 = arith.constant 114 : index
    %866 = memref.load %arg2[%c114] : memref<156xf32, #tpu.memory_space<smem>>
    %867 = vector.extract_strided_slice %55 {offsets = [0, 51], sizes = [1, 256], strides = [1, 1]} : vector<1x358xf32> to vector<1x256xf32>
    %868 = vector.broadcast %866 : f32 to vector<1x256xf32>
    %869 = arith.mulf %868, %867 : vector<1x256xf32>
    %870 = arith.addf %865, %869 : vector<1x256xf32>
    %c115 = arith.constant 115 : index
    %871 = memref.load %arg2[%c115] : memref<156xf32, #tpu.memory_space<smem>>
    %872 = vector.extract_strided_slice %55 {offsets = [0, 52], sizes = [1, 256], strides = [1, 1]} : vector<1x358xf32> to vector<1x256xf32>
    %cst_118 = arith.constant 0.000000e+00 : f32
    %873 = vector.broadcast %cst_118 : f32 to vector<1x256xf32>
    %874 = arith.select %74, %872, %873 : vector<1x256xi1>, vector<1x256xf32>
    %875 = vector.broadcast %871 : f32 to vector<1x256xf32>
    %876 = arith.mulf %875, %874 : vector<1x256xf32>
    %877 = arith.addf %870, %876 : vector<1x256xf32>
    %c116 = arith.constant 116 : index
    %878 = memref.load %arg2[%c116] : memref<156xf32, #tpu.memory_space<smem>>
    %879 = vector.extract_strided_slice %55 {offsets = [0, 53], sizes = [1, 256], strides = [1, 1]} : vector<1x358xf32> to vector<1x256xf32>
    %cst_119 = arith.constant 0.000000e+00 : f32
    %880 = vector.broadcast %cst_119 : f32 to vector<1x256xf32>
    %881 = arith.select %78, %879, %880 : vector<1x256xi1>, vector<1x256xf32>
    %882 = vector.broadcast %878 : f32 to vector<1x256xf32>
    %883 = arith.mulf %882, %881 : vector<1x256xf32>
    %884 = arith.addf %877, %883 : vector<1x256xf32>
    %cst_120 = arith.constant 0.000000e+00 : f32
    %885 = vector.broadcast %cst_120 : f32 to vector<1x256xf32>
    %886 = arith.maximumf %884, %885 : vector<1x256xf32>
    %cst_121 = arith.constant 0.000000e+00 : f32
    %887 = vector.broadcast %cst_121 : f32 to vector<1x32xf32>
    %888 = tpu.concatenate %887, %886, %887 in 1 : vector<1x32xf32>, vector<1x256xf32>, vector<1x32xf32> -> vector<1x320xf32>
    %cst_122 = arith.constant 0.000000e+00 : f32
    %889 = vector.broadcast %cst_122 : f32 to vector<1x256xf32>
    %c147 = arith.constant 147 : index
    %890 = memref.load %arg2[%c147] : memref<156xf32, #tpu.memory_space<smem>>
    %891 = vector.broadcast %890 : f32 to vector<1x256xf32>
    %892 = arith.addf %889, %891 : vector<1x256xf32>
    %c117 = arith.constant 117 : index
    %893 = memref.load %arg2[%c117] : memref<156xf32, #tpu.memory_space<smem>>
    %894 = vector.extract_strided_slice %888 {offsets = [0, 0], sizes = [1, 256], strides = [1, 1]} : vector<1x320xf32> to vector<1x256xf32>
    %895 = vector.broadcast %893 : f32 to vector<1x256xf32>
    %896 = arith.mulf %895, %894 : vector<1x256xf32>
    %897 = arith.addf %892, %896 : vector<1x256xf32>
    %c118 = arith.constant 118 : index
    %898 = memref.load %arg2[%c118] : memref<156xf32, #tpu.memory_space<smem>>
    %899 = vector.extract_strided_slice %888 {offsets = [0, 16], sizes = [1, 256], strides = [1, 1]} : vector<1x320xf32> to vector<1x256xf32>
    %900 = vector.broadcast %898 : f32 to vector<1x256xf32>
    %901 = arith.mulf %900, %899 : vector<1x256xf32>
    %902 = arith.addf %897, %901 : vector<1x256xf32>
    %c119 = arith.constant 119 : index
    %903 = memref.load %arg2[%c119] : memref<156xf32, #tpu.memory_space<smem>>
    %904 = vector.extract_strided_slice %888 {offsets = [0, 32], sizes = [1, 256], strides = [1, 1]} : vector<1x320xf32> to vector<1x256xf32>
    %905 = vector.broadcast %903 : f32 to vector<1x256xf32>
    %906 = arith.mulf %905, %904 : vector<1x256xf32>
    %907 = arith.addf %902, %906 : vector<1x256xf32>
    %c120 = arith.constant 120 : index
    %908 = memref.load %arg2[%c120] : memref<156xf32, #tpu.memory_space<smem>>
    %909 = vector.extract_strided_slice %888 {offsets = [0, 48], sizes = [1, 256], strides = [1, 1]} : vector<1x320xf32> to vector<1x256xf32>
    %910 = vector.broadcast %908 : f32 to vector<1x256xf32>
    %911 = arith.mulf %910, %909 : vector<1x256xf32>
    %912 = arith.addf %907, %911 : vector<1x256xf32>
    %c121 = arith.constant 121 : index
    %913 = memref.load %arg2[%c121] : memref<156xf32, #tpu.memory_space<smem>>
    %914 = vector.extract_strided_slice %888 {offsets = [0, 64], sizes = [1, 256], strides = [1, 1]} : vector<1x320xf32> to vector<1x256xf32>
    %915 = vector.broadcast %913 : f32 to vector<1x256xf32>
    %916 = arith.mulf %915, %914 : vector<1x256xf32>
    %917 = arith.addf %912, %916 : vector<1x256xf32>
    %cst_123 = arith.constant 0.000000e+00 : f32
    %918 = vector.broadcast %cst_123 : f32 to vector<1x256xf32>
    %919 = arith.maximumf %917, %918 : vector<1x256xf32>
    %920 = arith.addf %814, %919 : vector<1x256xf32>
    %cst_124 = arith.constant 0.000000e+00 : f32
    %921 = vector.broadcast %cst_124 : f32 to vector<1x256xf32>
    %c148 = arith.constant 148 : index
    %922 = memref.load %arg2[%c148] : memref<156xf32, #tpu.memory_space<smem>>
    %923 = vector.broadcast %922 : f32 to vector<1x256xf32>
    %924 = arith.addf %921, %923 : vector<1x256xf32>
    %c122 = arith.constant 122 : index
    %925 = memref.load %arg2[%c122] : memref<156xf32, #tpu.memory_space<smem>>
    %926 = vector.extract_strided_slice %53 {offsets = [0, 48], sizes = [1, 256], strides = [1, 1]} : vector<1x358xf32> to vector<1x256xf32>
    %cst_125 = arith.constant 0.000000e+00 : f32
    %927 = vector.broadcast %cst_125 : f32 to vector<1x256xf32>
    %928 = arith.select %84, %926, %927 : vector<1x256xi1>, vector<1x256xf32>
    %929 = vector.broadcast %925 : f32 to vector<1x256xf32>
    %930 = arith.mulf %929, %928 : vector<1x256xf32>
    %931 = arith.addf %924, %930 : vector<1x256xf32>
    %c123 = arith.constant 123 : index
    %932 = memref.load %arg2[%c123] : memref<156xf32, #tpu.memory_space<smem>>
    %933 = vector.extract_strided_slice %53 {offsets = [0, 49], sizes = [1, 256], strides = [1, 1]} : vector<1x358xf32> to vector<1x256xf32>
    %cst_126 = arith.constant 0.000000e+00 : f32
    %934 = vector.broadcast %cst_126 : f32 to vector<1x256xf32>
    %935 = arith.select %80, %933, %934 : vector<1x256xi1>, vector<1x256xf32>
    %936 = vector.broadcast %932 : f32 to vector<1x256xf32>
    %937 = arith.mulf %936, %935 : vector<1x256xf32>
    %938 = arith.addf %931, %937 : vector<1x256xf32>
    %c124 = arith.constant 124 : index
    %939 = memref.load %arg2[%c124] : memref<156xf32, #tpu.memory_space<smem>>
    %940 = vector.extract_strided_slice %53 {offsets = [0, 50], sizes = [1, 256], strides = [1, 1]} : vector<1x358xf32> to vector<1x256xf32>
    %cst_127 = arith.constant 0.000000e+00 : f32
    %941 = vector.broadcast %cst_127 : f32 to vector<1x256xf32>
    %942 = arith.select %76, %940, %941 : vector<1x256xi1>, vector<1x256xf32>
    %943 = vector.broadcast %939 : f32 to vector<1x256xf32>
    %944 = arith.mulf %943, %942 : vector<1x256xf32>
    %945 = arith.addf %938, %944 : vector<1x256xf32>
    %c125 = arith.constant 125 : index
    %946 = memref.load %arg2[%c125] : memref<156xf32, #tpu.memory_space<smem>>
    %947 = vector.extract_strided_slice %53 {offsets = [0, 51], sizes = [1, 256], strides = [1, 1]} : vector<1x358xf32> to vector<1x256xf32>
    %948 = vector.broadcast %946 : f32 to vector<1x256xf32>
    %949 = arith.mulf %948, %947 : vector<1x256xf32>
    %950 = arith.addf %945, %949 : vector<1x256xf32>
    %c126 = arith.constant 126 : index
    %951 = memref.load %arg2[%c126] : memref<156xf32, #tpu.memory_space<smem>>
    %952 = vector.extract_strided_slice %53 {offsets = [0, 52], sizes = [1, 256], strides = [1, 1]} : vector<1x358xf32> to vector<1x256xf32>
    %cst_128 = arith.constant 0.000000e+00 : f32
    %953 = vector.broadcast %cst_128 : f32 to vector<1x256xf32>
    %954 = arith.select %74, %952, %953 : vector<1x256xi1>, vector<1x256xf32>
    %955 = vector.broadcast %951 : f32 to vector<1x256xf32>
    %956 = arith.mulf %955, %954 : vector<1x256xf32>
    %957 = arith.addf %950, %956 : vector<1x256xf32>
    %c127 = arith.constant 127 : index
    %958 = memref.load %arg2[%c127] : memref<156xf32, #tpu.memory_space<smem>>
    %959 = vector.extract_strided_slice %53 {offsets = [0, 53], sizes = [1, 256], strides = [1, 1]} : vector<1x358xf32> to vector<1x256xf32>
    %cst_129 = arith.constant 0.000000e+00 : f32
    %960 = vector.broadcast %cst_129 : f32 to vector<1x256xf32>
    %961 = arith.select %78, %959, %960 : vector<1x256xi1>, vector<1x256xf32>
    %962 = vector.broadcast %958 : f32 to vector<1x256xf32>
    %963 = arith.mulf %962, %961 : vector<1x256xf32>
    %964 = arith.addf %957, %963 : vector<1x256xf32>
    %c128 = arith.constant 128 : index
    %965 = memref.load %arg2[%c128] : memref<156xf32, #tpu.memory_space<smem>>
    %966 = vector.extract_strided_slice %53 {offsets = [0, 54], sizes = [1, 256], strides = [1, 1]} : vector<1x358xf32> to vector<1x256xf32>
    %cst_130 = arith.constant 0.000000e+00 : f32
    %967 = vector.broadcast %cst_130 : f32 to vector<1x256xf32>
    %968 = arith.select %82, %966, %967 : vector<1x256xi1>, vector<1x256xf32>
    %969 = vector.broadcast %965 : f32 to vector<1x256xf32>
    %970 = arith.mulf %969, %968 : vector<1x256xf32>
    %971 = arith.addf %964, %970 : vector<1x256xf32>
    %c129 = arith.constant 129 : index
    %972 = memref.load %arg2[%c129] : memref<156xf32, #tpu.memory_space<smem>>
    %973 = vector.extract_strided_slice %55 {offsets = [0, 48], sizes = [1, 256], strides = [1, 1]} : vector<1x358xf32> to vector<1x256xf32>
    %cst_131 = arith.constant 0.000000e+00 : f32
    %974 = vector.broadcast %cst_131 : f32 to vector<1x256xf32>
    %975 = arith.select %84, %973, %974 : vector<1x256xi1>, vector<1x256xf32>
    %976 = vector.broadcast %972 : f32 to vector<1x256xf32>
    %977 = arith.mulf %976, %975 : vector<1x256xf32>
    %978 = arith.addf %971, %977 : vector<1x256xf32>
    %c130 = arith.constant 130 : index
    %979 = memref.load %arg2[%c130] : memref<156xf32, #tpu.memory_space<smem>>
    %980 = vector.extract_strided_slice %55 {offsets = [0, 49], sizes = [1, 256], strides = [1, 1]} : vector<1x358xf32> to vector<1x256xf32>
    %cst_132 = arith.constant 0.000000e+00 : f32
    %981 = vector.broadcast %cst_132 : f32 to vector<1x256xf32>
    %982 = arith.select %80, %980, %981 : vector<1x256xi1>, vector<1x256xf32>
    %983 = vector.broadcast %979 : f32 to vector<1x256xf32>
    %984 = arith.mulf %983, %982 : vector<1x256xf32>
    %985 = arith.addf %978, %984 : vector<1x256xf32>
    %c131 = arith.constant 131 : index
    %986 = memref.load %arg2[%c131] : memref<156xf32, #tpu.memory_space<smem>>
    %987 = vector.extract_strided_slice %55 {offsets = [0, 50], sizes = [1, 256], strides = [1, 1]} : vector<1x358xf32> to vector<1x256xf32>
    %cst_133 = arith.constant 0.000000e+00 : f32
    %988 = vector.broadcast %cst_133 : f32 to vector<1x256xf32>
    %989 = arith.select %76, %987, %988 : vector<1x256xi1>, vector<1x256xf32>
    %990 = vector.broadcast %986 : f32 to vector<1x256xf32>
    %991 = arith.mulf %990, %989 : vector<1x256xf32>
    %992 = arith.addf %985, %991 : vector<1x256xf32>
    %c132 = arith.constant 132 : index
    %993 = memref.load %arg2[%c132] : memref<156xf32, #tpu.memory_space<smem>>
    %994 = vector.extract_strided_slice %55 {offsets = [0, 51], sizes = [1, 256], strides = [1, 1]} : vector<1x358xf32> to vector<1x256xf32>
    %995 = vector.broadcast %993 : f32 to vector<1x256xf32>
    %996 = arith.mulf %995, %994 : vector<1x256xf32>
    %997 = arith.addf %992, %996 : vector<1x256xf32>
    %c133 = arith.constant 133 : index
    %998 = memref.load %arg2[%c133] : memref<156xf32, #tpu.memory_space<smem>>
    %999 = vector.extract_strided_slice %55 {offsets = [0, 52], sizes = [1, 256], strides = [1, 1]} : vector<1x358xf32> to vector<1x256xf32>
    %cst_134 = arith.constant 0.000000e+00 : f32
    %1000 = vector.broadcast %cst_134 : f32 to vector<1x256xf32>
    %1001 = arith.select %74, %999, %1000 : vector<1x256xi1>, vector<1x256xf32>
    %1002 = vector.broadcast %998 : f32 to vector<1x256xf32>
    %1003 = arith.mulf %1002, %1001 : vector<1x256xf32>
    %1004 = arith.addf %997, %1003 : vector<1x256xf32>
    %c134 = arith.constant 134 : index
    %1005 = memref.load %arg2[%c134] : memref<156xf32, #tpu.memory_space<smem>>
    %1006 = vector.extract_strided_slice %55 {offsets = [0, 53], sizes = [1, 256], strides = [1, 1]} : vector<1x358xf32> to vector<1x256xf32>
    %cst_135 = arith.constant 0.000000e+00 : f32
    %1007 = vector.broadcast %cst_135 : f32 to vector<1x256xf32>
    %1008 = arith.select %78, %1006, %1007 : vector<1x256xi1>, vector<1x256xf32>
    %1009 = vector.broadcast %1005 : f32 to vector<1x256xf32>
    %1010 = arith.mulf %1009, %1008 : vector<1x256xf32>
    %1011 = arith.addf %1004, %1010 : vector<1x256xf32>
    %c135 = arith.constant 135 : index
    %1012 = memref.load %arg2[%c135] : memref<156xf32, #tpu.memory_space<smem>>
    %1013 = vector.extract_strided_slice %55 {offsets = [0, 54], sizes = [1, 256], strides = [1, 1]} : vector<1x358xf32> to vector<1x256xf32>
    %cst_136 = arith.constant 0.000000e+00 : f32
    %1014 = vector.broadcast %cst_136 : f32 to vector<1x256xf32>
    %1015 = arith.select %82, %1013, %1014 : vector<1x256xi1>, vector<1x256xf32>
    %1016 = vector.broadcast %1012 : f32 to vector<1x256xf32>
    %1017 = arith.mulf %1016, %1015 : vector<1x256xf32>
    %1018 = arith.addf %1011, %1017 : vector<1x256xf32>
    %cst_137 = arith.constant 0.000000e+00 : f32
    %1019 = vector.broadcast %cst_137 : f32 to vector<1x256xf32>
    %1020 = arith.maximumf %1018, %1019 : vector<1x256xf32>
    %cst_138 = arith.constant 0.000000e+00 : f32
    %1021 = vector.broadcast %cst_138 : f32 to vector<1x48xf32>
    %1022 = tpu.concatenate %1021, %1020, %1021 in 1 : vector<1x48xf32>, vector<1x256xf32>, vector<1x48xf32> -> vector<1x352xf32>
    %cst_139 = arith.constant 0.000000e+00 : f32
    %1023 = vector.broadcast %cst_139 : f32 to vector<1x256xf32>
    %c149 = arith.constant 149 : index
    %1024 = memref.load %arg2[%c149] : memref<156xf32, #tpu.memory_space<smem>>
    %1025 = vector.broadcast %1024 : f32 to vector<1x256xf32>
    %1026 = arith.addf %1023, %1025 : vector<1x256xf32>
    %c136 = arith.constant 136 : index
    %1027 = memref.load %arg2[%c136] : memref<156xf32, #tpu.memory_space<smem>>
    %1028 = vector.extract_strided_slice %1022 {offsets = [0, 0], sizes = [1, 256], strides = [1, 1]} : vector<1x352xf32> to vector<1x256xf32>
    %1029 = vector.broadcast %1027 : f32 to vector<1x256xf32>
    %1030 = arith.mulf %1029, %1028 : vector<1x256xf32>
    %1031 = arith.addf %1026, %1030 : vector<1x256xf32>
    %c137 = arith.constant 137 : index
    %1032 = memref.load %arg2[%c137] : memref<156xf32, #tpu.memory_space<smem>>
    %1033 = vector.extract_strided_slice %1022 {offsets = [0, 16], sizes = [1, 256], strides = [1, 1]} : vector<1x352xf32> to vector<1x256xf32>
    %1034 = vector.broadcast %1032 : f32 to vector<1x256xf32>
    %1035 = arith.mulf %1034, %1033 : vector<1x256xf32>
    %1036 = arith.addf %1031, %1035 : vector<1x256xf32>
    %c138 = arith.constant 138 : index
    %1037 = memref.load %arg2[%c138] : memref<156xf32, #tpu.memory_space<smem>>
    %1038 = vector.extract_strided_slice %1022 {offsets = [0, 32], sizes = [1, 256], strides = [1, 1]} : vector<1x352xf32> to vector<1x256xf32>
    %1039 = vector.broadcast %1037 : f32 to vector<1x256xf32>
    %1040 = arith.mulf %1039, %1038 : vector<1x256xf32>
    %1041 = arith.addf %1036, %1040 : vector<1x256xf32>
    %c139 = arith.constant 139 : index
    %1042 = memref.load %arg2[%c139] : memref<156xf32, #tpu.memory_space<smem>>
    %1043 = vector.extract_strided_slice %1022 {offsets = [0, 48], sizes = [1, 256], strides = [1, 1]} : vector<1x352xf32> to vector<1x256xf32>
    %1044 = vector.broadcast %1042 : f32 to vector<1x256xf32>
    %1045 = arith.mulf %1044, %1043 : vector<1x256xf32>
    %1046 = arith.addf %1041, %1045 : vector<1x256xf32>
    %c140 = arith.constant 140 : index
    %1047 = memref.load %arg2[%c140] : memref<156xf32, #tpu.memory_space<smem>>
    %1048 = vector.extract_strided_slice %1022 {offsets = [0, 64], sizes = [1, 256], strides = [1, 1]} : vector<1x352xf32> to vector<1x256xf32>
    %1049 = vector.broadcast %1047 : f32 to vector<1x256xf32>
    %1050 = arith.mulf %1049, %1048 : vector<1x256xf32>
    %1051 = arith.addf %1046, %1050 : vector<1x256xf32>
    %c141 = arith.constant 141 : index
    %1052 = memref.load %arg2[%c141] : memref<156xf32, #tpu.memory_space<smem>>
    %1053 = vector.extract_strided_slice %1022 {offsets = [0, 80], sizes = [1, 256], strides = [1, 1]} : vector<1x352xf32> to vector<1x256xf32>
    %1054 = vector.broadcast %1052 : f32 to vector<1x256xf32>
    %1055 = arith.mulf %1054, %1053 : vector<1x256xf32>
    %1056 = arith.addf %1051, %1055 : vector<1x256xf32>
    %c142 = arith.constant 142 : index
    %1057 = memref.load %arg2[%c142] : memref<156xf32, #tpu.memory_space<smem>>
    %1058 = vector.extract_strided_slice %1022 {offsets = [0, 96], sizes = [1, 256], strides = [1, 1]} : vector<1x352xf32> to vector<1x256xf32>
    %1059 = vector.broadcast %1057 : f32 to vector<1x256xf32>
    %1060 = arith.mulf %1059, %1058 : vector<1x256xf32>
    %1061 = arith.addf %1056, %1060 : vector<1x256xf32>
    %cst_140 = arith.constant 0.000000e+00 : f32
    %1062 = vector.broadcast %cst_140 : f32 to vector<1x256xf32>
    %1063 = arith.maximumf %1061, %1062 : vector<1x256xf32>
    %1064 = arith.addf %920, %1063 : vector<1x256xf32>
    %1065 = arith.negf %1064 : vector<1x256xf32>
    %1066 = math.exp %1065 : vector<1x256xf32>
    %cst_141 = arith.constant 1.000000e+00 : f32
    %1067 = vector.broadcast %cst_141 : f32 to vector<1x256xf32>
    %1068 = arith.addf %1067, %1066 : vector<1x256xf32>
    %1069 = arith.divf %1067, %1068 : vector<1x256xf32>
    %1070 = vector.shape_cast %1069 : vector<1x256xf32> to vector<1x1x256xf32>
    %1071 = vector.broadcast %1070 : vector<1x1x256xf32> to vector<1x32x256xf32>
    %1072 = arith.mulf %47, %1071 : vector<1x32x256xf32>
    %c0_142 = arith.constant 0 : index
    %c0_143 = arith.constant 0 : index
    %c0_144 = arith.constant 0 : index
    %1073 = vector.load %arg3[%c0_142, %c0_143, %c0_144] : memref<1x32x256xf32, #tpu.memory_space<vmem>>, vector<1x32x256xf32>
    tpu.vector_store %arg3[%c0_142, %c0_143, %c0_144], %1072 {strides = array<i32>} : memref<1x32x256xf32, #tpu.memory_space<vmem>>, vector<1x32x256xf32>,
    return
  }
  func.func @transform_0(%arg0: i32) -> (i32, i32, i32) {
    %c0_i32 = arith.constant 0 : i32
    %c0_i32_0 = arith.constant 0 : i32
    %c0_i32_1 = arith.constant 0 : i32
    return %arg0, %c0_i32, %c0_i32_0 : i32, i32, i32
  }
  func.func @transform_1(%arg0: i32) -> i32 {
    %c0_i32 = arith.constant 0 : i32
    %c0_i32_0 = arith.constant 0 : i32
    return %c0_i32 : i32
  }
  func.func @transform_2(%arg0: i32) -> (i32, i32, i32) {
    %c0_i32 = arith.constant 0 : i32
    %c0_i32_0 = arith.constant 0 : i32
    %c0_i32_1 = arith.constant 0 : i32
    return %arg0, %c0_i32, %c0_i32_0 : i32, i32, i32
  }
}

</mosaic_0001>

<bundles_post_ra>
// kernel: tpu_custom_call.1
= control target key start
LH: loop header
LB: loop body
LE: loop exit
PB: predicated region body
PF: predicated region fallthrough
CT: control target
= control target key end

     0   :  { %s6568_s0 = inlined_call_operand.hbm [shape: f32[2,32,256], index: 0, kind: input, shape index: {}]   ;;  %s6569_s1 = inlined_call_operand.hbm [shape: f32[156], index: 1, kind: input, shape index: {}]   ;;  %s6570_s2 = inlined_call_operand.hbm [shape: f32[2,32,256], index: 2, kind: output, shape index: {}]  }
   0x1   :  { %6762 = sst [smem:[#allocation108_spill]] %s6568_s0 }
   0x2   :  { %7 = vsyncpa [#allocation3], 0 }
   0x3   :  { %9 = vsyncpa [#allocation3 + $0x1], 0 }
   0x4   :  { %10 = vsyncpa [#allocation5], 0 }
   0x5   :  { %11 = vsyncpa [#allocation4], 0 }
   0x6   :  { %13 = vsyncpa [#allocation4 + $0x1], 0  ;;  %s3595_s9 = smov 0   ;;  %s3597_s10 = smov 0  }
   0x7   :  { %s3599_s11 = smov 0   ;;  %s3601_s12 = smov 0  }
   0x8 LB: > { %s3616_s13 = sadd.s32 4294967295, %s3521_s12   ;;  %s3098_s14 = sadd.s32 4294967294, %s3521_s12   ;;  %s3521_s12 = sphi %s3601_s12, %s7238_s12   ;;  %s3517_s11 = sphi %s3599_s11, %s7237_s11   ;;  %s3513_s10 = sphi %s3597_s10, %s7236_s10   ;;  %s3509_s9 = sphi %s3595_s9, %s7235_s9  }
   0x9   : > { %s3620_s15 = sadd.s32 1, %s3521_s12   ;;  %s26_s16 = sadd.s32 1, %s3517_s11 }
   0xa   : > { %s23_s17 = ssub.s32 %s3521_s12, %s3620_s15  ;;  %p33_p0 = scmp.ne.s32.totalorder %s3517_s11, %s3513_s10 }
   0xb   : > { %p24_p1 = scmp.eq.s32.totalorder %s23_s17, 0  ;;  %p34_p2 = scmp.eq.s32.totalorder %s3521_s12, 0 }
   0xc   : > { %p39_p3 = scmp.ne.s32.totalorder %s3513_s10, %s3509_s9  ;;  %p6571_p4 = scmp.eq.s32.totalorder %s3616_s13, 0 }
   0xd   : > { %s3632_s18 = scalar_select %p24_p1, %s3517_s11, %s26_s16  }
   0xe   : > { %p3634_p5 = por %p34_p2, %p33_p0  ;;  %p3640_p6 = por %p6571_p4, %p39_p3 }
   0xf   : > { %p84_p7 = scmp.eq.s32.totalorder %s3616_s13, 1  ;;  %p90_p8 = scmp.eq.s32.totalorder %s3098_s14, 1 }
  0x10   : > { %s6764_s20 = scalar_select %p3640_p6, 1, 0 }
  0x11   : > { %p3099_p9 = scmp.ge.s32.totalorder %s3521_s12, 1  ;;  %p97_p10 = scmp.lt.s32.totalorder %s3521_s12, 3 }
  0x12   : > { %p3647_p11 = por %p84_p7, %p33_p0  ;;  %p3651_p12 = por %p90_p8, %p39_p3 }
  0x13   : > { %p3655_p13 = pnand %p3099_p9, %p97_p10  ;;  %p3298_p4 = scmp.lt.s32.totalorder %s3521_s12, 2 }
  0x14   : > { %s6765_s21 = scalar_select %p3647_p11, 1, 0 }
  0x15   : > { %s6766_s22 = scalar_select %p3651_p12, 1, 0 }
  0x16   : > { %s6767_s23 = scalar_select %p3655_p13, 1, 0 }
  0x17   : > { %p3285_p2 = pneg %p3655_p13  ;;  %s119_s24 = sand.u32 1, %s3517_s11  }
  0x18   : > { %s3275_s25 = sshll.u32 %s3521_s12, 10  ;;  %p6768_p6 = scmp.eq.s32.totalorder %s3616_s13, 0 }
  0x19   : > { %p3669_p7 = pnand %p3298_p4, %p3634_p5  ;;  %s3102_s27 = sshll.u32 %s119_s24, 6 }
  0x1a   : > { %p3286_p0 = pnand %p3285_p2, %p6768_p6  ;;  %s3523_s28 = smov [#allocation6]  }
  0x1b   : > { %s6770_s0 = sld [smem:[#allocation108_spill]]  ;;  %s123_s6 = scalar_lea.vmem [#allocation2], %s3102_s27 }
  0x1c   : > { %3288 = dma.hbm_to_smem (!%p3286_p0), %s6569_s1, 32, %s3523_s28, [#allocation5]  }
  0x1d   : > { %s130_s7 = sshll.u32 %s123_s6, 4  ;;  %s3683_s8 = scalar_lea.sflag [#allocation3], %s119_s24  ;;  %s3681_s7 = int_to_ptr.vmem [resolvable:$true] %s130_s7 }
  0x1e   : > { %p3427_p4 = pneg %p3669_p7 }
  0x21   : > { %s3679_s5 = scalar_lea.hbm %s6770_s0, %s3275_s25  ;;  %s3430_s19 = scalar_lea.hbm %s6770_s0, 2048 }
  0x22   : > { %s3425_s14 = scalar_lea.hbm %s3679_s5, 1024  ;;  %p3431_p8 = scmp.lt.s32.totalorder %s3679_s5, %s6770_s0 }
  0x23   : > { %p3426_p3 = scmp.ne.s32.totalorder %s3679_s5, %s3425_s14  ;;  %p3432_p9 = scmp.lt.s32.totalorder %s3430_s19, %s3425_s14 }
  0x25   : > { %p3428_p5 = pnand %p3427_p4, %p3426_p3  ;;  %p3433_p10 = por %p3432_p9, %p3431_p8 }
  0x27   : > { %p3429_p6 = pneg %p3428_p5 }
  0x29   : > { %p3434_p2 = pnand %p3433_p10, %p3429_p6 }
  0x2b   : > { %3437 = shalt.err (!%p3434_p2)
}
  0x2c   : > { %s3438_s24 = scalar_lea.vmem %s3681_s7, 1024  ;;  %s3524_s27 = smov [#allocation2]  }
  0x2d   : > { %p3439_p0 = scmp.ne.s32.totalorder %s3681_s7, %s3438_s24  ;;  %s3443_s29 = sshll.u32 %s3524_s27, 4  ;;  %s3444_s29 = int_to_ptr.vmem [resolvable:$false] %s3443_s29 }
  0x2e   : > { %s3445_s30 = scalar_lea.vmem %s3444_s29, 2048  ;;  %p3446_p5 = scmp.lt.s32.totalorder %s3681_s7, %s3444_s29 }
  0x2f   : > { %p3441_p1 = pnand %p3439_p0, %p3427_p4  ;;  %p3447_p12 = scmp.lt.s32.totalorder %s3445_s30, %s3438_s24 }
  0x31   : > { %p3442_p3 = pneg %p3441_p1  ;;  %p3448_p11 = por %p3447_p12, %p3446_p5 }
  0x33   : > { %p3449_p13 = pnand %p3448_p11, %p3442_p3 }
  0x35   : > { %3452 = shalt.err (!%p3449_p13)
}
  0x36   : > { %s3525_s3 = smov 256   ;;  %s3526_s4 = smov 16  }
  0x37   : > { %3292 = dma.hbm_to_vmem [thread:$0]  (!%p3669_p7), %s3679_s5, 1024, %s3681_s7, %s3683_s8, %s3525_s3, %s3525_s3, %s3526_s4  }
  0x38   : > { %p6771_p4 = scmp.ne.s32.totalorder %s6767_s23, 0 }
  0x3a   : > { %142 = sbr.rel (%p6771_p4) target bundleno = 1524 (0x5f4), region = 28 }
  0x3f   : > { %s3707_s6 = sand.u32 1, %s3513_s10   ;;  %p6772_p11 = scmp.ne.s32.totalorder %s6764_s20, 0 }
  0x40   : > { %s6575_s14 = sshll.u32 %s3707_s6, 6  ;;  %s145_s16 = scalar_lea.sflag [#allocation3], %s3707_s6 }
  0x41   : > { %s148_s17 = scalar_lea.vmem [#allocation2], %s6575_s14 }
  0x42   : > { %3496 = dma.done.wait (%p6772_p11), %s145_s16, 1024  }
  0x43   : > { %3498 = vsyncadd (%p6772_p11), %s145_s16, 4294966272  ;;  %p6773_p12 = scmp.eq.s32.totalorder %s3616_s13, 0 }
  0x45   : > { %3500 = dma.done.wait (%p6773_p12), [#allocation5], 32   ;;  %p6774_p13 = pmov %p6773_p12 }
  0x47   : > { %3502 = vsyncadd (%p6774_p13), [#allocation5], 4294967264 }
  0x48   : > { %157 = sfence }
  0x49   : > { %v3721_v0 = vld [vmem:[%s148_s17 + $0x20] sm:$0xff]  ;;  %v3723_v1 = vld [vmem:[%s148_s17 + $0x28] sm:$0xff]  ;;  %v3731_v5 = vld [vmem:[%s148_s17 + $0x30] sm:$0xff]  ;;  %v3527_v16 = vmov 0   ;;  %s3111_s20 = sld [smem:[#allocation6 + $0x97]]  ;;  %vm215_vm0 = vcmask 1040384  }
  0x4a   : > { %v3725_v2 = vld [vmem:[%s148_s17] sm:$0xff]  ;;  %v188_v3 = vadd.f32 %v3723_v1, %v3721_v0  ;;  %v3729_v4 = vld [vmem:[%s148_s17 + $0x8] sm:$0xff]  ;;  %v3733_v6 = vld [vmem:[%s148_s17 + $0x38] sm:$0xff]  ;;  %v205_v15 = vmax.f32 %v3721_v0, %v3723_v1  ;;  %3388 = vset.pattern.permute.xlu0 %v3527_v16  ;;  %3389 = vset.pattern.permute.xlu1 %v3527_v16  ;;  %s3113_s23 = sld [smem:[#allocation6 + $0x98]]  ;;  %vm280_vm1 = vcmask 1046528   ;;  %vm339_vm2 = vcmask 1045504  }
  0x4b   : > { %v182_v7 = vadd.f32 %v3729_v4, %v3725_v2  ;;  %v3737_v8 = vld [vmem:[%s148_s17 + $0x10] sm:$0xff]  ;;  %v3739_v9 = vld [vmem:[%s148_s17 + $0x18] sm:$0xff]  ;;  %v191_v10 = vadd.f32 %v3733_v6, %v3731_v5  ;;  %v199_v13 = vmax.f32 %v3725_v2, %v3729_v4  ;;  %v208_v14 = vmax.f32 %v3731_v5, %v3733_v6  ;;  %s3109_s26 = sld [smem:[#allocation6 + $0x96]]  ;;  %s3528_s19 = smov 51  }
  0x4c   : > { %189 = vadd.xlane.f32.xlu1 %v188_v3  ;;  %v185_v11 = vadd.f32 %v3739_v9, %v3737_v8  ;;  %v202_v12 = vmax.f32 %v3737_v8, %v3739_v9  ;;  %s3110_s5 = sld [smem:[#allocation6 + $0x99]]  ;;  %vm483_vm3 = vcmask 416768   ;;  %s3529_s25 = smov 127   ;;  %vm6692_vm7 = vcmask 1039360  }
  0x4d   : > { %183 = vadd.xlane.f32.xlu0 %v182_v7  ;;  %s3112_s7 = sld [smem:[#allocation6 + $0x9a]]  ;;  %s3530_s28 = smov 126   ;;  %vm6693_vm10 = vcmask 1031168   ;;  %vm6698_vm13 = vcmask 1014784   ;;  %vm6700_vm15 = vcmask 1006592  }
  0x4e   : > { %s3114_s8 = sld [smem:[#allocation6 + $0x9b]]  ;;  %s3531_s24 = smov 124  }
  0x4f   : > { %v269_v27 = vstv %s3111_s20  ;;  %s3532_s27 = smov 123   ;;  %s3533_s29 = smov 122  }
  0x50   : > { %192 = vadd.xlane.f32.xlu1 %v191_v10  ;;  %v328_v28 = vstv %s3113_s23  ;;  %s6667_s30 = smov 112   ;;  %s3535_s3 = smov 111  }
  0x51   : > { %186 = vadd.xlane.f32.xlu0 %v185_v11  ;;  %v249_v34 = vstv %s3109_s26  ;;  %s3536_s4 = smov 110   ;;  %s3537_s16 = smov 108  }
  0x52   : > { %v3760_v40 = vstv %s3110_s5  ;;  %s3538_s17 = smov 107   ;;  %s3539_s20 = smov 106  }
  0x53   : > { %v299_v44 = vstv %s3112_s7  ;;  %s3540_s23 = smov 96   ;;  %s6638_s26 = smov 95  }
  0x54   : > { %203 = vmax.xlane.f32.xlu1 %v202_v12  ;;  %v3763_v45 = vstv %s3114_s8  ;;  %s6633_s5 = smov 94   ;;  %s6576_s7 = smov 92  }
  0x55   : > { %200 = vmax.xlane.f32.xlu0 %v199_v13  ;;  %s6578_s8 = smov 91   ;;  %s6580_s14 = smov 80  }
  0x56   : > { %s6872_s0 = smov 95   ;;  %p7232_p7 = scmp.ne.s32.totalorder %s6765_s21, 0 }
  0x58   : > { %209 = vmax.xlane.f32.xlu1 %v208_v14 }
  0x59   : > { %206 = vmax.xlane.f32.xlu0 %v205_v15 }
  0xd5   : > { %v190_v17 = vpop.xlane.xlu1 %189 }
  0xd6   : > { %v197_v18 = vmul.f32 0.00390625, %v190_v17  ;;  %v184_v19 = vpop.xlane.xlu0 %183 }
  0xd7   : > { %v195_v20 = vmul.f32 0.00390625, %v184_v19 }
  0xd8   : > { %v219_v23 = vrot.slane %v197_v18, 7 }
  0xd9   : > { %v216_v21 = vrot.slane %v195_v20, 7  ;;  %v193_v22 = vpop.xlane.xlu1 %192 }
  0xda   : > { %v198_v24 = vmul.f32 0.00390625, %v193_v22  ;;  %v187_v25 = vpop.xlane.xlu0 %186 }
  0xdb   : > { %v196_v26 = vmul.f32 0.00390625, %v187_v25  ;;  %v228_v29 = vsel %vm215_vm0, 0.0, %v216_v21 }
  0xdc   : > { %v221_v30 = vrot.slane %v198_v24, 7  ;;  %v270_v35 = vmul.f32 %v269_v27, %v228_v29  ;;  %v329_v36 = vmul.f32 %v328_v28, %v228_v29  ;;  %v250_v46 = vmul.f32 %v249_v34, %v228_v29 }
  0xdd   : > { %v217_v31 = vrot.slane %v196_v26, 7  ;;  %v3754_v32 = vpop.xlane.xlu1 %203 }
  0xde   : > { %v222_v33 = vsel %vm215_vm0, %v219_v23, %v221_v30  ;;  %v229_v37 = vsel %vm215_vm0, %v221_v30, 0.0  ;;  %v201_v41 = vpop.xlane.xlu0 %200  ;;  %v235_v43 = vrot.slane %v3754_v32, 7  ;;  %v281_v51 = vrot.slane %v270_v35, 1 }
  0xdf   : > { %v218_v38 = vsel %vm215_vm0, %v216_v21, %v217_v31  ;;  %v220_v39 = vsel %vm215_vm0, %v217_v31, %v219_v23  ;;  %v273_v42 = vmul.f32 %v269_v27, %v222_v33  ;;  %v274_v47 = vmul.f32 %v269_v27, %v229_v37 }
  0xe0   : > { %v3765_v48 = vmul.f32 %v328_v28, %v222_v33  ;;  %v271_v49 = vmul.f32 %v269_v27, %v218_v38  ;;  %v340_v52 = vrot.slane %v329_v36, 2  ;;  %v272_v53 = vmul.f32 %v269_v27, %v220_v39 }
  0xe1   : > { %v210_v50 = vpop.xlane.xlu1 %209  ;;  %v234_v54 = vrot.slane %v201_v41, 7  ;;  %v253_v55 = vmul.f32 %v249_v34, %v222_v33  ;;  %v3767_v56 = vmul.f32 %v328_v28, %v229_v37  ;;  %v3769_v58 = vmul.f32 %v328_v28, %v218_v38 }
  0xe2   : > { %v282_v57 = vrot.slane %v271_v49, 1  ;;  %v286_v59 = vrot.slane %v273_v42, 1  ;;  %v239_v62 = vrot.slane %v210_v50, 7  ;;  %v288_v63 = vrot.slane %v274_v47, 1  ;;  %v207_v19 = vpop.xlane.xlu0 %206 }
  0xe3   : > { %v236_v60 = vsel %vm215_vm0, %v234_v54, %v235_v43  ;;  %v246_v61 = vsel %vm215_vm0, 0.0, %v234_v54  ;;  %v345_v3 = vrot.slane %v3765_v48, 2  ;;  %v251_v7 = vmul.f32 %v249_v34, %v218_v38 }
  0xe4   : > { %v260_v10 = vmul.f32 %v3760_v40, %v246_v61  ;;  %v284_v11 = vrot.slane %v272_v53, 1  ;;  %v3775_v12 = vmul.f32 %v328_v28, %v220_v39  ;;  %v283_v13 = vsel %vm280_vm1, %v281_v51, %v282_v57 }
  0xe5   : > { %v300_v14 = vmul.f32 %v299_v44, %v246_v61  ;;  %v341_v15 = vrot.slane %v3769_v58, 2  ;;  %v301_v17 = vmul.f32 %v299_v44, %v236_v60  ;;  %v359_v18 = vmul.f32 %v3763_v45, %v246_v61 }
  0xe6   : > { %v264_v16 = vadd.f32 %v260_v10, %v250_v46  ;;  %v261_v20 = vmul.f32 %v3760_v40, %v236_v60  ;;  %v360_v22 = vmul.f32 %v3763_v45, %v236_v60  ;;  %v247_v23 = vsel %vm215_vm0, %v239_v62, 0.0 }
  0xe7   : > { %v310_v21 = vrot.slane %v300_v14, 1  ;;  %v347_v24 = vrot.slane %v3767_v56, 2  ;;  %v311_v26 = vrot.slane %v301_v17, 1  ;;  %v369_v27 = vrot.slane %v359_v18, 2 }
  0xe8   : > { %v294_v25 = vadd.f32 %v283_v13, %v264_v16  ;;  %v289_v28 = vsel %vm280_vm1, %v286_v59, %v288_v63  ;;  %v252_v29 = vmul.f32 %v249_v34, %v220_v39  ;;  %v370_v30 = vrot.slane %v360_v22, 2 }
  0xe9   : > { %v237_v31 = vrot.slane %v207_v19, 7  ;;  %v343_v32 = vrot.slane %v3775_v12, 2  ;;  %v285_v33 = vsel %vm280_vm1, %v282_v57, %v284_v11  ;;  %v312_v35 = vsel %vm280_vm1, %v310_v21, %v311_v26 }
  0xea   : > { %v304_v36 = vmul.f32 %v299_v44, %v247_v23  ;;  %v342_v37 = vsel %vm339_vm2, %v340_v52, %v341_v15  ;;  %v265_v38 = vadd.f32 %v261_v20, %v251_v7  ;;  %v323_v41 = vadd.f32 %v312_v35, %v294_v25 }
  0xeb   : > { %v287_v42 = vsel %vm280_vm1, %v284_v11, %v286_v59  ;;  %v371_v46 = vsel %vm339_vm2, %v369_v27, %v370_v30  ;;  %v363_v47 = vmul.f32 %v3763_v45, %v247_v23  ;;  %v238_v34 = vsel %vm215_vm0, %v235_v43, %v237_v31 }
  0xec   : > { %v240_v39 = vsel %vm215_vm0, %v237_v31, %v239_v62  ;;  %v353_v49 = vadd.f32 %v342_v37, %v323_v41  ;;  %v262_v50 = vmul.f32 %v3760_v40, %v238_v34  ;;  %v302_v53 = vmul.f32 %v299_v44, %v238_v34 }
  0xed   : > { %v263_v51 = vmul.f32 %v3760_v40, %v240_v39  ;;  %v317_v54 = vrot.slane %v304_v36, 1  ;;  %v303_v52 = vmul.f32 %v299_v44, %v240_v39  ;;  %v361_v56 = vmul.f32 %v3763_v45, %v238_v34 }
  0xee   : > { %v362_v57 = vmul.f32 %v3763_v45, %v240_v39  ;;  %v382_v58 = vadd.f32 %v371_v46, %v353_v49  ;;  %v266_v59 = vadd.f32 %v262_v50, %v252_v29  ;;  %v313_v61 = vrot.slane %v302_v53, 1 }
  0xef   : > { %v267_v60 = vadd.f32 %v263_v51, %v253_v55  ;;  %v295_v63 = vadd.f32 %v285_v33, %v265_v38  ;;  %v376_v43 = vrot.slane %v363_v47, 2  ;;  %v315_v7 = vrot.slane %v303_v52, 1 }
  0xf0   : > { %v372_v62 = vrot.slane %v361_v56, 2  ;;  %v3115_v10 = vmul.f32 -1.442695, %v382_v58  ;;  %v296_v11 = vadd.f32 %v287_v42, %v266_v59  ;;  %v314_v40 = vsel %vm280_vm1, %v311_v26, %v313_v61 }
  0xf1   : > { %v297_v12 = vadd.f32 %v289_v28, %v267_v60  ;;  %v316_v13 = vsel %vm280_vm1, %v313_v61, %v315_v7  ;;  %v318_v44 = vsel %vm280_vm1, %v315_v7, %v317_v54  ;;  %v324_v14 = vadd.f32 %v314_v40, %v295_v63 }
  0xf2   : > { %v374_v16 = vrot.slane %v362_v57, 2  ;;  %v344_v45 = vsel %vm339_vm2, %v341_v15, %v343_v32  ;;  %3390 = vpow2.f32 %v3115_v10  ;;  %v325_v55 = vadd.f32 %v316_v13, %v296_v11 }
  0xf3   : > { %v326_v17 = vadd.f32 %v318_v44, %v297_v12  ;;  %v348_v18 = vsel %vm339_vm2, %v345_v3, %v347_v24  ;;  %v346_v19 = vsel %vm339_vm2, %v343_v32, %v345_v3  ;;  %v354_v20 = vadd.f32 %v344_v45, %v324_v14 }
  0xf4   : > { %v355_v21 = vadd.f32 %v346_v19, %v325_v55  ;;  %v373_v23 = vsel %vm339_vm2, %v370_v30, %v372_v62  ;;  %v375_v25 = vsel %vm339_vm2, %v372_v62, %v374_v16  ;;  %v377_v15 = vsel %vm339_vm2, %v374_v16, %v376_v43 }
  0xf5   : > { %v356_v22 = vadd.f32 %v348_v18, %v326_v17  ;;  %v383_v26 = vadd.f32 %v373_v23, %v354_v20  ;;  %vm6705_vm0 = vcmask 998400  }
  0xf6   : > { %v384_v27 = vadd.f32 %v375_v25, %v355_v21 }
  0xf7   : > { %v385_v28 = vadd.f32 %v377_v15, %v356_v22  ;;  %v3116_v29 = vmul.f32 -1.442695, %v383_v26 }
  0xf8   : > { %v3117_v31 = vmul.f32 -1.442695, %v384_v27 }
  0xf9   : > { %3392 = vpow2.f32 %v3116_v29  ;;  %v3118_v24 = vmul.f32 -1.442695, %v385_v28 }
  0xfa   : > { %3394 = vpow2.f32 %v3117_v31 }
  0xfb   : > { %3396 = vpow2.f32 %v3118_v24 }
  0xff   : > { %v3391_v48 = vpop.eup %3390 }
 0x100   : > { %v398_v3 = vadd.f32 1.0, %v3391_v48 }
 0x102   : > { %3398 = vrcp.f32 %v398_v3 }
 0x106   : > { %v3393_v32 = vpop.eup %3392 }
 0x107   : > { %v3395_v33 = vpop.eup %3394  ;;  %v399_v35 = vadd.f32 1.0, %v3393_v32 }
 0x108   : > { %v400_v30 = vadd.f32 1.0, %v3395_v33  ;;  %v3397_v36 = vpop.eup %3396 }
 0x109   : > { %3400 = vrcp.f32 %v399_v35  ;;  %v401_v37 = vadd.f32 1.0, %v3397_v36 }
 0x10a   : > { %3402 = vrcp.f32 %v400_v30 }
 0x10b   : > { %3404 = vrcp.f32 %v401_v37 }
 0x10f   : > { %v3399_v38 = vpop.eup %3398 }
 0x110   : > { %412 = vperm.xlu0 %3388, %v3399_v38  }
 0x116   : > { %v3401_v41 = vpop.eup %3400 }
 0x117   : > { %417 = vperm.xlu1 %3389, %v3401_v41   ;;  %v3403_v42 = vpop.eup %3402 }
 0x118   : > { %v3405_v46 = vpop.eup %3404 }
 0x11b   : > { %422 = vperm.xlu1 %3389, %v3403_v42  }
 0x11f   : > { %427 = vperm.xlu1 %3389, %v3405_v46  }
 0x18b   : > { %v413_v34 = vpop.permute.xlu0 %412 }
 0x18c   : > { %v3818_v51 = vmul.f32 %v413_v34, %v3725_v2  ;;  %v3821_v53 = vmul.f32 %v413_v34, %v3729_v4 }
 0x18e   : > { %6777 = vst [vmem:[#allocation13_spill] sm:$0xff] %v3818_v51  ;;  %6778 = vst [vmem:[#allocation14_spill] sm:$0xff] %v3821_v53 }
 0x192   : > { %v418_v47 = vpop.permute.xlu1 %417 }
 0x193   : > { %v3812_v39 = vmul.f32 %v418_v47, %v3737_v8  ;;  %v3815_v49 = vmul.f32 %v418_v47, %v3739_v9 }
 0x195   : > { %6775 = vst [vmem:[#allocation11_spill] sm:$0xff] %v3812_v39  ;;  %6776 = vst [vmem:[#allocation12_spill] sm:$0xff] %v3815_v49  ;;  %v456_v8 = vadd.f32 %v3812_v39, %v3818_v51  ;;  %v465_v9 = vadd.f32 %v3815_v49, %v3821_v53 }
 0x196   : > { %v423_v50 = vpop.permute.xlu1 %422 }
 0x197   : > { %v3824_v54 = vmul.f32 %v423_v50, %v3721_v0  ;;  %v3827_v52 = vmul.f32 %v423_v50, %v3723_v1 }
 0x199   : > { %6779 = vst [vmem:[#allocation15_spill] sm:$0xff] %v3824_v54  ;;  %6780 = vst [vmem:[#allocation16_spill] sm:$0xff] %v3827_v52  ;;  %v457_v57 = vadd.f32 %v456_v8, %v3824_v54  ;;  %v466_v2 = vadd.f32 %v465_v9, %v3827_v52  ;;  %v438_v1 = vmax.f32 %v3818_v51, %v3824_v54 }
 0x19a   : > { %v428_v56 = vpop.permute.xlu1 %427  ;;  %v447_v58 = vmax.f32 %v3821_v53, %v3827_v52 }
 0x19b   : > { %v3836_v4 = vmul.f32 %v428_v56, %v3731_v5  ;;  %v3839_v0 = vmul.f32 %v428_v56, %v3733_v6 }
 0x19d   : > { %6781 = vst [vmem:[#allocation17_spill] sm:$0xff] %v3836_v4  ;;  %6782 = vst [vmem:[#allocation18_spill] sm:$0xff] %v3839_v0  ;;  %v439_v59 = vmax.f32 %v3812_v39, %v3836_v4  ;;  %v448_v60 = vmax.f32 %v3815_v49, %v3839_v0  ;;  %v458_v61 = vadd.f32 %v457_v57, %v3836_v4 }
 0x19e   : > { %v467_v5 = vadd.f32 %v466_v2, %v3839_v0 }
 0x19f   : > { %v459_v63 = vrot.slane %v458_v61, 4  ;;  %v440_v6 = vmax.f32 %v438_v1, %v439_v59  ;;  %v449_v7 = vmax.f32 %v447_v58, %v448_v60 }
 0x1a0   : > { %v468_v43 = vrot.slane %v467_v5, 4 }
 0x1a1   : > { %v441_v62 = vrot.slane %v440_v6, 4  ;;  %v450_v10 = vrot.slane %v449_v7, 4  ;;  %v460_v11 = vadd.f32 %v459_v63, %v458_v61 }
 0x1a2   : > { %v469_v44 = vadd.f32 %v468_v43, %v467_v5 }
 0x1a3   : > { %v442_v12 = vmax.f32 %v440_v6, %v441_v62  ;;  %v451_v40 = vmax.f32 %v449_v7, %v450_v10  ;;  %v461_v13 = vrot.slane %v460_v11, 2 }
 0x1a4   : > { %v470_v18 = vrot.slane %v469_v44, 2 }
 0x1a5   : > { %v443_v14 = vrot.slane %v442_v12, 2  ;;  %v452_v16 = vrot.slane %v451_v40, 2  ;;  %v462_v17 = vadd.f32 %v461_v13, %v460_v11 }
 0x1a6   : > { %v471_v23 = vadd.f32 %v470_v18, %v469_v44 }
 0x1a7   : > { %v444_v45 = vmax.f32 %v442_v12, %v443_v14  ;;  %v453_v55 = vmax.f32 %v451_v40, %v452_v16  ;;  %v463_v22 = vrot.slane %v462_v17, 1 }
 0x1a8   : > { %v472_v26 = vrot.slane %v471_v23, 1 }
 0x1a9   : > { %v445_v19 = vrot.slane %v444_v45, 1  ;;  %v454_v21 = vrot.slane %v453_v55, 1  ;;  %v464_v15 = vadd.f32 %v463_v22, %v462_v17 }
 0x1aa   : > { %v473_v28 = vadd.f32 %v472_v26, %v471_v23 }
 0x1ab   : > { %v446_v20 = vmax.f32 %v444_v45, %v445_v19  ;;  %v455_v25 = vmax.f32 %v453_v55, %v454_v21  ;;  %v475_v27 = vmul.f32 0.03125, %v464_v15 }
 0x1ac   : > { %v476_v29 = vmul.f32 0.03125, %v473_v28 }
 0x1ad   : > { %479 = vrot.lane.b32.xlu1 %v446_v20, %s3528_s19 }
 0x1b1   : > { %481 = vrot.lane.b32.xlu1 %v455_v25, %s3528_s19 }
 0x1b5   : > { %492 = vrot.lane.b32.xlu1 %v475_v27, %s3528_s19 }
 0x1b9   : > { %494 = vrot.lane.b32.xlu1 %v476_v29, %s3528_s19  ;;  %s6598_s19 = smov 90  }
 0x21f   : > { %v480_v31 = vpop.permute.xlu1 %479 }
 0x220   : > { %v3852_v24 = vsel %vm483_vm3, 0.0, %v480_v31 }
 0x221   : > { %6783 = vst [vmem:[#allocation19_spill] sm:$0xff] %v3852_v24  ;;  %555 = vrot.lane.b32.xlu1 %v3852_v24, %s3529_s25 }
 0x223   : > { %v482_v48 = vpop.permute.xlu1 %481 }
 0x224   : > { %v3857_v3 = vsel %vm483_vm3, %v480_v31, %v482_v48  ;;  %v3860_v32 = vsel %vm483_vm3, %v482_v48, 0.0 }
 0x225   : > { %6784 = vst [vmem:[#allocation20_spill] sm:$0xff] %v3857_v3  ;;  %6785 = vst [vmem:[#allocation21_spill] sm:$0xff] %v3860_v32  ;;  %559 = vrot.lane.b32.xlu1 %v3860_v32, %s3529_s25  ;;  %557 = vrot.lane.b32.xlu0 %v3857_v3, %s3529_s25 }
 0x227   : > { %v3962_v33 = vpop.permute.xlu1 %492 }
 0x229   : > { %576 = vrot.lane.b32.xlu1 %v3857_v3, %s3530_s28  ;;  %574 = vrot.lane.b32.xlu0 %v3852_v24, %s3530_s28 }
 0x22b   : > { %v3972_v35 = vpop.permute.xlu1 %494 }
 0x22d   : > { %616 = vrot.lane.b32.xlu1 %v3857_v3, %s3531_s24  ;;  %578 = vrot.lane.b32.xlu0 %v3860_v32, %s3530_s28 }
 0x231   : > { %633 = vrot.lane.b32.xlu1 %v3852_v24, %s3532_s27  ;;  %614 = vrot.lane.b32.xlu0 %v3852_v24, %s3531_s24 }
 0x235   : > { %637 = vrot.lane.b32.xlu1 %v3860_v32, %s3532_s27  ;;  %618 = vrot.lane.b32.xlu0 %v3860_v32, %s3531_s24 }
 0x239   : > { %654 = vrot.lane.b32.xlu1 %v3857_v3, %s3533_s29  ;;  %635 = vrot.lane.b32.xlu0 %v3857_v3, %s3532_s27 }
 0x23d   : > { %671 = vrot.lane.b32.xlu1 %v3852_v24, %s6667_s30  ;;  %652 = vrot.lane.b32.xlu0 %v3852_v24, %s3533_s29 }
 0x241   : > { %675 = vrot.lane.b32.xlu1 %v3860_v32, %s6667_s30  ;;  %656 = vrot.lane.b32.xlu0 %v3860_v32, %s3533_s29 }
 0x245   : > { %692 = vrot.lane.b32.xlu1 %v3857_v3, %s3535_s3  ;;  %673 = vrot.lane.b32.xlu0 %v3857_v3, %s6667_s30 }
 0x249   : > { %709 = vrot.lane.b32.xlu1 %v3852_v24, %s3536_s4  ;;  %690 = vrot.lane.b32.xlu0 %v3852_v24, %s3535_s3 }
 0x24d   : > { %713 = vrot.lane.b32.xlu1 %v3860_v32, %s3536_s4  ;;  %694 = vrot.lane.b32.xlu0 %v3860_v32, %s3535_s3 }
 0x251   : > { %749 = vrot.lane.b32.xlu1 %v3852_v24, %s3537_s16  ;;  %711 = vrot.lane.b32.xlu0 %v3857_v3, %s3536_s4 }
 0x255   : > { %753 = vrot.lane.b32.xlu1 %v3860_v32, %s3537_s16  ;;  %751 = vrot.lane.b32.xlu0 %v3857_v3, %s3537_s16 }
 0x259   : > { %770 = vrot.lane.b32.xlu1 %v3857_v3, %s3538_s17  ;;  %768 = vrot.lane.b32.xlu0 %v3852_v24, %s3538_s17 }
 0x25d   : > { %787 = vrot.lane.b32.xlu1 %v3852_v24, %s3539_s20  ;;  %772 = vrot.lane.b32.xlu0 %v3860_v32, %s3538_s17 }
 0x261   : > { %791 = vrot.lane.b32.xlu1 %v3860_v32, %s3539_s20  ;;  %789 = vrot.lane.b32.xlu0 %v3857_v3, %s3539_s20 }
 0x265   : > { %808 = vrot.lane.b32.xlu1 %v3857_v3, %s3540_s23  ;;  %806 = vrot.lane.b32.xlu0 %v3852_v24, %s3540_s23 }
 0x269   : > { %825 = vrot.lane.b32.xlu1 %v3852_v24, %s6638_s26  ;;  %810 = vrot.lane.b32.xlu0 %v3860_v32, %s3540_s23 }
 0x26d   : > { %829 = vrot.lane.b32.xlu1 %v3860_v32, %s6638_s26  ;;  %827 = vrot.lane.b32.xlu0 %v3857_v3, %s6638_s26  ;;  %s6650_s26 = smov 125  }
 0x271   : > { %846 = vrot.lane.b32.xlu1 %v3857_v3, %s6633_s5  ;;  %844 = vrot.lane.b32.xlu0 %v3852_v24, %s6633_s5 }
 0x275   : > { %886 = vrot.lane.b32.xlu1 %v3857_v3, %s6576_s7  ;;  %848 = vrot.lane.b32.xlu0 %v3860_v32, %s6633_s5  ;;  %s3129_s5 = sld [smem:[#allocation6 + $0xa]] }
 0x279   : > { %903 = vrot.lane.b32.xlu1 %v3852_v24, %s6578_s8  ;;  %884 = vrot.lane.b32.xlu0 %v3852_v24, %s6576_s7 }
 0x27d   : > { %907 = vrot.lane.b32.xlu1 %v3860_v32, %s6578_s8  ;;  %888 = vrot.lane.b32.xlu0 %v3860_v32, %s6576_s7  ;;  %s6582_s7 = smov 79  }
 0x281   : > { %924 = vrot.lane.b32.xlu1 %v3857_v3, %s6598_s19  ;;  %905 = vrot.lane.b32.xlu0 %v3857_v3, %s6578_s8  ;;  %s6584_s8 = smov 78  }
 0x285   : > { %941 = vrot.lane.b32.xlu1 %v3852_v24, %s6580_s14  ;;  %922 = vrot.lane.b32.xlu0 %v3852_v24, %s6598_s19 }
 0x289   : > { %945 = vrot.lane.b32.xlu1 %v3860_v32, %s6580_s14  ;;  %926 = vrot.lane.b32.xlu0 %v3860_v32, %s6598_s19  ;;  %s6604_s19 = smov 48  }
 0x28d   : > { %962 = vrot.lane.b32.xlu1 %v3857_v3, %s6582_s7  ;;  %943 = vrot.lane.b32.xlu0 %v3857_v3, %s6580_s14  ;;  %s6586_s14 = smov 76  }
 0x291   : > { %979 = vrot.lane.b32.xlu1 %v3852_v24, %s6584_s8  ;;  %960 = vrot.lane.b32.xlu0 %v3852_v24, %s6582_s7 }
 0x293   : > { %v3978_v30 = vpop.permute.xlu1 %555 }
 0x295   : > { %983 = vrot.lane.b32.xlu1 %v3860_v32, %s6584_s8  ;;  %964 = vrot.lane.b32.xlu0 %v3860_v32, %s6582_s7  ;;  %s6588_s7 = smov 75  }
 0x297   : > { %v3984_v36 = vpop.permute.xlu0 %557  ;;  %v3986_v37 = vpop.permute.xlu1 %559 }
 0x299   : > { %1019 = vrot.lane.b32.xlu1 %v3852_v24, %s6586_s14  ;;  %981 = vrot.lane.b32.xlu0 %v3857_v3, %s6584_s8  ;;  %s6590_s8 = smov 74  }
 0x29b   : > { %v3992_v38 = vpop.permute.xlu0 %574  ;;  %v3994_v41 = vpop.permute.xlu1 %576 }
 0x29d   : > { %1023 = vrot.lane.b32.xlu1 %v3860_v32, %s6586_s14  ;;  %1021 = vrot.lane.b32.xlu0 %v3857_v3, %s6586_s14  ;;  %s6592_s14 = smov 64  }
 0x29f   : > { %v4000_v42 = vpop.permute.xlu0 %578  ;;  %v4002_v46 = vpop.permute.xlu1 %616 }
 0x2a1   : > { %1040 = vrot.lane.b32.xlu1 %v3857_v3, %s6588_s7  ;;  %1038 = vrot.lane.b32.xlu0 %v3852_v24, %s6588_s7 }
 0x2a3   : > { %v4008_v47 = vpop.permute.xlu0 %614  ;;  %v4010_v34 = vpop.permute.xlu1 %633 }
 0x2a5   : > { %1057 = vrot.lane.b32.xlu1 %v3852_v24, %s6590_s8  ;;  %1042 = vrot.lane.b32.xlu0 %v3860_v32, %s6588_s7  ;;  %s6594_s7 = smov 63  }
 0x2a7   : > { %v4016_v50 = vpop.permute.xlu0 %618  ;;  %v4018_v8 = vpop.permute.xlu1 %637 }
 0x2a9   : > { %1061 = vrot.lane.b32.xlu1 %v3860_v32, %s6590_s8  ;;  %1059 = vrot.lane.b32.xlu0 %v3857_v3, %s6590_s8  ;;  %s6596_s8 = smov 62  }
 0x2ab   : > { %v4024_v9 = vpop.permute.xlu0 %635  ;;  %v4026_v56 = vpop.permute.xlu1 %654 }
 0x2ad   : > { %1078 = vrot.lane.b32.xlu1 %v3857_v3, %s6592_s14  ;;  %1076 = vrot.lane.b32.xlu0 %v3852_v24, %s6592_s14 }
 0x2af   : > { %v4032_v57 = vpop.permute.xlu0 %652  ;;  %v4034_v2 = vpop.permute.xlu1 %671 }
 0x2b1   : > { %1095 = vrot.lane.b32.xlu1 %v3852_v24, %s6594_s7  ;;  %1080 = vrot.lane.b32.xlu0 %v3860_v32, %s6592_s14  ;;  %s6602_s14 = smov 60  }
 0x2b3   : > { %v4040_v1 = vpop.permute.xlu0 %656  ;;  %v4042_v58 = vpop.permute.xlu1 %675 }
 0x2b5   : > { %1099 = vrot.lane.b32.xlu1 %v3860_v32, %s6594_s7  ;;  %1097 = vrot.lane.b32.xlu0 %v3857_v3, %s6594_s7  ;;  %s6600_s7 = smov 59  }
 0x2b7   : > { %v4048_v59 = vpop.permute.xlu0 %673  ;;  %v4050_v60 = vpop.permute.xlu1 %692 }
 0x2b9   : > { %1116 = vrot.lane.b32.xlu1 %v3857_v3, %s6596_s8  ;;  %1114 = vrot.lane.b32.xlu0 %v3852_v24, %s6596_s8 }
 0x2bb   : > { %v4056_v61 = vpop.permute.xlu0 %690  ;;  %v4058_v5 = vpop.permute.xlu1 %709 }
 0x2bd   : > { %1156 = vrot.lane.b32.xlu1 %v3857_v3, %s6602_s14  ;;  %1118 = vrot.lane.b32.xlu0 %v3860_v32, %s6596_s8  ;;  %s6628_s8 = smov 58  }
 0x2bf   : > { %v4064_v63 = vpop.permute.xlu0 %694  ;;  %v4066_v43 = vpop.permute.xlu1 %713 }
 0x2c1   : > { %1173 = vrot.lane.b32.xlu1 %v3852_v24, %s6600_s7  ;;  %1154 = vrot.lane.b32.xlu0 %v3852_v24, %s6602_s14 }
 0x2c3   : > { %v4072_v6 = vpop.permute.xlu0 %711  ;;  %v4074_v7 = vpop.permute.xlu1 %749 }
 0x2c5   : > { %1177 = vrot.lane.b32.xlu1 %v3860_v32, %s6600_s7  ;;  %1158 = vrot.lane.b32.xlu0 %v3860_v32, %s6602_s14  ;;  %s6608_s14 = smov 46  }
 0x2c7   : > { %v4080_v62 = vpop.permute.xlu0 %751  ;;  %v4082_v10 = vpop.permute.xlu1 %753 }
 0x2c9   : > { %1194 = vrot.lane.b32.xlu1 %v3857_v3, %s6628_s8  ;;  %1175 = vrot.lane.b32.xlu0 %v3857_v3, %s6600_s7  ;;  %s6606_s7 = smov 47  }
 0x2cb   : > { %v4088_v11 = vpop.permute.xlu0 %768  ;;  %v4090_v12 = vpop.permute.xlu1 %770 }
 0x2cd   : > { %1211 = vrot.lane.b32.xlu1 %v3852_v24, %s6604_s19  ;;  %1192 = vrot.lane.b32.xlu0 %v3852_v24, %s6628_s8 }
 0x2cf   : > { %v4096_v40 = vpop.permute.xlu0 %772  ;;  %v4098_v13 = vpop.permute.xlu1 %787 }
 0x2d1   : > { %1215 = vrot.lane.b32.xlu1 %v3860_v32, %s6604_s19  ;;  %1196 = vrot.lane.b32.xlu0 %v3860_v32, %s6628_s8  ;;  %s6643_s8 = smov 27  }
 0x2d3   : > { %v4104_v44 = vpop.permute.xlu0 %789  ;;  %v4106_v14 = vpop.permute.xlu1 %791 }
 0x2d5   : > { %1232 = vrot.lane.b32.xlu1 %v3857_v3, %s6606_s7  ;;  %1213 = vrot.lane.b32.xlu0 %v3857_v3, %s6604_s19  ;;  %s6610_s19 = smov 44  }
 0x2d7   : > { %v4112_v16 = vpop.permute.xlu0 %806  ;;  %v4114_v45 = vpop.permute.xlu1 %808 }
 0x2d9   : > { %1249 = vrot.lane.b32.xlu1 %v3852_v24, %s6608_s14  ;;  %1230 = vrot.lane.b32.xlu0 %v3852_v24, %s6606_s7 }
 0x2db   : > { %v4120_v55 = vpop.permute.xlu0 %810  ;;  %v4122_v17 = vpop.permute.xlu1 %825 }
 0x2dd   : > { %1234 = vrot.lane.b32.xlu0 %v3860_v32, %s6606_s7  ;;  %1253 = vrot.lane.b32.xlu1 %v3860_v32, %s6608_s14  ;;  %s6612_s7 = smov 43  }
 0x2df   : > { %v4128_v18 = vpop.permute.xlu0 %827  ;;  %v4130_v19 = vpop.permute.xlu1 %829 }
 0x2e1   : > { %1251 = vrot.lane.b32.xlu0 %v3857_v3, %s6608_s14  ;;  %1289 = vrot.lane.b32.xlu1 %v3852_v24, %s6610_s19  ;;  %s6618_s14 = smov 42  }
 0x2e3   : > { %v4136_v20 = vpop.permute.xlu0 %844  ;;  %v4138_v21 = vpop.permute.xlu1 %846 }
 0x2e5   : > { %1291 = vrot.lane.b32.xlu0 %v3857_v3, %s6610_s19  ;;  %1293 = vrot.lane.b32.xlu1 %v3860_v32, %s6610_s19  ;;  %s6622_s19 = smov 32  }
 0x2e7   : > { %v4144_v22 = vpop.permute.xlu0 %848  ;;  %v4146_v23 = vpop.permute.xlu1 %886 }
 0x2e9   : > { %1308 = vrot.lane.b32.xlu0 %v3852_v24, %s6612_s7  ;;  %1310 = vrot.lane.b32.xlu1 %v3857_v3, %s6612_s7 }
 0x2eb   : > { %v4152_v25 = vpop.permute.xlu0 %884  ;;  %v4154_v15 = vpop.permute.xlu1 %903 }
 0x2ec   : > { %6786 = vst [vmem:[#allocation22_spill] sm:$0xff] %v4154_v15 }
 0x2ed   : > { %1312 = vrot.lane.b32.xlu0 %v3860_v32, %s6612_s7  ;;  %1327 = vrot.lane.b32.xlu1 %v3852_v24, %s6618_s14  ;;  %s6626_s7 = smov 31  }
 0x2ef   : > { %v4160_v26 = vpop.permute.xlu0 %888  ;;  %v4162_v27 = vpop.permute.xlu1 %907 }
 0x2f0   : > { %6787 = vst [vmem:[#allocation23_spill] sm:$0xff] %v4160_v26  ;;  %6788 = vst [vmem:[#allocation24_spill] sm:$0xff] %v4162_v27 }
 0x2f1   : > { %1329 = vrot.lane.b32.xlu0 %v3857_v3, %s6618_s14  ;;  %1331 = vrot.lane.b32.xlu1 %v3860_v32, %s6618_s14  ;;  %s6631_s14 = smov 30  }
 0x2f3   : > { %v4168_v28 = vpop.permute.xlu0 %905  ;;  %v4170_v29 = vpop.permute.xlu1 %924 }
 0x2f4   : > { %6789 = vst [vmem:[#allocation25_spill] sm:$0xff] %v4168_v28  ;;  %6790 = vst [vmem:[#allocation26_spill] sm:$0xff] %v4170_v29 }
 0x2f5   : > { %1346 = vrot.lane.b32.xlu0 %v3852_v24, %s6622_s19  ;;  %1348 = vrot.lane.b32.xlu1 %v3857_v3, %s6622_s19 }
 0x2f7   : > { %v4176_v31 = vpop.permute.xlu0 %922  ;;  %v4178_v48 = vpop.permute.xlu1 %941 }
 0x2f8   : > { %6791 = vst [vmem:[#allocation27_spill] sm:$0xff] %v4176_v31  ;;  %6792 = vst [vmem:[#allocation28_spill] sm:$0xff] %v4178_v48 }
 0x2f9   : > { %1350 = vrot.lane.b32.xlu0 %v3860_v32, %s6622_s19  ;;  %1365 = vrot.lane.b32.xlu1 %v3852_v24, %s6626_s7  ;;  %s6636_s19 = smov 28  }
 0x2fb   : > { %v4184_v0 = vpop.permute.xlu0 %926  ;;  %v4186_v52 = vpop.permute.xlu1 %945 }
 0x2fc   : > { %6793 = vst [vmem:[#allocation29_spill] sm:$0xff] %v4184_v0  ;;  %6794 = vst [vmem:[#allocation30_spill] sm:$0xff] %v4186_v52 }
 0x2fd   : > { %1367 = vrot.lane.b32.xlu0 %v3857_v3, %s6626_s7  ;;  %1369 = vrot.lane.b32.xlu1 %v3860_v32, %s6626_s7  ;;  %s3122_s7 = sld [smem:[#allocation6 + $0x3]] }
 0x2ff   : > { %v4192_v49 = vpop.permute.xlu0 %943  ;;  %v4194_v53 = vpop.permute.xlu1 %962 }
 0x300   : > { %6795 = vst [vmem:[#allocation31_spill] sm:$0xff] %v4192_v49  ;;  %6796 = vst [vmem:[#allocation32_spill] sm:$0xff] %v4194_v53 }
 0x301   : > { %1384 = vrot.lane.b32.xlu0 %v3852_v24, %s6631_s14  ;;  %1386 = vrot.lane.b32.xlu1 %v3857_v3, %s6631_s14 }
 0x303   : > { %v4200_v4 = vpop.permute.xlu0 %960  ;;  %v4202_v54 = vpop.permute.xlu1 %979  ;;  %v593_v53 = vstv %s3122_s7  ;;  %s6652_s7 = smov 109  }
 0x304   : > { %6797 = vst [vmem:[#allocation33_spill] sm:$0xff] %v4200_v4  ;;  %6798 = vst [vmem:[#allocation34_spill] sm:$0xff] %v4202_v54  ;;  %v594_v52 = vmul.f32 %v593_v53, %v3852_v24  ;;  %v596_v48 = vmul.f32 %v593_v53, %v3860_v32  ;;  %v595_v0 = vmul.f32 %v593_v53, %v3857_v3 }
 0x305   : > { %1388 = vrot.lane.b32.xlu0 %v3860_v32, %s6631_s14  ;;  %1426 = vrot.lane.b32.xlu1 %v3857_v3, %s6636_s19  ;;  %s6646_s14 = smov 26  }
 0x307   : > { %v4208_v39 = vpop.permute.xlu0 %964  ;;  %v4210_v51 = vpop.permute.xlu1 %983 }
 0x308   : > { %6799 = vst [vmem:[#allocation35_spill] sm:$0xff] %v4208_v39  ;;  %6800 = vst [vmem:[#allocation36_spill] sm:$0xff] %v4210_v51 }
 0x309   : > { %1424 = vrot.lane.b32.xlu0 %v3852_v24, %s6636_s19  ;;  %1443 = vrot.lane.b32.xlu1 %v3852_v24, %s6643_s8 }
 0x30b   : > { %v4216_v54 = vpop.permute.xlu0 %981  ;;  %v4218_v4 = vpop.permute.xlu1 %1019 }
 0x30c   : > { %6801 = vst [vmem:[#allocation37_spill] sm:$0xff] %v4216_v54  ;;  %6802 = vst [vmem:[#allocation38_spill] sm:$0xff] %v4218_v4 }
 0x30d   : > { %1428 = vrot.lane.b32.xlu0 %v3860_v32, %s6636_s19  ;;  %1447 = vrot.lane.b32.xlu1 %v3860_v32, %s6643_s8  ;;  %s3136_s19 = sld [smem:[#allocation6 + $0x11]] }
 0x30f   : > { %v4224_v39 = vpop.permute.xlu0 %1021  ;;  %v4226_v51 = vpop.permute.xlu1 %1023 }
 0x310   : > { %6803 = vst [vmem:[#allocation39_spill] sm:$0xff] %v4224_v39  ;;  %6804 = vst [vmem:[#allocation40_spill] sm:$0xff] %v4226_v51 }
 0x311   : > { %1445 = vrot.lane.b32.xlu0 %v3857_v3, %s6643_s8  ;;  %1464 = vrot.lane.b32.xlu1 %v3857_v3, %s6646_s14  ;;  %s3143_s8 = sld [smem:[#allocation6 + $0x18]] }
 0x313   : > { %v4232_v4 = vpop.permute.xlu0 %1038  ;;  %v4234_v54 = vpop.permute.xlu1 %1040  ;;  %v863_v31 = vstv %s3136_s19  ;;  %s6681_s19 = smov 77  }
 0x314   : > { %6805 = vst [vmem:[#allocation41_spill] sm:$0xff] %v4232_v4  ;;  %6806 = vst [vmem:[#allocation42_spill] sm:$0xff] %v4234_v54  ;;  %v728_v4 = vstv %s3129_s5  ;;  %s3150_s5 = sld [smem:[#allocation6 + $0x1f]] }
 0x315   : > { %1462 = vrot.lane.b32.xlu0 %v3852_v24, %s6646_s14  ;;  %600 = vrot.lane.b32.xlu1 %v594_v52, %s6650_s26  ;;  %v730_v52 = vmul.f32 %v728_v4, %v3857_v3 }
 0x317   : > { %v4240_v51 = vpop.permute.xlu0 %1042  ;;  %v4242_v39 = vpop.permute.xlu1 %1057 }
 0x318   : > { %6807 = vst [vmem:[#allocation43_spill] sm:$0xff] %v4240_v51  ;;  %6808 = vst [vmem:[#allocation44_spill] sm:$0xff] %v4242_v39 }
 0x319   : > { %1466 = vrot.lane.b32.xlu0 %v3860_v32, %s6646_s14  ;;  %604 = vrot.lane.b32.xlu1 %v596_v48, %s6650_s26  ;;  %v729_v48 = vmul.f32 %v728_v4, %v3852_v24  ;;  %s6685_s14 = smov 93  }
 0x31b   : > { %v4248_v54 = vpop.permute.xlu0 %1059  ;;  %v4250_v49 = vpop.permute.xlu1 %1061 }
 0x31c   : > { %6809 = vst [vmem:[#allocation45_spill] sm:$0xff] %v4248_v54  ;;  %6810 = vst [vmem:[#allocation46_spill] sm:$0xff] %v4250_v49  ;;  %v864_v54 = vmul.f32 %v863_v31, %v3852_v24 }
 0x31d   : > { %602 = vrot.lane.b32.xlu0 %v595_v0, %s6650_s26  ;;  %737 = vrot.lane.b32.xlu1 %v730_v52, %s6652_s7  ;;  %v731_v52 = vmul.f32 %v728_v4, %v3860_v32  ;;  %s3157_s26 = sld [smem:[#allocation6 + $0x26]] }
 0x31f   : > { %v4256_v39 = vpop.permute.xlu0 %1076  ;;  %v4258_v51 = vpop.permute.xlu1 %1078 }
 0x320   : > { %6811 = vst [vmem:[#allocation47_spill] sm:$0xff] %v4256_v39  ;;  %6812 = vst [vmem:[#allocation48_spill] sm:$0xff] %v4258_v51  ;;  %v866_v39 = vmul.f32 %v863_v31, %v3860_v32  ;;  %v998_v51 = vstv %s3143_s8  ;;  %s3164_s8 = sld [smem:[#allocation6 + $0x2d]] }
 0x321   : > { %735 = vrot.lane.b32.xlu0 %v729_v48, %s6652_s7  ;;  %870 = vrot.lane.b32.xlu1 %v864_v54, %s6685_s14  ;;  %v865_v48 = vmul.f32 %v863_v31, %v3857_v3  ;;  %v1000_v54 = vmul.f32 %v998_v51, %v3857_v3 }
 0x323   : > { %v4264_v53 = vpop.permute.xlu0 %1080  ;;  %v4266_v0 = vpop.permute.xlu1 %1095 }
 0x324   : > { %6813 = vst [vmem:[#allocation49_spill] sm:$0xff] %v4264_v53  ;;  %6814 = vst [vmem:[#allocation50_spill] sm:$0xff] %v4266_v0  ;;  %v1133_v53 = vstv %s3150_s5  ;;  %s6672_s5 = smov 45  }
 0x325   : > { %739 = vrot.lane.b32.xlu0 %v731_v52, %s6652_s7  ;;  %874 = vrot.lane.b32.xlu1 %v866_v39, %s6685_s14  ;;  %v999_v39 = vmul.f32 %v998_v51, %v3852_v24  ;;  %v1134_v0 = vmul.f32 %v1133_v53, %v3852_v24  ;;  %s6674_s7 = smov 61  }
 0x327   : > { %v4272_v49 = vpop.permute.xlu0 %1097  ;;  %v4274_v29 = vpop.permute.xlu1 %1099 }
 0x328   : > { %6815 = vst [vmem:[#allocation51_spill] sm:$0xff] %v4272_v49  ;;  %6816 = vst [vmem:[#allocation52_spill] sm:$0xff] %v4274_v29 }
 0x329   : > { %872 = vrot.lane.b32.xlu0 %v865_v48, %s6685_s14  ;;  %1007 = vrot.lane.b32.xlu1 %v1000_v54, %s6681_s19  ;;  %v1001_v54 = vmul.f32 %v998_v51, %v3860_v32  ;;  %s4505_s14 = sld [smem:[#allocation6 + $0xc]] }
 0x32b   : > { %v4280_v4 = vpop.permute.xlu0 %1114  ;;  %v4282_v52 = vpop.permute.xlu1 %1116 }
 0x32c   : > { %6817 = vst [vmem:[#allocation53_spill] sm:$0xff] %v4280_v4  ;;  %6818 = vst [vmem:[#allocation54_spill] sm:$0xff] %v4282_v52  ;;  %v1136_v4 = vmul.f32 %v1133_v53, %v3860_v32  ;;  %v1268_v52 = vstv %s3157_s26  ;;  %s6669_s26 = smov 29  }
 0x32d   : > { %1005 = vrot.lane.b32.xlu0 %v999_v39, %s6681_s19  ;;  %1140 = vrot.lane.b32.xlu1 %v1134_v0, %s6674_s7  ;;  %v1135_v39 = vmul.f32 %v1133_v53, %v3857_v3  ;;  %v1270_v0 = vmul.f32 %v1268_v52, %v3857_v3 }
 0x32f   : > { %v4288_v31 = vpop.permute.xlu0 %1118  ;;  %v4290_v48 = vpop.permute.xlu1 %1156 }
 0x330   : > { %6819 = vst [vmem:[#allocation55_spill] sm:$0xff] %v4288_v31  ;;  %6820 = vst [vmem:[#allocation56_spill] sm:$0xff] %v4290_v48  ;;  %v1403_v31 = vstv %s3164_s8  ;;  %s4458_s8 = sld [smem:[#allocation6 + $0x1]] }
 0x331   : > { %1009 = vrot.lane.b32.xlu0 %v1001_v54, %s6681_s19  ;;  %1144 = vrot.lane.b32.xlu1 %v1136_v4, %s6674_s7  ;;  %v1269_v4 = vmul.f32 %v1268_v52, %v3852_v24  ;;  %s4500_s19 = sld [smem:[#allocation6 + $0xb]] }
 0x333   : > { %v4296_v29 = vpop.permute.xlu0 %1154  ;;  %v4298_v49 = vpop.permute.xlu1 %1173 }
 0x334   : > { %6821 = vst [vmem:[#allocation57_spill] sm:$0xff] %v4296_v29  ;;  %6822 = vst [vmem:[#allocation58_spill] sm:$0xff] %v4298_v49  ;;  %v1404_v29 = vmul.f32 %v1403_v31, %v3852_v24 }
 0x335   : > { %1142 = vrot.lane.b32.xlu0 %v1135_v39, %s6674_s7  ;;  %1277 = vrot.lane.b32.xlu1 %v1270_v0, %s6672_s5  ;;  %v1271_v39 = vmul.f32 %v1268_v52, %v3860_v32  ;;  %v1406_v0 = vmul.f32 %v1403_v31, %v3860_v32  ;;  %s4491_s7 = sld [smem:[#allocation6 + $0x8]] }
 0x337   : > { %v4304_v51 = vpop.permute.xlu0 %1158  ;;  %v4306_v54 = vpop.permute.xlu1 %1177 }
 0x338   : > { %6823 = vst [vmem:[#allocation59_spill] sm:$0xff] %v4304_v51  ;;  %6824 = vst [vmem:[#allocation60_spill] sm:$0xff] %v4306_v54 }
 0x339   : > { %1275 = vrot.lane.b32.xlu0 %v1269_v4, %s6672_s5  ;;  %1410 = vrot.lane.b32.xlu1 %v1404_v29, %s6669_s26  ;;  %v1405_v4 = vmul.f32 %v1403_v31, %v3857_v3  ;;  %v4327_v29 = vsel %vm483_vm3, 0.0, %v3962_v33  ;;  %v4343_v31 = vsel %vm483_vm3, %v3972_v35, 0.0 }
 0x33b   : > { %v4312_v53 = vpop.permute.xlu0 %1175  ;;  %v4314_v49 = vpop.permute.xlu1 %1194 }
 0x33c   : > { %6825 = vst [vmem:[#allocation61_spill] sm:$0xff] %v4312_v53  ;;  %6826 = vst [vmem:[#allocation62_spill] sm:$0xff] %v4314_v49 }
 0x33d   : > { %1279 = vrot.lane.b32.xlu0 %v1271_v39, %s6672_s5  ;;  %1414 = vrot.lane.b32.xlu1 %v1406_v0, %s6669_s26  ;;  %v4339_v0 = vsel %vm483_vm3, %v3962_v33, %v3972_v35  ;;  %s4480_s5 = sld [smem:[#allocation6 + $0x6]] }
 0x33f   : > { %v4320_v54 = vpop.permute.xlu0 %1192  ;;  %v4322_v51 = vpop.permute.xlu1 %1211 }
 0x340   : > { %6827 = vst [vmem:[#allocation63_spill] sm:$0xff] %v4320_v54  ;;  %6828 = vst [vmem:[#allocation64_spill] sm:$0xff] %v4322_v51 }
 0x341   : > { %1412 = vrot.lane.b32.xlu0 %v1405_v4, %s6669_s26  ;;  %1491 = vrot.lane.b32.xlu1 %v4327_v29, %s3529_s25  ;;  %s4470_s26 = sld [smem:[#allocation6 + $0x5]] }
 0x343   : > { %v4332_v52 = vpop.permute.xlu0 %1196  ;;  %v4334_v39 = vpop.permute.xlu1 %1215 }
 0x344   : > { %6829 = vst [vmem:[#allocation65_spill] sm:$0xff] %v4332_v52  ;;  %6830 = vst [vmem:[#allocation66_spill] sm:$0xff] %v4334_v39 }
 0x345   : > { %1493 = vrot.lane.b32.xlu0 %v4339_v0, %s3529_s25  ;;  %1495 = vrot.lane.b32.xlu1 %v4343_v31, %s3529_s25  ;;  %s4430_s25 = sld [smem:[#allocation6]] }
 0x347   : > { %v4349_v4 = vpop.permute.xlu0 %1213  ;;  %v4351_v32 = vpop.permute.xlu1 %1232 }
 0x348   : > { %6831 = vst [vmem:[#allocation67_spill] sm:$0xff] %v4349_v4  ;;  %6832 = vst [vmem:[#allocation68_spill] sm:$0xff] %v4351_v32 }
 0x349   : > { %1509 = vrot.lane.b32.xlu0 %v4327_v29, %s3530_s28  ;;  %1511 = vrot.lane.b32.xlu1 %v4339_v0, %s3530_s28 }
 0x34b   : > { %v4357_v33 = vpop.permute.xlu0 %1230  ;;  %v4359_v35 = vpop.permute.xlu1 %1249 }
 0x34c   : > { %6833 = vst [vmem:[#allocation69_spill] sm:$0xff] %v4357_v33  ;;  %6834 = vst [vmem:[#allocation70_spill] sm:$0xff] %v4359_v35 }
 0x34d   : > { %1513 = vrot.lane.b32.xlu0 %v4343_v31, %s3530_s28  ;;  %1549 = vrot.lane.b32.xlu1 %v4339_v0, %s3531_s24  ;;  %s4432_s28 = sld [smem:[#allocation6 + $0x8f]] }
 0x34f   : > { %v4365_v39 = vpop.permute.xlu0 %1234  ;;  %v4367_v51 = vpop.permute.xlu1 %1253 }
 0x350   : > { %6835 = vst [vmem:[#allocation71_spill] sm:$0xff] %v4365_v39  ;;  %6836 = vst [vmem:[#allocation72_spill] sm:$0xff] %v4367_v51 }
 0x351   : > { %1547 = vrot.lane.b32.xlu0 %v4327_v29, %s3531_s24  ;;  %1565 = vrot.lane.b32.xlu1 %v4327_v29, %s3532_s27 }
 0x353   : > { %v4373_v32 = vpop.permute.xlu0 %1251  ;;  %v4375_v33 = vpop.permute.xlu1 %1289 }
 0x354   : > { %6837 = vst [vmem:[#allocation73_spill] sm:$0xff] %v4373_v32  ;;  %6838 = vst [vmem:[#allocation74_spill] sm:$0xff] %v4375_v33 }
 0x355   : > { %1551 = vrot.lane.b32.xlu0 %v4343_v31, %s3531_s24  ;;  %1569 = vrot.lane.b32.xlu1 %v4343_v31, %s3532_s27  ;;  %s4438_s24 = sld [smem:[#allocation6 + $0x34]] }
 0x357   : > { %v4381_v35 = vpop.permute.xlu0 %1291  ;;  %v4383_v39 = vpop.permute.xlu1 %1293 }
 0x358   : > { %6839 = vst [vmem:[#allocation75_spill] sm:$0xff] %v4381_v35  ;;  %6840 = vst [vmem:[#allocation76_spill] sm:$0xff] %v4383_v39 }
 0x359   : > { %1567 = vrot.lane.b32.xlu0 %v4339_v0, %s3532_s27  ;;  %1585 = vrot.lane.b32.xlu1 %v4339_v0, %s3533_s29  ;;  %s4446_s27 = sld [smem:[#allocation6 + $0x3b]] }
 0x35b   : > { %v4389_v51 = vpop.permute.xlu0 %1308  ;;  %v4391_v32 = vpop.permute.xlu1 %1310  ;;  %v1527_v49 = vstv %s4438_s24  ;;  %s4534_s24 = sld [smem:[#allocation6 + $0xf]] }
 0x35c   : > { %6841 = vst [vmem:[#allocation77_spill] sm:$0xff] %v4389_v51  ;;  %6842 = vst [vmem:[#allocation78_spill] sm:$0xff] %v4391_v32 }
 0x35d   : > { %1583 = vrot.lane.b32.xlu0 %v4327_v29, %s3533_s29  ;;  %1601 = vrot.lane.b32.xlu1 %v4327_v29, %s6667_s30 }
 0x35f   : > { %v4397_v33 = vpop.permute.xlu0 %1312  ;;  %v4399_v35 = vpop.permute.xlu1 %1327  ;;  %v1655_v53 = vstv %s4446_s27  ;;  %s4546_s27 = sld [smem:[#allocation6 + $0x10]] }
 0x360   : > { %6843 = vst [vmem:[#allocation79_spill] sm:$0xff] %v4397_v33  ;;  %6844 = vst [vmem:[#allocation80_spill] sm:$0xff] %v4399_v35  ;;  %v6665_v35 = vlaneseq }
 0x361   : > { %1587 = vrot.lane.b32.xlu0 %v4343_v31, %s3533_s29  ;;  %1605 = vrot.lane.b32.xlu1 %v4343_v31, %s6667_s30  ;;  %s4450_s29 = sld [smem:[#allocation6 + $0x42]] }
 0x362   : > { %v503_v4 = vand.u32 127, %v6665_v35 }
 0x363   : > { %v4405_v39 = vpop.permute.xlu0 %1329  ;;  %v4407_v51 = vpop.permute.xlu1 %1331 }
 0x364   : > { %6845 = vst [vmem:[#allocation81_spill] sm:$0xff] %v4405_v39  ;;  %6846 = vst [vmem:[#allocation82_spill] sm:$0xff] %v4407_v51 }
 0x365   : > { %1603 = vrot.lane.b32.xlu0 %v4339_v0, %s6667_s30  ;;  %1621 = vrot.lane.b32.xlu1 %v4339_v0, %s3535_s3  ;;  %s4468_s30 = sld [smem:[#allocation6 + $0x4]] }
 0x367   : > { %v4413_v32 = vpop.permute.xlu0 %1346  ;;  %v4415_v33 = vpop.permute.xlu1 %1348 }
 0x368   : > { %6847 = vst [vmem:[#allocation83_spill] sm:$0xff] %v4413_v32  ;;  %6848 = vst [vmem:[#allocation84_spill] sm:$0xff] %v4415_v33  ;;  %v504_v32 = vadd.s32 128, %v503_v4 }
 0x369   : > { %1619 = vrot.lane.b32.xlu0 %v4327_v29, %s3535_s3  ;;  %1637 = vrot.lane.b32.xlu1 %v4327_v29, %s3536_s4 }
 0x36a   : > { %v4448_v35 = vand.u32 15, %v504_v32 }
 0x36b   : > { %v4421_v39 = vpop.permute.xlu0 %1350  ;;  %v4423_v51 = vpop.permute.xlu1 %1365 }
 0x36c   : > { %6849 = vst [vmem:[#allocation85_spill] sm:$0xff] %v4421_v39  ;;  %6850 = vst [vmem:[#allocation86_spill] sm:$0xff] %v4423_v51  ;;  %v4440_v51 = vand.u32 15, %v503_v4  ;;  %vm540_vm5 = vcmp.ge.s32.totalorder %v4448_v35, 3  ;;  %vm6694_vm8 = vcmp.ge.s32.totalorder %v4448_v35, 2  ;;  %vm6697_vm11 = vcmp.ge.s32.totalorder %v4448_v35, 1 }
 0x36d   : > { %1623 = vrot.lane.b32.xlu0 %v4343_v31, %s3535_s3  ;;  %1641 = vrot.lane.b32.xlu1 %v4343_v31, %s3536_s4  ;;  %s4456_s3 = sld [smem:[#allocation6 + $0x49]]  ;;  %v546_v39 = vsel %vm540_vm5, %v3857_v3, 0.0  ;;  %v542_v3 = vstv %s4432_s28  ;;  %vm6699_vm14 = vcmp.lt.s32.totalorder %v4448_v35, 15  ;;  %vm534_vm2 = vcmp.lt.s32.totalorder %v4448_v35, 14 }
 0x36e   : > { %vm539_vm4 = vcmp.ge.s32.totalorder %v4440_v51, 3  ;;  %vm535_vm6 = vcmp.ge.s32.totalorder %v4440_v51, 2  ;;  %vm6696_vm9 = vcmp.ge.s32.totalorder %v4440_v51, 1  ;;  %s4518_s28 = sld [smem:[#allocation6 + $0xd]]  ;;  %vm529_vm12 = vcmp.lt.s32.totalorder %v4440_v51, 15 }
 0x36f   : > { %v4434_v33 = vpop.permute.xlu0 %1367  ;;  %v4436_v52 = vpop.permute.xlu1 %1369  ;;  %vm533_vm1 = vcmp.lt.s32.totalorder %v4440_v51, 14  ;;  %vm537_vm3 = vcmp.lt.s32.totalorder %v4440_v51, 13 }
 0x370   : > { %6851 = vst [vmem:[#allocation87_spill] sm:$0xff] %v4434_v33  ;;  %6852 = vst [vmem:[#allocation88_spill] sm:$0xff] %v4436_v52 }
 0x371   : > { %1639 = vrot.lane.b32.xlu0 %v4339_v0, %s3536_s4  ;;  %1675 = vrot.lane.b32.xlu1 %v4327_v29, %s3537_s16  ;;  %s4461_s4 = sld [smem:[#allocation6 + $0x2]] }
 0x373   : > { %v4452_v33 = vpop.permute.xlu0 %1384  ;;  %v4454_v52 = vpop.permute.xlu1 %1386 }
 0x374   : > { %6853 = vst [vmem:[#allocation89_spill] sm:$0xff] %v4452_v33  ;;  %6854 = vst [vmem:[#allocation90_spill] sm:$0xff] %v4454_v52  ;;  %v545_v33 = vsel %vm539_vm4, %v3852_v24, 0.0  ;;  %v547_v52 = vstv %s4430_s25  ;;  %s4493_s25 = sld [smem:[#allocation6 + $0x9]] }
 0x375   : > { %1677 = vrot.lane.b32.xlu0 %v4339_v0, %s3537_s16  ;;  %1679 = vrot.lane.b32.xlu1 %v4343_v31, %s3537_s16  ;;  %s4485_s16 = sld [smem:[#allocation6 + $0x7]]  ;;  %v549_v54 = vmul.f32 %v547_v52, %v546_v39 }
 0x377   : > { %v4472_v32 = vpop.permute.xlu0 %1388  ;;  %v4474_v4 = vpop.permute.xlu1 %1426  ;;  %v4530_v15 = vadd.f32 %v549_v54, %v542_v3 }
 0x378   : > { %6855 = vst [vmem:[#allocation91_spill] sm:$0xff] %v4472_v32  ;;  %6856 = vst [vmem:[#allocation92_spill] sm:$0xff] %v4474_v4  ;;  %v548_v4 = vmul.f32 %v547_v52, %v545_v33  ;;  %v1783_v33 = vstv %s4450_s29  ;;  %v568_v52 = vstv %s4458_s8  ;;  %s4555_s29 = sld [smem:[#allocation6 + $0x12]] }
 0x379   : > { %1693 = vrot.lane.b32.xlu0 %v4327_v29, %s3538_s17  ;;  %1695 = vrot.lane.b32.xlu1 %v4339_v0, %s3538_s17  ;;  %s4602_s8 = sld [smem:[#allocation6 + $0x15]] }
 0x37a   : > { %v4520_v39 = vadd.f32 %v548_v4, %v542_v3  ;;  %v4537_v4 = vmul.f32 %v1527_v49, %v4327_v29  ;;  %v4553_v3 = vmul.f32 %v1655_v53, %v4327_v29 }
 0x37b   : > { %v4495_v32 = vpop.permute.xlu0 %1424  ;;  %v4497_v24 = vpop.permute.xlu1 %1443 }
 0x37c   : > { %6857 = vst [vmem:[#allocation93_spill] sm:$0xff] %v4495_v32  ;;  %6858 = vst [vmem:[#allocation94_spill] sm:$0xff] %v4497_v24  ;;  %v4513_v32 = vstv %s4456_s3  ;;  %v562_v24 = vsel %vm6692_vm7, %v3978_v30, %v3984_v36  ;;  %v4558_v30 = vmul.f32 %v1527_v49, %v4339_v0  ;;  %s4598_s3 = sld [smem:[#allocation6 + $0x14]] }
 0x37d   : > { %1697 = vrot.lane.b32.xlu0 %v4343_v31, %s3538_s17  ;;  %1711 = vrot.lane.b32.xlu1 %v4327_v29, %s3539_s20  ;;  %6859 = vst [vmem:[#allocation95_spill] sm:$0xff] %v4513_v32  ;;  %s4524_s17 = sld [smem:[#allocation6 + $0xe]]  ;;  %6862 = vst [vmem:[#allocation98_spill] sm:$0xff] %v4553_v3  ;;  %v4568_v54 = vmul.f32 %v4513_v32, %v4327_v29  ;;  %v4577_v3 = vmul.f32 %v1655_v53, %v4339_v0 }
 0x37f   : > { %v4526_v48 = vpop.permute.xlu0 %1428  ;;  %v4528_v27 = vpop.permute.xlu1 %1447  ;;  %6864 = vst [vmem:[#allocation100_spill] sm:$0xff] %v4568_v54  ;;  %6867 = vst [vmem:[#allocation103_spill] sm:$0xff] %v4577_v3  ;;  %v566_v54 = vsel %vm535_vm6, %v562_v24, 0.0 }
 0x380   : > { %6860 = vst [vmem:[#allocation96_spill] sm:$0xff] %v4526_v48  ;;  %6861 = vst [vmem:[#allocation97_spill] sm:$0xff] %v4528_v27  ;;  %v563_v48 = vsel %vm6692_vm7, %v3984_v36, %v3986_v37  ;;  %v4561_v36 = vmul.f32 %v1527_v49, %v4343_v31  ;;  %v4564_v37 = vmul.f32 %v1783_v33, %v4327_v29  ;;  %vm6703_vm7 = vcmask 916480  }
 0x381   : > { %1713 = vrot.lane.b32.xlu0 %v4339_v0, %s3539_s20  ;;  %1715 = vrot.lane.b32.xlu1 %v4343_v31, %s3539_s20  ;;  %s4570_s20 = sld [smem:[#allocation6 + $0x13]]  ;;  %v4580_v49 = vmul.f32 %v1655_v53, %v4343_v31  ;;  %v567_v32 = vsel %vm6694_vm8, %v563_v48, 0.0  ;;  %v582_v53 = vsel %vm6693_vm10, %v3994_v41, %v4000_v42  ;;  %vm6702_vm8 = vcmask 908288  }
 0x382   : > { %6863 = vst [vmem:[#allocation99_spill] sm:$0xff] %v4564_v37  ;;  %v4583_v37 = vmul.f32 %v1783_v33, %v4339_v0  ;;  %v569_v24 = vmul.f32 %v568_v52, %v566_v54  ;;  %v621_v42 = vsel %vm6698_vm13, %v4008_v47, %v4002_v46  ;;  %v897_v48 = vstv %s4555_s29  ;;  %s5064_s29 = sld [smem:[#allocation6 + $0x20]] }
 0x383   : > { %v4572_v28 = vpop.permute.xlu0 %1445  ;;  %v4574_v27 = vpop.permute.xlu1 %1464  ;;  %6868 = vst [vmem:[#allocation104_spill] sm:$0xff] %v4580_v49  ;;  %v586_v49 = vsel %vm6697_vm11, %v582_v53, 0.0  ;;  %vm6706_vm11 = vcmask 883712   ;;  %v625_v53 = vsel %vm529_vm12, %v621_v42, 0.0 }
 0x384   : > { %6865 = vst [vmem:[#allocation101_spill] sm:$0xff] %v4572_v28  ;;  %6866 = vst [vmem:[#allocation102_spill] sm:$0xff] %v4574_v27  ;;  %v581_v27 = vsel %vm6693_vm10, %v3992_v38, %v3994_v41  ;;  %v4609_v38 = vmul.f32 %v1783_v33, %v4343_v31  ;;  %vm538_vm10 = vcmp.lt.s32.totalorder %v4448_v35, 13  ;;  %v570_v28 = vmul.f32 %v568_v52, %v567_v32 }
 0x385   : > { %6869 = vst [vmem:[#allocation105_spill] sm:$0xff] %v4583_v37  ;;  %1729 = vrot.lane.b32.xlu0 %v4327_v29, %s3540_s23  ;;  %1731 = vrot.lane.b32.xlu1 %v4339_v0, %s3540_s23  ;;  %v585_v37 = vsel %vm6696_vm9, %v581_v27, 0.0  ;;  %v622_v27 = vsel %vm6698_vm13, %v4002_v46, %v4016_v50  ;;  %vm6704_vm9 = vcmask 900096   ;;  %v857_v32 = vstv %s4546_s27  ;;  %s6952_s27 = smov 90  }
 0x386   : > { %6870 = vst [vmem:[#allocation106_spill] sm:$0xff] %v4609_v38  ;;  %v571_v46 = vadd.f32 %v569_v24, %v4520_v39  ;;  %v572_v50 = vadd.f32 %v570_v28, %v4530_v15  ;;  %v641_v15 = vsel %vm6700_vm15, %v4024_v9, %v4018_v8  ;;  %v659_v28 = vsel %vm6705_vm0, %v4032_v57, %v4026_v56 }
 0x387   : > { %v4619_v33 = vpop.permute.xlu0 %1462  ;;  %v601_v41 = vpop.permute.xlu1 %600  ;;  %v916_v52 = vstv %s4570_s20  ;;  %vm6713_vm13 = vcmask 875520   ;;  %v935_v39 = vstv %s4598_s3  ;;  %v660_v8 = vsel %vm6705_vm0, %v4026_v56, %v4040_v1  ;;  %s6960_s20 = smov 80   ;;  %s5116_s3 = sld [smem:[#allocation6 + $0x21]] }
 0x388   : > { %6871 = vst [vmem:[#allocation107_spill] sm:$0xff] %v4619_v33  ;;  %v6873_v33 = vstv %s4461_s4  ;;  %s4671_s4 = sld [smem:[#allocation6 + $0x16]]  ;;  %v645_v24 = vsel %vm534_vm2, %v641_v15, 0.0  ;;  %v678_v1 = vsel %vm6703_vm7, %v4034_v2, %v4048_v59  ;;  %v6878_v2 = vstv %s4470_s26 }
 0x389   : > { %1733 = vrot.lane.b32.xlu0 %v4343_v31, %s3540_s23  ;;  %1747 = vrot.lane.b32.xlu1 %v4327_v29, %s6872_s0  ;;  %v588_v38 = vmul.f32 %v6873_v33, %v585_v37  ;;  %v6874_v47 = vmov %v6873_v33  ;;  %v626_v37 = vsel %vm6699_vm14, %v622_v27, 0.0  ;;  %vm6701_vm14 = vcmask 1022976   ;;  %s4761_s26 = sld [smem:[#allocation6 + $0x19]] }
 0x38a   : > { %v589_v54 = vmul.f32 %v6874_v47, %v586_v49  ;;  %v640_v49 = vsel %vm6700_vm15, %v4010_v34, %v4024_v9  ;;  %v6875_v34 = vstv %s4468_s30  ;;  %vm6707_vm15 = vcmask 867328   ;;  %s4709_s30 = sld [smem:[#allocation6 + $0x17]] }
 0x38b   : > { %v4647_v3 = vpop.permute.xlu0 %1466  ;;  %v605_v26 = vpop.permute.xlu1 %604  ;;  %v628_v33 = vmul.f32 %v6875_v34, %v625_v53  ;;  %v590_v9 = vadd.f32 %v588_v38, %v571_v46  ;;  %v6876_v57 = vmov %v6875_v34  ;;  %v644_v47 = vsel %vm533_vm1, %v640_v49, 0.0 }
 0x38c   : > { %v591_v42 = vadd.f32 %v589_v54, %v572_v50  ;;  %v629_v27 = vmul.f32 %v6876_v57, %v626_v37  ;;  %v663_v54 = vsel %vm537_vm3, %v659_v28, 0.0  ;;  %v679_v38 = vsel %vm6703_vm7, %v4048_v59, %v4042_v58 }
 0x38d   : > { %1749 = vrot.lane.b32.xlu0 %v4339_v0, %s6872_s0  ;;  %1751 = vrot.lane.b32.xlu1 %v4343_v31, %s6872_s0  ;;  %v664_v37 = vsel %vm538_vm10, %v660_v8, 0.0  ;;  %v697_v49 = vsel %vm6702_vm8, %v4056_v61, %v4050_v60  ;;  %s6877_s0 = smov 94   ;;  %v647_v58 = vmul.f32 %v6878_v2, %v644_v47  ;;  %v6879_v59 = vmov %v6878_v2 }
 0x38e   : > { %v698_v8 = vsel %vm6702_vm8, %v4050_v60, %v4064_v63  ;;  %v682_v61 = vsel %vm539_vm4, %v678_v1, 0.0  ;;  %v701_v63 = vsel %vm535_vm6, %v697_v49, 0.0  ;;  %vm6708_vm8 = vcmask 777216  }
 0x38f   : > { %v603_v53 = vpop.permute.xlu0 %602  ;;  %v4681_v56 = vpop.permute.xlu1 %737  ;;  %vm6882_vm7 = vcmp.ge.s32.totalorder %v4448_v35, 2  ;;  %v756_v1 = vsel %vm6706_vm11, %v4074_v7, %v4080_v62  ;;  %v973_v49 = vstv %s4671_s4  ;;  %vm6889_vm0 = vcmp.ge.s32.totalorder %v4448_v35, 1  ;;  %s6973_s4 = smov 79  }
 0x390   : > { %v607_v46 = vsel %vm6701_vm14, %v601_v41, %v603_v53  ;;  %v608_v50 = vsel %vm6701_vm14, %v603_v53, %v605_v26  ;;  %v648_v26 = vmul.f32 %v6879_v59, %v645_v24  ;;  %v6880_v41 = vstv %s4480_s5  ;;  %s6883_s5 = smov 92  }
 0x391   : > { %v611_v15 = vadd.f32 %v607_v46, %v590_v9  ;;  %v612_v28 = vadd.f32 %v608_v50, %v591_v42  ;;  %1765 = vrot.lane.b32.xlu0 %v4327_v29, %s6877_s0  ;;  %1767 = vrot.lane.b32.xlu1 %v4339_v0, %s6877_s0  ;;  %v666_v34 = vmul.f32 %v6880_v41, %v663_v54  ;;  %v683_v42 = vsel %vm540_vm5, %v679_v38, 0.0 }
 0x392   : > { %vm6710_vm14 = vcmask 785408   ;;  %v6881_v54 = vmov %v6880_v41  ;;  %v716_v53 = vsel %vm6704_vm9, %v4058_v5, %v4072_v6  ;;  %v6884_v5 = vstv %s4485_s16  ;;  %s4783_s16 = sld [smem:[#allocation6 + $0x1a]] }
 0x393   : > { %v630_v9 = vadd.f32 %v628_v33, %v611_v15  ;;  %v631_v57 = vadd.f32 %v629_v27, %v612_v28  ;;  %v4715_v24 = vpop.permute.xlu0 %735  ;;  %v4717_v47 = vpop.permute.xlu1 %870  ;;  %v667_v60 = vmul.f32 %v6881_v54, %v664_v37  ;;  %v717_v33 = vsel %vm6704_vm9, %v4072_v6, %v4066_v43 }
 0x394   : > { %v702_v27 = vsel %vm6882_vm7, %v698_v8, 0.0  ;;  %v685_v50 = vmul.f32 %v6884_v5, %v682_v61  ;;  %v6885_v43 = vmov %v6884_v5  ;;  %v757_v37 = vsel %vm6706_vm11, %v4080_v62, %v4082_v10 }
 0x395   : > { %v649_v38 = vadd.f32 %v647_v58, %v630_v9  ;;  %v650_v46 = vadd.f32 %v648_v26, %v631_v57  ;;  %1769 = vrot.lane.b32.xlu0 %v4343_v31, %s6877_s0  ;;  %1805 = vrot.lane.b32.xlu1 %v4339_v0, %s6883_s5  ;;  %v686_v6 = vmul.f32 %v6885_v43, %v683_v42  ;;  %v6886_v15 = vstv %s4491_s7  ;;  %s6891_s7 = smov 91   ;;  %s4834_s0 = sld [smem:[#allocation6 + $0x1c]] }
 0x396   : > { %v704_v7 = vmul.f32 %v6886_v15, %v701_v63  ;;  %vm6887_vm7 = vcmp.ge.s32.totalorder %v4440_v51, 1  ;;  %vm6711_vm9 = vcmask 769024   ;;  %v6888_v41 = vmov %v6886_v15 }
 0x397   : > { %v720_v28 = vsel %vm6887_vm7, %v716_v53, 0.0  ;;  %v668_v2 = vadd.f32 %v666_v34, %v649_v38  ;;  %v669_v58 = vadd.f32 %v667_v60, %v650_v46  ;;  %v740_v59 = vpop.permute.xlu0 %739  ;;  %v4750_v26 = vpop.permute.xlu1 %874  ;;  %v705_v8 = vmul.f32 %v6888_v41, %v702_v27 }
 0x398   : > { %v721_v62 = vsel %vm6889_vm0, %v717_v33, 0.0  ;;  %v760_v10 = vsel %vm529_vm12, %v756_v1, 0.0  ;;  %v775_v61 = vsel %vm6713_vm13, %v4088_v11, %v4090_v12  ;;  %vm6712_vm7 = vcmask 752640  }
 0x399   : > { %vm6890_vm11 = vcmp.lt.s32.totalorder %v4448_v35, 15  ;;  %v776_v42 = vsel %vm6713_vm13, %v4090_v12, %v4096_v40  ;;  %v687_v9 = vadd.f32 %v685_v50, %v668_v2  ;;  %v688_v57 = vadd.f32 %v686_v6, %v669_v58  ;;  %1803 = vrot.lane.b32.xlu0 %v4327_v29, %s6883_s5  ;;  %1821 = vrot.lane.b32.xlu1 %v4327_v29, %s6891_s7 }
 0x39a   : > { %v761_v34 = vsel %vm6890_vm11, %v757_v37, 0.0  ;;  %v6892_v11 = vstv %s4493_s25  ;;  %v794_v60 = vsel %vm6707_vm15, %v4098_v13, %v4104_v44  ;;  %v795_v12 = vsel %vm6707_vm15, %v4104_v44, %v4106_v14  ;;  %s4797_s25 = sld [smem:[#allocation6 + $0x1b]] }
 0x39b   : > { %v723_v54 = vmul.f32 %v6892_v11, %v720_v28  ;;  %v992_v40 = vstv %s4709_s30  ;;  %v6893_v63 = vmov %v6892_v11  ;;  %vm6709_vm11 = vcmask 891904   ;;  %v4785_v1 = vpop.permute.xlu0 %872  ;;  %v4787_v38 = vpop.permute.xlu1 %1007  ;;  %s6981_s30 = smov 78  }
 0x39c   : > { %v724_v53 = vmul.f32 %v6893_v63, %v721_v62  ;;  %v706_v33 = vadd.f32 %v704_v7, %v687_v9  ;;  %v707_v27 = vadd.f32 %v705_v8, %v688_v57  ;;  %v6894_v46 = vstv %s4500_s19  ;;  %s6896_s19 = smov 125  }
 0x39d   : > { %v763_v5 = vmul.f32 %v6894_v46, %v760_v10  ;;  %v6895_v50 = vmov %v6894_v46  ;;  %v779_v43 = vsel %vm533_vm1, %v775_v61, 0.0  ;;  %v780_v44 = vsel %vm534_vm2, %v776_v42, 0.0  ;;  %1807 = vrot.lane.b32.xlu0 %v4343_v31, %s6883_s5  ;;  %1534 = vrot.lane.b32.xlu1 %v4537_v4, %s6896_s19  ;;  %s5200_s5 = sld [smem:[#allocation6 + $0x23]] }
 0x39e   : > { %v764_v13 = vmul.f32 %v6895_v50, %v761_v34  ;;  %vm6714_vm0 = vcmask 744448   ;;  %v798_v14 = vsel %vm537_vm3, %v794_v60, 0.0  ;;  %v799_v6 = vsel %vm538_vm10, %v795_v12, 0.0 }
 0x39f   : > { %vm6719_vm15 = vcmask 736256   ;;  %v725_v37 = vadd.f32 %v723_v54, %v706_v33  ;;  %v726_v15 = vadd.f32 %v724_v53, %v707_v27  ;;  %v813_v7 = vsel %vm6710_vm14, %v4112_v16, %v4114_v45  ;;  %v4824_v62 = vpop.permute.xlu0 %1005 }
 0x3a0   : > { %v814_v28 = vsel %vm6710_vm14, %v4114_v45, %v4120_v55  ;;  %v742_v2 = vsel %vm6709_vm11, %v4715_v24, %v4681_v56  ;;  %v743_v58 = vsel %vm6709_vm11, %v4681_v56, %v740_v59  ;;  %v832_v4 = vsel %vm6708_vm8, %v4122_v17, %v4128_v18  ;;  %v4826_v45 = vpop.permute.xlu1 %1140 }
 0x3a1   : > { %v833_v41 = vsel %vm6708_vm8, %v4128_v18, %v4130_v19  ;;  %v746_v16 = vadd.f32 %v742_v2, %v725_v37  ;;  %v747_v8 = vadd.f32 %v743_v58, %v726_v15  ;;  %v6897_v55 = vstv %s4505_s14  ;;  %1536 = vrot.lane.b32.xlu0 %v4558_v30, %s6896_s19  ;;  %1538 = vrot.lane.b32.xlu1 %v4561_v36, %s6896_s19  ;;  %s6906_s14 = smov 109   ;;  %s6995_s19 = smov 76  }
 0x3a2   : > { %v782_v10 = vmul.f32 %v6897_v55, %v779_v43  ;;  %v6898_v24 = vmov %v6897_v55  ;;  %v6899_v34 = vstv %s4518_s28  ;;  %v1032_v59 = vstv %s4761_s26  ;;  %s6919_s28 = smov 93   ;;  %s5225_s26 = sld [smem:[#allocation6 + $0x24]] }
 0x3a3   : > { %v783_v61 = vmul.f32 %v6898_v24, %v780_v44  ;;  %v801_v56 = vmul.f32 %v6899_v34, %v798_v14  ;;  %v6900_v17 = vmov %v6899_v34  ;;  %v817_v18 = vsel %vm539_vm4, %v813_v7, 0.0  ;;  %v4860_v53 = vpop.permute.xlu0 %1009  ;;  %v6907_v14 = vld [vmem:[#allocation98_spill] sm:$0xff]  ;;  %v6915_v34 = vld [vmem:[#allocation24_spill] sm:$0xff] }
 0x3a4   : > { %v802_v42 = vmul.f32 %v6900_v17, %v799_v6  ;;  %vm6715_vm8 = vcmask 654336   ;;  %v765_v19 = vadd.f32 %v763_v5, %v746_v16  ;;  %v766_v9 = vadd.f32 %v764_v13, %v747_v8  ;;  %v4862_v33 = vpop.permute.xlu1 %1144  ;;  %v6908_v6 = vld [vmem:[#allocation103_spill] sm:$0xff]  ;;  %v6916_v17 = vld [vmem:[#allocation26_spill] sm:$0xff] }
 0x3a5   : > { %v818_v57 = vsel %vm540_vm5, %v814_v28, 0.0  ;;  %v836_v11 = vsel %vm535_vm6, %v832_v4, 0.0  ;;  %vm6901_vm11 = vcmp.ge.s32.totalorder %v4448_v35, 2  ;;  %v851_v60 = vsel %vm6711_vm9, %v4136_v20, %v4138_v21  ;;  %v6903_v20 = vld [vmem:[#allocation23_spill] sm:$0xff]  ;;  %1662 = vrot.lane.b32.xlu0 %v6907_v14, %s6906_s14  ;;  %1664 = vrot.lane.b32.xlu1 %v6908_v6, %s6906_s14  ;;  %v6913_v4 = vld [vmem:[#allocation25_spill] sm:$0xff] }
 0x3a6   : > { %v837_v54 = vsel %vm6901_vm11, %v833_v41, 0.0  ;;  %vm6716_vm14 = vcmask 646144   ;;  %v852_v30 = vsel %vm6711_vm9, %v4138_v21, %v4144_v22  ;;  %v891_v36 = vsel %vm6712_vm7, %v4152_v25, %v4146_v23  ;;  %v6914_v41 = vld [vmem:[#allocation22_spill] sm:$0xff] }
 0x3a7   : > { %v784_v12 = vadd.f32 %v782_v10, %v765_v19  ;;  %v785_v63 = vadd.f32 %v783_v61, %v766_v9  ;;  %v6902_v27 = vstv %s4524_s17  ;;  %v892_v5 = vsel %vm6712_vm7, %v4146_v23, %v6903_v20  ;;  %v4892_v10 = vpop.permute.xlu0 %1142  ;;  %s4934_s17 = sld [smem:[#allocation6 + $0x1d]] }
 0x3a8   : > { %v820_v46 = vmul.f32 %v6902_v27, %v817_v18  ;;  %v1051_v50 = vstv %s4783_s16  ;;  %v1070_v21 = vstv %s4797_s25  ;;  %v6904_v22 = vmov %v6902_v27  ;;  %v4894_v24 = vpop.permute.xlu1 %1277  ;;  %s6990_s16 = smov 77   ;;  %s5249_s25 = sld [smem:[#allocation6 + $0x25]] }
 0x3a9   : > { %v821_v13 = vmul.f32 %v6904_v22, %v818_v57  ;;  %vm6905_vm11 = vcmp.ge.s32.totalorder %v4440_v51, 1  ;;  %vm6717_vm9 = vcmask 637952   ;;  %v803_v43 = vadd.f32 %v801_v56, %v784_v12 }
 0x3aa   : > { %v855_v25 = vsel %vm6905_vm11, %v851_v60, 0.0  ;;  %v804_v44 = vadd.f32 %v802_v42, %v785_v63  ;;  %v6909_v37 = vstv %s4534_s24  ;;  %vm6911_vm7 = vcmp.ge.s32.totalorder %v4448_v35, 1  ;;  %v6917_v42 = vld [vmem:[#allocation27_spill] sm:$0xff]  ;;  %v6921_v63 = vld [vmem:[#allocation29_spill] sm:$0xff]  ;;  %s4984_s24 = sld [smem:[#allocation6 + $0x1e]] }
 0x3ab   : > { %v839_v23 = vmul.f32 %v6909_v37, %v836_v11  ;;  %v6910_v15 = vmov %v6909_v37  ;;  %v856_v28 = vsel %vm6911_vm7, %v852_v30, 0.0  ;;  %v895_v2 = vsel %vm529_vm12, %v891_v36, 0.0  ;;  %v6920_v60 = vld [vmem:[#allocation99_spill] sm:$0xff] }
 0x3ac   : > { %v840_v7 = vmul.f32 %v6910_v15, %v837_v54  ;;  %vm1025_vm11 = vcmask 621568   ;;  %vm6912_vm13 = vcmp.lt.s32.totalorder %v4448_v35, 15  ;;  %v910_v16 = vsel %vm6714_vm0, %v6914_v41, %v6913_v4  ;;  %v6918_v54 = vld [vmem:[#allocation104_spill] sm:$0xff]  ;;  %1790 = vrot.lane.b32.xlu1 %v6920_v60, %s6919_s28  ;;  %v4926_v22 = vpop.permute.xlu1 %1410  ;;  %v6928_v41 = vld [vmem:[#allocation106_spill] sm:$0xff] }
 0x3ad   : > { %v896_v58 = vsel %vm6912_vm13, %v892_v5, 0.0  ;;  %v822_v8 = vadd.f32 %v820_v46, %v803_v43  ;;  %v823_v55 = vadd.f32 %v821_v13, %v804_v44  ;;  %v858_v61 = vmul.f32 %v857_v32, %v855_v25  ;;  %1666 = vrot.lane.b32.xlu0 %v6918_v54, %s6906_s14  ;;  %v6922_v13 = vld [vmem:[#allocation31_spill] sm:$0xff]  ;;  %v6923_v25 = vld [vmem:[#allocation28_spill] sm:$0xff]  ;;  %v6924_v44 = vld [vmem:[#allocation30_spill] sm:$0xff]  ;;  %s5284_s14 = sld [smem:[#allocation6 + $0x27]] }
 0x3ae   : > { %v911_v56 = vsel %vm6714_vm0, %v6913_v4, %v6915_v34  ;;  %v929_v18 = vsel %vm6719_vm15, %v6917_v42, %v6916_v17  ;;  %v1089_v19 = vstv %s4834_s0  ;;  %v859_v9 = vmul.f32 %v857_v32, %v856_v28  ;;  %v6925_v15 = vld [vmem:[#allocation32_spill] sm:$0xff]  ;;  %v6927_v4 = vld [vmem:[#allocation105_spill] sm:$0xff]  ;;  %s5271_s0 = sld [smem:[#allocation6 + $0x6d]] }
 0x3af   : > { %vm6718_vm13 = vcmask 760832   ;;  %v841_v57 = vadd.f32 %v839_v23, %v822_v8  ;;  %v842_v11 = vadd.f32 %v840_v7, %v823_v55  ;;  %v898_v30 = vmul.f32 %v897_v48, %v895_v2  ;;  %v6926_v7 = vld [vmem:[#allocation33_spill] sm:$0xff]  ;;  %v6935_v54 = vld [vmem:[#allocation36_spill] sm:$0xff] }
 0x3b0   : > { %v899_v36 = vmul.f32 %v897_v48, %v896_v58  ;;  %v914_v12 = vsel %vm533_vm1, %v910_v16, 0.0  ;;  %v930_v32 = vsel %vm6719_vm15, %v6916_v17, %v6921_v63  ;;  %vm1044_vm7 = vcmask 613376   ;;  %v4924_v48 = vpop.permute.xlu0 %1275  ;;  %1794 = vrot.lane.b32.xlu1 %v6928_v41, %s6919_s28  ;;  %v6929_v16 = vld [vmem:[#allocation35_spill] sm:$0xff]  ;;  %v4970_v17 = vpop.permute.xlu1 %1414  ;;  %v6951_v41 = vld [vmem:[#allocation41_spill] sm:$0xff] }
 0x3b1   : > { %v915_v27 = vsel %vm534_vm2, %v911_v56, 0.0  ;;  %v933_v46 = vsel %vm537_vm3, %v929_v18, 0.0  ;;  %vm6722_vm0 = vcmask 605184   ;;  %v860_v20 = vadd.f32 %v858_v61, %v841_v57  ;;  %1792 = vrot.lane.b32.xlu0 %v6927_v4, %s6919_s28  ;;  %v6934_v57 = vld [vmem:[#allocation34_spill] sm:$0xff]  ;;  %s7003_s28 = smov 75  }
 0x3b2   : > { %v861_v5 = vadd.f32 %v859_v9, %v842_v11  ;;  %v948_v43 = vsel %vm6715_vm8, %v6923_v25, %v6922_v13  ;;  %v949_v14 = vsel %vm6715_vm8, %v6922_v13, %v6924_v44  ;;  %v877_v6 = vsel %vm6718_vm13, %v4717_v47, %v4785_v1  ;;  %v6933_v9 = vld [vmem:[#allocation37_spill] sm:$0xff]  ;;  %v6942_v13 = vld [vmem:[#allocation40_spill] sm:$0xff]  ;;  %v6950_v4 = vld [vmem:[#allocation42_spill] sm:$0xff] }
 0x3b3   : > { %v878_v37 = vsel %vm6718_vm13, %v4785_v1, %v4750_v26  ;;  %v934_v23 = vsel %vm538_vm10, %v930_v32, 0.0  ;;  %v967_v28 = vsel %vm6716_vm14, %v6926_v7, %v6925_v15  ;;  %v881_v2 = vadd.f32 %v877_v6, %v860_v20 }
 0x3b4   : > { %v882_v58 = vadd.f32 %v878_v37, %v861_v5  ;;  %v917_v47 = vmul.f32 %v916_v52, %v914_v12  ;;  %v918_v26 = vmul.f32 %v916_v52, %v915_v27  ;;  %v936_v1 = vmul.f32 %v935_v39, %v933_v46  ;;  %v4968_v52 = vpop.permute.xlu0 %1279  ;;  %1825 = vrot.lane.b32.xlu1 %v4343_v31, %s6891_s7 }
 0x3b5   : > { %v968_v8 = vsel %vm6716_vm14, %v6925_v15, %v6929_v16  ;;  %v4962_v55 = vsel %vm539_vm4, %v948_v43, 0.0  ;;  %v4966_v61 = vsel %vm540_vm5, %v949_v14, 0.0  ;;  %vm6721_vm8 = vcmask 523264   ;;  %1823 = vrot.lane.b32.xlu0 %v4339_v0, %s6891_s7  ;;  %s5239_s7 = sld [smem:[#allocation6 + $0x7d]] }
 0x3b6   : > { %6930 = vst [vmem:[#allocation23_spill] sm:$0xff] %v4962_v55  ;;  %6931 = vst [vmem:[#allocation98_spill] sm:$0xff] %v4966_v61  ;;  %v900_v34 = vadd.f32 %v898_v30, %v881_v2  ;;  %v901_v56 = vadd.f32 %v899_v36, %v882_v58  ;;  %v937_v42 = vmul.f32 %v935_v39, %v934_v23  ;;  %v4976_v18 = vsel %vm535_vm6, %v967_v28, 0.0  ;;  %v6938_v36 = vld [vmem:[#allocation39_spill] sm:$0xff]  ;;  %v6939_v39 = vld [vmem:[#allocation38_spill] sm:$0xff]  ;;  %v5016_v23 = vpop.permute.xlu1 %1491 }
 0x3b7   : > { %6932 = vst [vmem:[#allocation103_spill] sm:$0xff] %v4976_v18  ;;  %v986_v11 = vsel %vm6717_vm9, %v6934_v57, %v6933_v9  ;;  %v987_v60 = vsel %vm6717_vm9, %v6933_v9, %v6935_v54  ;;  %vm6936_vm14 = vcmp.ge.s32.totalorder %v4448_v35, 2  ;;  %v1026_v12 = vsel %vm1025_vm11, %v6939_v39, %v6938_v36  ;;  %v6956_v57 = vld [vmem:[#allocation46_spill] sm:$0xff] }
 0x3b8   : > { %v4988_v30 = vsel %vm6936_vm14, %v968_v8, 0.0  ;;  %v919_v63 = vadd.f32 %v917_v47, %v900_v34  ;;  %v920_v32 = vadd.f32 %v918_v26, %v901_v56  ;;  %v6940_v27 = vstv %s4602_s8  ;;  %v5014_v37 = vpop.permute.xlu0 %1412  ;;  %1841 = vrot.lane.b32.xlu1 %v4339_v0, %s6952_s27  ;;  %v6954_v8 = vld [vmem:[#allocation45_spill] sm:$0xff]  ;;  %v6955_v34 = vld [vmem:[#allocation44_spill] sm:$0xff]  ;;  %s5137_s8 = sld [smem:[#allocation6 + $0x22]] }
 0x3b9   : > { %6937 = vst [vmem:[#allocation25_spill] sm:$0xff] %v4988_v30  ;;  %v955_v46 = vmul.f32 %v6940_v27, %v4962_v55  ;;  %v6941_v20 = vmov %v6940_v27  ;;  %v1027_v25 = vsel %vm1025_vm11, %v6938_v36, %v6942_v13  ;;  %vm6720_vm14 = vcmask 515072   ;;  %1839 = vrot.lane.b32.xlu0 %v4327_v29, %s6952_s27  ;;  %v6962_v13 = vld [vmem:[#allocation48_spill] sm:$0xff] }
 0x3ba   : > { %v956_v5 = vmul.f32 %v6941_v20, %v4966_v61  ;;  %vm6943_vm9 = vcmp.ge.s32.totalorder %v4440_v51, 1  ;;  %vm6945_vm13 = vcmp.ge.s32.totalorder %v4448_v35, 1  ;;  %vm6723_vm15 = vcmask 506880   ;;  %v5057_v39 = vpop.permute.xlu1 %1495 }
 0x3bb   : > { %v5008_v43 = vsel %vm6943_vm9, %v986_v11, 0.0  ;;  %v5012_v44 = vsel %vm6945_vm13, %v987_v60, 0.0  ;;  %v938_v14 = vadd.f32 %v936_v1, %v919_v63  ;;  %v939_v6 = vadd.f32 %v937_v42, %v920_v32 }
 0x3bc   : > { %6944 = vst [vmem:[#allocation22_spill] sm:$0xff] %v5008_v43  ;;  %6946 = vst [vmem:[#allocation24_spill] sm:$0xff] %v5012_v44  ;;  %v974_v15 = vmul.f32 %v973_v49, %v4976_v18  ;;  %v975_v7 = vmul.f32 %v973_v49, %v4988_v30  ;;  %v5026_v28 = vsel %vm529_vm12, %v1026_v12, 0.0  ;;  %v1108_v2 = vstv %s4934_s17  ;;  %v6953_v49 = vld [vmem:[#allocation43_spill] sm:$0xff]  ;;  %v5055_v36 = vpop.permute.xlu0 %1493  ;;  %1857 = vrot.lane.b32.xlu1 %v4327_v29, %s6960_s20  ;;  %s5303_s17 = sld [smem:[#allocation6 + $0x84]] }
 0x3bd   : > { %6947 = vst [vmem:[#allocation26_spill] sm:$0xff] %v5026_v28  ;;  %vm6948_vm9 = vcmp.lt.s32.totalorder %v4448_v35, 15  ;;  %v1045_v47 = vsel %vm1044_vm7, %v6951_v41, %v6950_v4  ;;  %v957_v26 = vadd.f32 %v955_v46, %v938_v14  ;;  %v958_v1 = vadd.f32 %v956_v5, %v939_v6  ;;  %1843 = vrot.lane.b32.xlu0 %v4343_v31, %s6952_s27  ;;  %v6965_v41 = vld [vmem:[#allocation51_spill] sm:$0xff]  ;;  %s5328_s27 = sld [smem:[#allocation6 + $0x29]] }
 0x3be   : > { %v5031_v58 = vsel %vm6948_vm9, %v1027_v25, 0.0  ;;  %v1046_v16 = vsel %vm1044_vm7, %v6950_v4, %v6953_v49  ;;  %v1064_v56 = vsel %vm6722_vm0, %v6955_v34, %v6954_v8  ;;  %v993_v42 = vmul.f32 %v992_v40, %v5008_v43  ;;  %v6963_v25 = vld [vmem:[#allocation47_spill] sm:$0xff] }
 0x3bf   : > { %6949 = vst [vmem:[#allocation27_spill] sm:$0xff] %v5031_v58  ;;  %v994_v9 = vmul.f32 %v992_v40, %v5012_v44  ;;  %v1065_v11 = vsel %vm6722_vm0, %v6954_v8, %v6956_v57  ;;  %vm1011_vm13 = vcmask 629760   ;;  %v976_v54 = vadd.f32 %v974_v15, %v957_v26  ;;  %v5105_v8 = vpop.permute.xlu1 %1511 }
 0x3c0   : > { %v977_v60 = vadd.f32 %v975_v7, %v958_v1  ;;  %v5061_v12 = vsel %vm533_vm1, %v1045_v47, 0.0  ;;  %v1127_v63 = vstv %s4984_s24  ;;  %v1033_v40 = vmul.f32 %v1032_v59, %v5026_v28  ;;  %v6964_v7 = vld [vmem:[#allocation49_spill] sm:$0xff]  ;;  %v6966_v47 = vld [vmem:[#allocation50_spill] sm:$0xff]  ;;  %1861 = vrot.lane.b32.xlu1 %v4343_v31, %s6960_s20  ;;  %s5305_s24 = sld [smem:[#allocation6 + $0x28]] }
 0x3c1   : > { %6957 = vst [vmem:[#allocation104_spill] sm:$0xff] %v5061_v12  ;;  %v1034_v32 = vmul.f32 %v1032_v59, %v5031_v58  ;;  %v5074_v27 = vsel %vm534_vm2, %v1046_v16, 0.0  ;;  %v5078_v46 = vsel %vm537_vm3, %v1064_v56, 0.0  ;;  %v995_v20 = vadd.f32 %v993_v42, %v976_v54  ;;  %v5103_v16 = vpop.permute.xlu0 %1509  ;;  %1859 = vrot.lane.b32.xlu0 %v4339_v0, %s6960_s20 }
 0x3c2   : > { %6958 = vst [vmem:[#allocation99_spill] sm:$0xff] %v5074_v27  ;;  %6959 = vst [vmem:[#allocation29_spill] sm:$0xff] %v5078_v46  ;;  %v996_v5 = vadd.f32 %v994_v9, %v977_v60  ;;  %v5086_v59 = vsel %vm538_vm10, %v1065_v11, 0.0  ;;  %v1083_v14 = vsel %vm6721_vm8, %v6963_v25, %v6962_v13  ;;  %v1012_v6 = vsel %vm1011_vm13, %v4824_v62, %v4787_v38  ;;  %v6968_v60 = vld [vmem:[#allocation54_spill] sm:$0xff] }
 0x3c3   : > { %6961 = vst [vmem:[#allocation31_spill] sm:$0xff] %v5086_v59  ;;  %v1013_v15 = vsel %vm1011_vm13, %v4787_v38, %v4860_v53  ;;  %v1084_v4 = vsel %vm6721_vm8, %v6962_v13, %v6964_v7  ;;  %v1102_v26 = vsel %vm6720_vm14, %v6966_v47, %v6965_v41  ;;  %v1016_v1 = vadd.f32 %v1012_v6, %v995_v20  ;;  %v6967_v53 = vld [vmem:[#allocation52_spill] sm:$0xff]  ;;  %v5146_v6 = vpop.permute.xlu1 %1549 }
 0x3c4   : > { %v1017_v49 = vadd.f32 %v1013_v15, %v996_v5  ;;  %v1052_v62 = vmul.f32 %v1051_v50, %v5061_v12  ;;  %v1053_v38 = vmul.f32 %v1051_v50, %v5074_v27  ;;  %v1103_v34 = vsel %vm6720_vm14, %v6965_v41, %v6967_v53  ;;  %v6971_v5 = vld [vmem:[#allocation55_spill] sm:$0xff]  ;;  %1877 = vrot.lane.b32.xlu1 %v4339_v0, %s6973_s4 }
 0x3c5   : > { %vm6729_vm9 = vcmask 490496   ;;  %v1071_v56 = vmul.f32 %v1070_v21, %v5078_v46  ;;  %v1087_v42 = vsel %vm539_vm4, %v1083_v14, 0.0  ;;  %v1035_v9 = vadd.f32 %v1033_v40, %v1016_v1  ;;  %v6969_v40 = vld [vmem:[#allocation53_spill] sm:$0xff]  ;;  %v5144_v14 = vpop.permute.xlu0 %1513  ;;  %1875 = vrot.lane.b32.xlu0 %v4327_v29, %s6973_s4 }
 0x3c6   : > { %v1036_v57 = vadd.f32 %v1034_v32, %v1017_v49  ;;  %v1072_v50 = vmul.f32 %v1070_v21, %v5086_v59  ;;  %v1088_v11 = vsel %vm540_vm5, %v1084_v4, 0.0  ;;  %v1106_v54 = vsel %vm535_vm6, %v1102_v26, 0.0 }
 0x3c7   : > { %v1121_v32 = vsel %vm6723_vm15, %v6969_v40, %v6968_v60  ;;  %vm6970_vm14 = vcmp.ge.s32.totalorder %v4448_v35, 2  ;;  %v1122_v21 = vsel %vm6723_vm15, %v6968_v60, %v6971_v5  ;;  %v1054_v13 = vadd.f32 %v1052_v62, %v1035_v9  ;;  %v6975_v62 = vld [vmem:[#allocation56_spill] sm:$0xff]  ;;  %v6979_v9 = vld [vmem:[#allocation58_spill] sm:$0xff] }
 0x3c8   : > { %v1107_v20 = vsel %vm6970_vm14, %v1103_v34, 0.0  ;;  %v1055_v25 = vadd.f32 %v1053_v38, %v1036_v57  ;;  %v1090_v15 = vmul.f32 %v1089_v19, %v1087_v42  ;;  %v1167_v7 = vstv %s5064_s29  ;;  %v6976_v38 = vld [vmem:[#allocation57_spill] sm:$0xff]  ;;  %v6977_v34 = vld [vmem:[#allocation59_spill] sm:$0xff]  ;;  %1893 = vrot.lane.b32.xlu1 %v4327_v29, %s6981_s30  ;;  %s5351_s29 = sld [smem:[#allocation6 + $0x63]] }
 0x3c9   : > { %vm6728_vm8 = vcmask 482304   ;;  %vm6724_vm0 = vcmask 474112   ;;  %v1091_v4 = vmul.f32 %v1089_v19, %v1088_v11  ;;  %vm6972_vm14 = vcmp.ge.s32.totalorder %v4440_v51, 1  ;;  %v6978_v42 = vld [vmem:[#allocation61_spill] sm:$0xff]  ;;  %1879 = vrot.lane.b32.xlu0 %v4343_v31, %s6973_s4  ;;  %s5400_s4 = sld [smem:[#allocation6 + $0x2c]] }
 0x3ca   : > { %v1125_v41 = vsel %vm6972_vm14, %v1121_v32, 0.0  ;;  %v1073_v47 = vadd.f32 %v1071_v56, %v1054_v13  ;;  %v1074_v26 = vadd.f32 %v1072_v50, %v1055_v25  ;;  %v1109_v1 = vmul.f32 %v1108_v2, %v1106_v54  ;;  %v5174_v54 = vpop.permute.xlu0 %1547  ;;  %v6980_v32 = vld [vmem:[#allocation60_spill] sm:$0xff] }
 0x3cb   : > { %v1110_v49 = vmul.f32 %v1108_v2, %v1107_v20  ;;  %vm6974_vm15 = vcmp.ge.s32.totalorder %v4448_v35, 1  ;;  %v1161_v53 = vsel %vm6729_vm9, %v6976_v38, %v6975_v62  ;;  %v1162_v56 = vsel %vm6729_vm9, %v6975_v62, %v6977_v34  ;;  %v5176_v2 = vpop.permute.xlu1 %1565 }
 0x3cc   : > { %v1126_v19 = vsel %vm6974_vm15, %v1122_v21, 0.0  ;;  %v1180_v57 = vsel %vm6728_vm8, %v6979_v9, %v6978_v42  ;;  %v1092_v50 = vadd.f32 %v1090_v15, %v1073_v47  ;;  %v1093_v11 = vadd.f32 %v1091_v4, %v1074_v26  ;;  %v6983_v47 = vld [vmem:[#allocation62_spill] sm:$0xff]  ;;  %1897 = vrot.lane.b32.xlu1 %v4343_v31, %s6981_s30 }
 0x3cd   : > { %v1128_v60 = vmul.f32 %v1127_v63, %v1125_v41  ;;  %v1186_v40 = vstv %s5116_s3  ;;  %v1181_v20 = vsel %vm6728_vm8, %v6978_v42, %v6980_v32  ;;  %vm6761_vm15 = vcmask 498688   ;;  %1895 = vrot.lane.b32.xlu0 %v4339_v0, %s6981_s30  ;;  %s5358_s3 = sld [smem:[#allocation6 + $0x2a]] }
 0x3ce   : > { %v1129_v5 = vmul.f32 %v1127_v63, %v1126_v19  ;;  %v1165_v21 = vsel %vm529_vm12, %v1161_v53, 0.0  ;;  %v1111_v13 = vadd.f32 %v1109_v1, %v1092_v50  ;;  %v1112_v25 = vadd.f32 %v1110_v49, %v1093_v11  ;;  %v6984_v63 = vld [vmem:[#allocation63_spill] sm:$0xff]  ;;  %v6985_v49 = vld [vmem:[#allocation65_spill] sm:$0xff]  ;;  %v5207_v53 = vpop.permute.xlu0 %1551  ;;  %s3236_s30 = sld [smem:[#allocation6 + $0x72]] }
 0x3cf   : > { %vm6982_vm14 = vcmp.lt.s32.totalorder %v4448_v35, 15  ;;  %v1184_v4 = vsel %vm533_vm1, %v1180_v57, 0.0  ;;  %v1205_v41 = vstv %s5137_s8  ;;  %v1199_v26 = vsel %vm6724_vm0, %v6984_v63, %v6983_v47  ;;  %v5209_v34 = vpop.permute.xlu1 %1569  ;;  %s5379_s8 = sld [smem:[#allocation6 + $0x2b]] }
 0x3d0   : > { %v1166_v15 = vsel %vm6982_vm14, %v1162_v56, 0.0  ;;  %v1185_v1 = vsel %vm534_vm2, %v1181_v20, 0.0  ;;  %v1200_v19 = vsel %vm6724_vm0, %v6983_v47, %v6985_v49  ;;  %v1130_v62 = vadd.f32 %v1128_v60, %v1111_v13  ;;  %v6989_v13 = vld [vmem:[#allocation66_spill] sm:$0xff] }
 0x3d1   : > { %v1131_v38 = vadd.f32 %v1129_v5, %v1112_v25  ;;  %v1168_v56 = vmul.f32 %v1167_v7, %v1165_v21  ;;  %vm6725_vm14 = vcmask 392192   ;;  %v1147_v42 = vsel %vm6761_vm15, %v4826_v45, %v4892_v10  ;;  %v6988_v5 = vld [vmem:[#allocation64_spill] sm:$0xff] }
 0x3d2   : > { %v1148_v9 = vsel %vm6761_vm15, %v4892_v10, %v4862_v33  ;;  %v1169_v57 = vmul.f32 %v1167_v7, %v1166_v15  ;;  %v1203_v50 = vsel %vm537_vm3, %v1199_v26, 0.0  ;;  %v1151_v11 = vadd.f32 %v1147_v42, %v1130_v62  ;;  %v6986_v33 = vld [vmem:[#allocation95_spill] sm:$0xff]  ;;  %v6992_v42 = vld [vmem:[#allocation68_spill] sm:$0xff] }
 0x3d3   : > { %v1152_v60 = vadd.f32 %v1148_v9, %v1131_v38  ;;  %v1187_v32 = vmul.f32 %v1186_v40, %v1184_v4  ;;  %v1188_v20 = vmul.f32 %v1186_v40, %v1185_v1  ;;  %v1204_v45 = vsel %vm538_vm10, %v1200_v19, 0.0  ;;  %v6987_v7 = vld [vmem:[#allocation67_spill] sm:$0xff]  ;;  %v5235_v40 = vpop.permute.xlu0 %1567  ;;  %v5237_v47 = vpop.permute.xlu1 %1585  ;;  %v6991_v19 = vld [vmem:[#allocation100_spill] sm:$0xff]  ;;  %v6993_v9 = vld [vmem:[#allocation69_spill] sm:$0xff] }
 0x3d4   : > { %v1913_v10 = vmul.f32 %v6986_v33, %v4339_v0  ;;  %v1218_v21 = vsel %vm6725_vm14, %v6988_v5, %v6987_v7  ;;  %v1219_v25 = vsel %vm6725_vm14, %v6987_v7, %v6989_v13  ;;  %v1170_v15 = vadd.f32 %v1168_v56, %v1151_v11  ;;  %1918 = vrot.lane.b32.xlu0 %v6991_v19, %s6990_s16  ;;  %v6997_v13 = vld [vmem:[#allocation73_spill] sm:$0xff] }
 0x3d5   : > { %v1171_v4 = vadd.f32 %v1169_v57, %v1152_v60  ;;  %v1206_v63 = vmul.f32 %v1205_v41, %v1203_v50  ;;  %vm6726_vm0 = vcmask 384000   ;;  %v1207_v26 = vmul.f32 %v1205_v41, %v1204_v45  ;;  %v6994_v50 = vld [vmem:[#allocation71_spill] sm:$0xff] }
 0x3d6   : > { %v1189_v1 = vadd.f32 %v1187_v32, %v1170_v15  ;;  %1920 = vrot.lane.b32.xlu1 %v1913_v10, %s6990_s16  ;;  %v1224_v62 = vstv %s5200_s5  ;;  %v1222_v38 = vsel %vm539_vm4, %v1218_v21, 0.0  ;;  %v1223_v56 = vsel %vm540_vm5, %v1219_v25, 0.0  ;;  %v6998_v25 = vld [vmem:[#allocation70_spill] sm:$0xff]  ;;  %s5433_s5 = sld [smem:[#allocation6 + $0x66]] }
 0x3d7   : > { %v1190_v49 = vadd.f32 %v1188_v20, %v1171_v4  ;;  %v1914_v41 = vmul.f32 %v6986_v33, %v4343_v31  ;;  %v1237_v57 = vsel %vm6726_vm0, %v6993_v9, %v6992_v42  ;;  %v1238_v11 = vsel %vm6726_vm0, %v6992_v42, %v6994_v50  ;;  %v5259_v20 = vpop.permute.xlu0 %1583  ;;  %v5261_v45 = vpop.permute.xlu1 %1601  ;;  %v6999_v4 = vld [vmem:[#allocation72_spill] sm:$0xff] }
 0x3d8   : > { %v1208_v60 = vadd.f32 %v1206_v63, %v1189_v1  ;;  %vm6727_vm14 = vcmask 375808   ;;  %v1225_v10 = vmul.f32 %v1224_v62, %v1222_v38  ;;  %v1226_v7 = vmul.f32 %v1224_v62, %v1223_v56 }
 0x3d9   : > { %v1209_v32 = vadd.f32 %v1207_v26, %v1190_v49  ;;  %1922 = vrot.lane.b32.xlu0 %v1914_v41, %s6990_s16  ;;  %v1243_v33 = vstv %s5225_s26  ;;  %v1241_v5 = vsel %vm535_vm6, %v1237_v57, 0.0  ;;  %vm6996_vm0 = vcmp.ge.s32.totalorder %v4448_v35, 2  ;;  %s5435_s26 = sld [smem:[#allocation6 + $0x2e]] }
 0x3da   : > { %1931 = vrot.lane.b32.xlu1 %v4327_v29, %s6995_s19  ;;  %v1242_v21 = vsel %vm6996_vm0, %v1238_v11, 0.0  ;;  %v1256_v15 = vsel %vm6727_vm14, %v6998_v25, %v6997_v13  ;;  %v1257_v63 = vsel %vm6727_vm14, %v6997_v13, %v6999_v4  ;;  %v1227_v26 = vadd.f32 %v1225_v10, %v1208_v60  ;;  %v7005_v13 = vld [vmem:[#allocation21_spill] sm:$0xff]  ;;  %v7006_v4 = vld [vmem:[#allocation75_spill] sm:$0xff] }
 0x3db   : > { %v1228_v1 = vadd.f32 %v1226_v7, %v1209_v32  ;;  %v5279_v49 = vpop.permute.xlu0 %1587  ;;  %v5281_v19 = vpop.permute.xlu1 %1605  ;;  %v2723_v62 = vstv %s5239_s7  ;;  %v1244_v38 = vmul.f32 %v1243_v33, %v1241_v5  ;;  %v1245_v56 = vmul.f32 %v1243_v33, %v1242_v21  ;;  %v7002_v32 = vld [vmem:[#allocation19_spill] sm:$0xff]  ;;  %v7004_v5 = vld [vmem:[#allocation20_spill] sm:$0xff]  ;;  %s7028_s7 = smov 74  }
 0x3dc   : > { %v1262_v41 = vstv %s5249_s25  ;;  %vm7000_vm0 = vcmp.ge.s32.totalorder %v4440_v51, 1  ;;  %vm7001_vm14 = vcmp.ge.s32.totalorder %v4448_v35, 1  ;;  %v2724_v10 = vmul.f32 %v2723_v62, %v7002_v32  ;;  %s5452_s25 = sld [smem:[#allocation6 + $0x2f]] }
 0x3dd   : > { %1933 = vrot.lane.b32.xlu0 %v4339_v0, %s6995_s19  ;;  %v1260_v42 = vsel %vm7000_vm0, %v1256_v15, 0.0  ;;  %v1261_v9 = vsel %vm7001_vm14, %v1257_v63, 0.0  ;;  %v1246_v57 = vadd.f32 %v1244_v38, %v1227_v26  ;;  %v1247_v50 = vadd.f32 %v1245_v56, %v1228_v1  ;;  %v7007_v63 = vld [vmem:[#allocation74_spill] sm:$0xff]  ;;  %v7008_v1 = vld [vmem:[#allocation76_spill] sm:$0xff] }
 0x3de   : > { %1935 = vrot.lane.b32.xlu1 %v4343_v31, %s6995_s19  ;;  %vm6746_vm8 = vcmask 359424   ;;  %v1263_v7 = vmul.f32 %v1262_v41, %v1260_v42  ;;  %v1264_v33 = vmul.f32 %v1262_v41, %v1261_v9  ;;  %vm6751_vm14 = vcmask 367616   ;;  %s5476_s19 = sld [smem:[#allocation6 + $0x30]] }
 0x3df   : > { %v5295_v11 = vpop.permute.xlu0 %1603  ;;  %v5297_v60 = vpop.permute.xlu1 %1621  ;;  %v2725_v21 = vmul.f32 %v2723_v62, %v7004_v5  ;;  %v2726_v25 = vmul.f32 %v2723_v62, %v7005_v13  ;;  %v2519_v15 = vstv %s5271_s0  ;;  %v1296_v26 = vsel %vm6746_vm8, %v7007_v63, %v7006_v4  ;;  %s5502_s0 = sld [smem:[#allocation6 + $0x31]] }
 0x3e0   : > { %v1297_v38 = vsel %vm6746_vm8, %v7006_v4, %v7008_v1  ;;  %v1265_v56 = vadd.f32 %v1263_v7, %v1246_v57  ;;  %v1266_v41 = vadd.f32 %v1264_v33, %v1247_v50  ;;  %vm6736_vm0 = vcmask 351232   ;;  %v7010_v7 = vld [vmem:[#allocation78_spill] sm:$0xff]  ;;  %v7011_v33 = vld [vmem:[#allocation77_spill] sm:$0xff] }
 0x3e1   : > { %1949 = vrot.lane.b32.xlu0 %v4327_v29, %s7003_s28  ;;  %v2520_v62 = vmul.f32 %v2519_v15, %v7002_v32  ;;  %v1300_v63 = vsel %vm529_vm12, %v1296_v26, 0.0  ;;  %vm7009_vm9 = vcmp.lt.s32.totalorder %v4448_v35, 15  ;;  %v1282_v57 = vsel %vm6751_vm14, %v4924_v48, %v4894_v24 }
 0x3e2   : > { %2730 = vrot.lane.b32.xlu1 %v2724_v10, %s6990_s16  ;;  %v1302_v10 = vstv %s5284_s14  ;;  %v1301_v4 = vsel %vm7009_vm9, %v1297_v38, 0.0  ;;  %v1283_v50 = vsel %vm6751_vm14, %v4894_v24, %v4968_v52  ;;  %v1286_v1 = vadd.f32 %v1282_v57, %v1265_v56  ;;  %s5515_s14 = sld [smem:[#allocation6 + $0x50]] }
 0x3e3   : > { %v5316_v42 = vpop.permute.xlu0 %1619  ;;  %v5318_v9 = vpop.permute.xlu1 %1637  ;;  %v1287_v38 = vadd.f32 %v1283_v50, %v1266_v41  ;;  %vm6739_vm9 = vcmask 343040   ;;  %v1303_v48 = vmul.f32 %v1302_v10, %v1300_v63  ;;  %v1304_v12 = vmul.f32 %v1302_v10, %v1301_v4  ;;  %v7013_v63 = vld [vmem:[#allocation81_spill] sm:$0xff]  ;;  %v7014_v4 = vld [vmem:[#allocation80_spill] sm:$0xff]  ;;  %v7015_v50 = vld [vmem:[#allocation82_spill] sm:$0xff] }
 0x3e4   : > { %v2521_v24 = vmul.f32 %v2519_v15, %v7004_v5  ;;  %v2779_v52 = vstv %s5303_s17  ;;  %v1321_v41 = vstv %s5305_s24  ;;  %v2522_v10 = vmul.f32 %v2519_v15, %v7005_v13  ;;  %s5526_s17 = sld [smem:[#allocation6 + $0x33]] }
 0x3e5   : > { %2732 = vrot.lane.b32.xlu0 %v2725_v21, %s6990_s16  ;;  %v1315_v21 = vsel %vm6736_vm0, %v7011_v33, %v7010_v7  ;;  %v1305_v33 = vadd.f32 %v1303_v48, %v1286_v1  ;;  %v2780_v15 = vmul.f32 %v2779_v52, %v4327_v29  ;;  %v2781_v1 = vmul.f32 %v2779_v52, %v4339_v0  ;;  %v7017_v48 = vld [vmem:[#allocation83_spill] sm:$0xff]  ;;  %s5534_s24 = sld [smem:[#allocation6 + $0x35]] }
 0x3e6   : > { %2734 = vrot.lane.b32.xlu1 %v2726_v25, %s6990_s16  ;;  %v7012_v25 = vld [vmem:[#allocation79_spill] sm:$0xff]  ;;  %v1319_v56 = vsel %vm533_vm1, %v1315_v21, 0.0  ;;  %v2378_v43 = vstv %s5351_s29  ;;  %v1359_v18 = vstv %s5358_s3  ;;  %vm6750_vm8 = vcmask 244736   ;;  %s5547_s29 = sld [smem:[#allocation6 + $0x37]] }
 0x3e7   : > { %v1316_v26 = vsel %vm6736_vm0, %v7010_v7, %v7012_v25  ;;  %v5342_v59 = vpop.permute.xlu0 %1623  ;;  %v5344_v46 = vpop.permute.xlu1 %1641  ;;  %v1335_v7 = vsel %vm6739_vm9, %v7013_v63, %v7015_v50  ;;  %v1306_v25 = vadd.f32 %v1304_v12, %v1287_v38  ;;  %vm6760_vm0 = vcmask 261120   ;;  %v7016_v38 = vld [vmem:[#allocation84_spill] sm:$0xff]  ;;  %s5561_s3 = sld [smem:[#allocation6 + $0x39]] }
 0x3e8   : > { %v1320_v57 = vsel %vm534_vm2, %v1316_v26, 0.0  ;;  %v1322_v26 = vmul.f32 %v1321_v41, %v1319_v56  ;;  %v1339_v12 = vsel %vm538_vm10, %v1335_v7, 0.0  ;;  %v7018_v56 = vld [vmem:[#allocation85_spill] sm:$0xff]  ;;  %vm6752_vm14 = vcmask 228352  }
 0x3e9   : > { %1951 = vrot.lane.b32.xlu0 %v4339_v0, %s7003_s28  ;;  %v1323_v28 = vmul.f32 %v1321_v41, %v1320_v57  ;;  %v1354_v41 = vsel %vm6760_vm0, %v7016_v38, %v7018_v56 }
 0x3ea   : > { %2526 = vrot.lane.b32.xlu1 %v2520_v62, %s6990_s16  ;;  %v1334_v62 = vsel %vm6739_vm9, %v7014_v4, %v7013_v63  ;;  %v1340_v63 = vstv %s5328_s27  ;;  %v1324_v57 = vadd.f32 %v1322_v26, %v1305_v33  ;;  %vm6747_vm9 = vcmask 252928   ;;  %v7020_v26 = vld [vmem:[#allocation86_spill] sm:$0xff]  ;;  %s5536_s27 = sld [smem:[#allocation6 + $0x36]] }
 0x3eb   : > { %v5367_v21 = vpop.permute.xlu0 %1639  ;;  %v5369_v27 = vpop.permute.xlu1 %1675  ;;  %v1338_v4 = vsel %vm537_vm3, %v1334_v62, 0.0  ;;  %v1342_v58 = vmul.f32 %v1340_v63, %v1339_v12  ;;  %v1358_v33 = vsel %vm540_vm5, %v1354_v41, 0.0 }
 0x3ec   : > { %v1341_v7 = vmul.f32 %v1340_v63, %v1338_v4  ;;  %v1361_v41 = vmul.f32 %v1359_v18, %v1358_v33 }
 0x3ed   : > { %2528 = vrot.lane.b32.xlu0 %v2521_v24, %s6990_s16  ;;  %v1353_v24 = vsel %vm6760_vm0, %v7017_v48, %v7016_v38  ;;  %vm7045_vm0 = vcmask 1014784  }
 0x3ee   : > { %2530 = vrot.lane.b32.xlu1 %v2522_v10, %s6990_s16  ;;  %v1325_v10 = vadd.f32 %v1323_v28, %v1306_v25  ;;  %v1357_v48 = vsel %vm539_vm4, %v1353_v24, 0.0  ;;  %v2782_v28 = vmul.f32 %v2779_v52, %v4343_v31  ;;  %v7019_v25 = vld [vmem:[#allocation87_spill] sm:$0xff]  ;;  %v1343_v12 = vadd.f32 %v1341_v7, %v1324_v57  ;;  %vm7046_vm15 = vmmov %vm7045_vm0 }
 0x3ef   : > { %v5388_v62 = vpop.permute.xlu0 %1677  ;;  %v5390_v50 = vpop.permute.xlu1 %1679  ;;  %v1372_v4 = vsel %vm6747_vm9, %v7020_v26, %v7019_v25  ;;  %v1360_v56 = vmul.f32 %v1359_v18, %v1357_v48  ;;  %v2379_v52 = vmul.f32 %v2378_v43, %v7002_v32  ;;  %v2380_v57 = vmul.f32 %v2378_v43, %v7004_v5  ;;  %v7024_v18 = vld [vmem:[#allocation89_spill] sm:$0xff]  ;;  %v7025_v48 = vld [vmem:[#allocation91_spill] sm:$0xff] }
 0x3f0   : > { %v1376_v26 = vsel %vm535_vm6, %v1372_v4, 0.0 }
 0x3f1   : > { %2786 = vrot.lane.b32.xlu0 %v2780_v15, %s6990_s16  ;;  %v7021_v15 = vld [vmem:[#allocation88_spill] sm:$0xff]  ;;  %v1362_v32 = vadd.f32 %v1360_v56, %v1343_v12 }
 0x3f2   : > { %2788 = vrot.lane.b32.xlu1 %v2781_v1, %s6990_s16  ;;  %v1373_v63 = vsel %vm6747_vm9, %v7019_v25, %v7021_v15  ;;  %v1344_v1 = vadd.f32 %v1342_v58, %v1325_v10  ;;  %v1378_v25 = vstv %s5379_s8  ;;  %vm7022_vm9 = vcmp.ge.s32.totalorder %v4448_v35, 2  ;;  %v7023_v10 = vld [vmem:[#allocation90_spill] sm:$0xff]  ;;  %s5564_s8 = sld [smem:[#allocation6 + $0x3a]] }
 0x3f3   : > { %v5409_v38 = vpop.permute.xlu0 %1693  ;;  %v5411_v24 = vpop.permute.xlu1 %1695  ;;  %v1377_v58 = vsel %vm7022_vm9, %v1373_v63, 0.0  ;;  %v1391_v7 = vsel %vm6750_vm8, %v7024_v18, %v7023_v10  ;;  %v1392_v33 = vsel %vm6750_vm8, %v7023_v10, %v7025_v48  ;;  %v1379_v63 = vmul.f32 %v1378_v25, %v1376_v26  ;;  %v7031_v48 = vld [vmem:[#allocation96_spill] sm:$0xff] }
 0x3f4   : > { %v1380_v44 = vmul.f32 %v1378_v25, %v1377_v58  ;;  %vm7026_vm9 = vcmp.ge.s32.totalorder %v4440_v51, 1  ;;  %v1397_v10 = vstv %s5400_s4  ;;  %vm7027_vm8 = vcmp.ge.s32.totalorder %v4448_v35, 1  ;;  %v7029_v58 = vld [vmem:[#allocation92_spill] sm:$0xff]  ;;  %s7041_s4 = smov 64  }
 0x3f5   : > { %2790 = vrot.lane.b32.xlu0 %v2782_v28, %s6990_s16  ;;  %v1363_v28 = vadd.f32 %v1361_v41, %v1344_v1  ;;  %v1395_v5 = vsel %vm7026_vm9, %v1391_v7, 0.0  ;;  %v1396_v12 = vsel %vm7027_vm8, %v1392_v33, 0.0  ;;  %v1381_v1 = vadd.f32 %v1379_v63, %v1362_v32 }
 0x3f6   : > { %1953 = vrot.lane.b32.xlu1 %v4343_v31, %s7003_s28  ;;  %v2381_v26 = vmul.f32 %v2378_v43, %v7005_v13  ;;  %v1399_v25 = vmul.f32 %v1397_v10, %v1396_v12  ;;  %vm6759_vm8 = vcmask 236544   ;;  %v1432_v43 = vsel %vm6752_vm14, %v7029_v58, %v7031_v48  ;;  %v7036_v48 = vld [vmem:[#allocation97_spill] sm:$0xff]  ;;  %s5517_s28 = sld [smem:[#allocation6 + $0x32]] }
 0x3f7   : > { %v5429_v15 = vpop.permute.xlu0 %1697  ;;  %v5431_v4 = vpop.permute.xlu1 %1711  ;;  %v1382_v56 = vadd.f32 %v1380_v44, %v1363_v28  ;;  %v2563_v44 = vstv %s3236_s30  ;;  %vm6758_vm9 = vcmask 220160   ;;  %v1437_v63 = vstv %s5435_s26  ;;  %s5603_s30 = sld [smem:[#allocation6 + $0x3c]] }
 0x3f8   : > { %v2410_v12 = vstv %s5433_s5  ;;  %s7047_s5 = smov 63   ;;  %s5617_s26 = sld [smem:[#allocation6 + $0x3d]] }
 0x3f9   : > { %2385 = vrot.lane.b32.xlu0 %v2379_v52, %s6990_s16  ;;  %v1398_v52 = vmul.f32 %v1397_v10, %v1395_v5  ;;  %v1401_v33 = vadd.f32 %v1399_v25, %v1382_v56  ;;  %v2564_v5 = vmul.f32 %v2563_v44, %v4327_v29  ;;  %v2565_v10 = vmul.f32 %v2563_v44, %v4339_v0  ;;  %v7034_v25 = vld [vmem:[#allocation101_spill] sm:$0xff] }
 0x3fa   : > { %2387 = vrot.lane.b32.xlu1 %v2380_v57, %s6990_s16  ;;  %v7030_v57 = vld [vmem:[#allocation93_spill] sm:$0xff] }
 0x3fb   : > { %v5444_v41 = vpop.permute.xlu0 %1713  ;;  %v5446_v18 = vpop.permute.xlu1 %1715  ;;  %v1431_v7 = vsel %vm6752_vm14, %v7030_v57, %v7029_v58  ;;  %v1400_v13 = vadd.f32 %v1398_v52, %v1381_v1  ;;  %vm7033_vm14 = vcmp.lt.s32.totalorder %v4448_v35, 15  ;;  %v1418_v52 = vsel %vm6759_vm8, %v5014_v37, %v4970_v17  ;;  %v7035_v58 = vld [vmem:[#allocation94_spill] sm:$0xff] }
 0x3fc   : > { %v1435_v1 = vsel %vm529_vm12, %v1431_v7, 0.0  ;;  %v1436_v56 = vsel %vm7033_vm14, %v1432_v43, 0.0  ;;  %v1450_v57 = vsel %vm6758_vm9, %v7035_v58, %v7034_v25  ;;  %v1451_v7 = vsel %vm6758_vm9, %v7034_v25, %v7036_v48 }
 0x3fd   : > { %2389 = vrot.lane.b32.xlu0 %v2381_v26, %s6990_s16  ;;  %v1417_v26 = vsel %vm6759_vm8, %v4926_v22, %v5014_v37  ;;  %v1422_v55 = vadd.f32 %v1418_v52, %v1401_v33  ;;  %vm6757_vm14 = vcmask 211968   ;;  %v1438_v22 = vmul.f32 %v1437_v63, %v1435_v1  ;;  %v7037_v1 = vld [vmem:[#allocation102_spill] sm:$0xff] }
 0x3fe   : > { %1967 = vrot.lane.b32.xlu1 %v4327_v29, %s7028_s7  ;;  %v1421_v43 = vadd.f32 %v1417_v26, %v1400_v13  ;;  %v2566_v17 = vmul.f32 %v2563_v44, %v4343_v31  ;;  %v1456_v37 = vstv %s5452_s25  ;;  %v1454_v58 = vsel %vm533_vm1, %v1450_v57, 0.0  ;;  %s5647_s25 = sld [smem:[#allocation6 + $0x3f]] }
 0x3ff   : > { %v5460_v32 = vpop.permute.xlu0 %1729  ;;  %v5462_v28 = vpop.permute.xlu1 %1731  ;;  %v1455_v13 = vsel %vm534_vm2, %v1451_v7, 0.0  ;;  %v2411_v33 = vmul.f32 %v2410_v12, %v4327_v29  ;;  %v1470_v44 = vsel %vm6757_vm14, %v7037_v1, %v4647_v3  ;;  %v1457_v25 = vmul.f32 %v1456_v37, %v1454_v58 }
 0x400   : > { %7032 = vst [vmem:[#allocation28_spill] sm:$0xff] %v5460_v32  ;;  %v1439_v32 = vmul.f32 %v1437_v63, %v1436_v56  ;;  %v7038_v63 = vld [vmem:[#allocation107_spill] sm:$0xff]  ;;  %v1458_v57 = vmul.f32 %v1456_v37, %v1455_v13  ;;  %v1475_v48 = vstv %s5476_s19  ;;  %v2413_v37 = vmul.f32 %v2410_v12, %v4343_v31  ;;  %s5665_s19 = sld [smem:[#allocation6 + $0x40]] }
 0x401   : > { %1969 = vrot.lane.b32.xlu0 %v4339_v0, %s7028_s7 }
 0x402   : > { %1971 = vrot.lane.b32.xlu1 %v4343_v31, %s7028_s7  ;;  %v1441_v56 = vadd.f32 %v1439_v32, %v1422_v55  ;;  %v1474_v55 = vsel %vm538_vm10, %v1470_v44, 0.0  ;;  %s5637_s7 = sld [smem:[#allocation6 + $0x3e]] }
 0x403   : > { %v5490_v30 = vpop.permute.xlu0 %1733  ;;  %v5492_v61 = vpop.permute.xlu1 %1747  ;;  %v1477_v13 = vmul.f32 %v1475_v48, %v1474_v55 }
 0x404   : > { %v1460_v7 = vadd.f32 %v1458_v57, %v1441_v56 }
 0x405   : > { %2570 = vrot.lane.b32.xlu0 %v2564_v5, %s6990_s16  ;;  %v1469_v5 = vsel %vm6757_vm14, %v7038_v63, %v7037_v1  ;;  %v1482_v1 = vsel %vm540_vm5, %v4339_v0, 0.0  ;;  %vm7039_vm14 = vcmask 1039360  }
 0x406   : > { %2572 = vrot.lane.b32.xlu1 %v2565_v10, %s6990_s16  ;;  %v1440_v10 = vadd.f32 %v1438_v22, %v1421_v43  ;;  %v1473_v3 = vsel %vm537_vm3, %v1469_v5, 0.0  ;;  %v1497_v5 = vsel %vm7039_vm14, %v5016_v23, %v5055_v36  ;;  %v1479_v44 = vadd.f32 %v1477_v13, %v1460_v7  ;;  %vm7040_vm9 = vmmov %vm7039_vm14 }
 0x407   : > { %v5511_v26 = vpop.permute.xlu0 %1749  ;;  %v5513_v52 = vpop.permute.xlu1 %1751  ;;  %v1476_v58 = vmul.f32 %v1475_v48, %v1473_v3  ;;  %v1503_v3 = vstv %s5517_s28  ;;  %v2039_v23 = vstv %s5515_s14  ;;  %vm7043_vm14 = vcmask 1031168   ;;  %s5675_s14 = sld [smem:[#allocation6 + $0x41]]  ;;  %s7065_s28 = smov 61  }
 0x408   : > { %v1459_v32 = vadd.f32 %v1457_v25, %v1440_v10  ;;  %v1498_v10 = vsel %vm7040_vm9, %v5055_v36, %v5057_v39  ;;  %v1501_v36 = vsel %vm535_vm6, %v1497_v5, 0.0  ;;  %vm7042_vm9 = vcmp.ge.s32.totalorder %v4448_v35, 2  ;;  %vm7044_vm8 = vmmov %vm7043_vm14 }
 0x409   : > { %2574 = vrot.lane.b32.xlu0 %v2566_v17, %s6990_s16  ;;  %v2412_v17 = vmul.f32 %v2410_v12, %v4339_v0  ;;  %v1483_v12 = vstv %s5502_s0  ;;  %v1502_v39 = vsel %vm7042_vm9, %v1498_v10, 0.0  ;;  %v1515_v55 = vsel %vm7043_vm14, %v5103_v16, %v5105_v8  ;;  %s7060_s0 = smov 62  }
 0x40a   : > { %2417 = vrot.lane.b32.xlu1 %v2411_v33, %s6990_s16  ;;  %v1481_v33 = vsel %vm539_vm4, %v4327_v29, 0.0  ;;  %v1478_v63 = vadd.f32 %v1476_v58, %v1459_v32  ;;  %v1485_v48 = vmul.f32 %v1483_v12, %v1482_v1  ;;  %v1516_v32 = vsel %vm7044_vm8, %v5105_v8, %v5144_v14 }
 0x40b   : > { %v5528_v43 = vpop.permute.xlu0 %1765  ;;  %v5530_v22 = vpop.permute.xlu1 %1767  ;;  %v1484_v57 = vmul.f32 %v1483_v12, %v1481_v33  ;;  %v1554_v58 = vsel %vm7046_vm15, %v5146_v6, %v5207_v53  ;;  %v1521_v1 = vstv %s5526_s17  ;;  %v5593_v16 = vmul.f32 %v2039_v23, %v4327_v29  ;;  %s7075_s17 = smov 60  }
 0x40c   : > { %v5596_v8 = vmul.f32 %v2039_v23, %v4339_v0  ;;  %v5599_v14 = vmul.f32 %v2039_v23, %v4343_v31  ;;  %v1504_v12 = vmul.f32 %v1503_v3, %v1501_v36  ;;  %v1577_v5 = vstv %s5536_s27  ;;  %s7083_s27 = smov 59  }
 0x40d   : > { %2419 = vrot.lane.b32.xlu0 %v2412_v17, %s6990_s16  ;;  %v1486_v7 = vadd.f32 %v1484_v57, %v1478_v63  ;;  %v1487_v17 = vadd.f32 %v1485_v48, %v1479_v44  ;;  %v1559_v63 = vstv %s5534_s24  ;;  %vm7048_vm15 = vcmp.ge.s32.totalorder %v4440_v51, 1  ;;  %s5753_s24 = sld [smem:[#allocation6 + $0x43]] }
 0x40e   : > { %2421 = vrot.lane.b32.xlu1 %v2413_v37, %s6990_s16  ;;  %s5555_s16 = sld [smem:[#allocation6 + $0x38]]  ;;  %v1553_v37 = vsel %vm7045_vm0, %v5174_v54, %v5146_v6  ;;  %v1505_v54 = vmul.f32 %v1503_v3, %v1502_v39  ;;  %v1519_v6 = vsel %vm7048_vm15, %v1515_v55, 0.0  ;;  %vm7049_vm0 = vcmp.ge.s32.totalorder %v4448_v35, 1 }
 0x40f   : > { %v5557_v56 = vpop.permute.xlu0 %1769  ;;  %v5559_v25 = vpop.permute.xlu1 %1805  ;;  %v1520_v53 = vsel %vm7049_vm0, %v1516_v32, 0.0  ;;  %v1557_v44 = vsel %vm529_vm12, %v1553_v37, 0.0  ;;  %vm7050_vm8 = vcmp.lt.s32.totalorder %v4448_v35, 15  ;;  %v1506_v57 = vadd.f32 %v1504_v12, %v1486_v7 }
 0x410   : > { %v1558_v10 = vsel %vm7050_vm8, %v1554_v58, 0.0  ;;  %v1507_v48 = vadd.f32 %v1505_v54, %v1487_v17  ;;  %vm7051_vm9 = vcmask 1006592   ;;  %v1595_v55 = vstv %s5547_s29  ;;  %s5785_s29 = sld [smem:[#allocation6 + $0x44]] }
 0x411   : > { %1985 = vrot.lane.b32.xlu0 %v4327_v29, %s7041_s4  ;;  %v1571_v3 = vsel %vm7051_vm9, %v5176_v2, %v5235_v40  ;;  %vm7052_vm14 = vmmov %vm7051_vm9  ;;  %vm7053_vm15 = vcmask 998400   ;;  %v1522_v37 = vmul.f32 %v1521_v1, %v1519_v6  ;;  %v1523_v58 = vmul.f32 %v1521_v1, %v1520_v53 }
 0x412   : > { %1987 = vrot.lane.b32.xlu1 %v4339_v0, %s7041_s4  ;;  %v1572_v23 = vsel %vm7052_vm14, %v5235_v40, %v5209_v34  ;;  %v1589_v32 = vsel %vm7053_vm15, %v5259_v20, %v5237_v47  ;;  %vm7054_vm0 = vmmov %vm7053_vm15  ;;  %v1631_v2 = vstv %s5561_s3  ;;  %v1649_v12 = vstv %s5564_s8  ;;  %s5820_s3 = sld [smem:[#allocation6 + $0x46]]  ;;  %s7094_s8 = smov 58  }
 0x413   : > { %v5587_v13 = vpop.permute.xlu0 %1803  ;;  %v5589_v33 = vpop.permute.xlu1 %1821  ;;  %v1590_v7 = vsel %vm7054_vm0, %v5237_v47, %v5279_v49  ;;  %v1560_v34 = vmul.f32 %v1559_v63, %v1557_v44  ;;  %v1561_v40 = vmul.f32 %v1559_v63, %v1558_v10  ;;  %v1575_v20 = vsel %vm533_vm1, %v1571_v3, 0.0 }
 0x414   : > { %v1613_v17 = vstv %s5555_s16  ;;  %v1576_v47 = vsel %vm534_vm2, %v1572_v23, 0.0  ;;  %v1593_v49 = vsel %vm537_vm3, %v1589_v32, 0.0  ;;  %v1594_v1 = vsel %vm538_vm10, %v1590_v7, 0.0  ;;  %s5810_s16 = sld [smem:[#allocation6 + $0x45]] }
 0x415   : > { %1989 = vrot.lane.b32.xlu0 %v4343_v31, %s7041_s4  ;;  %v1524_v6 = vadd.f32 %v1522_v37, %v1506_v57  ;;  %v1525_v53 = vadd.f32 %v1523_v58, %v1507_v48  ;;  %vm7055_vm8 = vcmask 916480   ;;  %vm7057_vm14 = vcmask 1022976  }
 0x416   : > { %2003 = vrot.lane.b32.xlu1 %v4327_v29, %s7047_s5  ;;  %v1607_v63 = vsel %vm7055_vm8, %v5261_v45, %v5295_v11  ;;  %vm7056_vm9 = vmmov %vm7055_vm8  ;;  %vm7059_vm0 = vcmask 908288   ;;  %v1687_v57 = vstv %s5603_s30  ;;  %v1578_v45 = vmul.f32 %v1577_v5, %v1575_v20  ;;  %s5828_s30 = sld [smem:[#allocation6 + $0x47]] }
 0x417   : > { %v5625_v36 = vpop.permute.xlu0 %1807  ;;  %v1535_v39 = vpop.permute.xlu1 %1534  ;;  %v1608_v10 = vsel %vm7056_vm9, %v5295_v11, %v5281_v19  ;;  %vm7058_vm15 = vmmov %vm7057_vm14  ;;  %v1625_v32 = vsel %vm7059_vm0, %v5316_v42, %v5297_v60  ;;  %v1579_v19 = vmul.f32 %v1577_v5, %v1576_v47  ;;  %v1596_v42 = vmul.f32 %v1595_v55, %v1593_v49 }
 0x418   : > { %vm7061_vm8 = vmmov %vm7059_vm0  ;;  %v1597_v37 = vmul.f32 %v1595_v55, %v1594_v1  ;;  %v1612_v5 = vsel %vm540_vm5, %v1608_v10, 0.0  ;;  %vm7062_vm9 = vcmask 900096   ;;  %vm7066_vm0 = vcmask 883712  }
 0x419   : > { %2005 = vrot.lane.b32.xlu0 %v4339_v0, %s7047_s5  ;;  %v1626_v11 = vsel %vm7061_vm8, %v5297_v60, %v5342_v59  ;;  %v1629_v59 = vsel %vm535_vm6, %v1625_v32, 0.0  ;;  %v1643_v60 = vsel %vm7062_vm9, %v5318_v9, %v5367_v21  ;;  %v1681_v47 = vsel %vm7066_vm0, %v5369_v27, %v5388_v62  ;;  %vm7067_vm8 = vmmov %vm7066_vm0 }
 0x41a   : > { %2007 = vrot.lane.b32.xlu1 %v4343_v31, %s7047_s5  ;;  %v1682_v9 = vsel %vm7067_vm8, %v5388_v62, %v5390_v50  ;;  %v1723_v49 = vstv %s5637_s7  ;;  %v1741_v1 = vstv %s5647_s25  ;;  %v1685_v50 = vsel %vm529_vm12, %v1681_v47, 0.0  ;;  %s5849_s5 = sld [smem:[#allocation6 + $0x48]] }
 0x41b   : > { %v1537_v54 = vpop.permute.xlu0 %1536  ;;  %v1539_v44 = vpop.permute.xlu1 %1538  ;;  %vm7071_vm0 = vcmask 875520   ;;  %s5900_s7 = sld [smem:[#allocation6 + $0x7a]] }
 0x41c   : > { %v1540_v3 = vsel %vm7057_vm14, %v1535_v39, %v1537_v54  ;;  %v1541_v23 = vsel %vm7058_vm15, %v1537_v54, %v1539_v44  ;;  %v1705_v39 = vstv %s5617_s26  ;;  %v1611_v44 = vsel %vm539_vm4, %v1607_v63, 0.0  ;;  %vm7064_vm15 = vmmov %vm7062_vm9  ;;  %s3193_s26 = sld [smem:[#allocation6 + $0x4a]] }
 0x41d   : > { %v1544_v48 = vadd.f32 %v1540_v3, %v1524_v6  ;;  %v1545_v7 = vadd.f32 %v1541_v23, %v1525_v53  ;;  %2021 = vrot.lane.b32.xlu0 %v4327_v29, %s7060_s0  ;;  %vm7063_vm14 = vcmp.ge.s32.totalorder %v4448_v35, 2  ;;  %v1614_v63 = vmul.f32 %v1613_v17, %v1611_v44  ;;  %vm7072_vm8 = vmmov %vm7071_vm0  ;;  %s5904_s25 = sld [smem:[#allocation6 + $0x4b]] }
 0x41e   : > { %2023 = vrot.lane.b32.xlu1 %v4339_v0, %s7060_s0  ;;  %v1630_v55 = vsel %vm7063_vm14, %v1626_v11, 0.0  ;;  %vm7068_vm9 = vcmp.ge.s32.totalorder %v4440_v51, 1  ;;  %vm7069_vm14 = vcmp.ge.s32.totalorder %v4448_v35, 1  ;;  %v1777_v11 = vstv %s5675_s14  ;;  %s5912_s14 = sld [smem:[#allocation6 + $0x7c]] }
 0x41f   : > { %v1562_v58 = vadd.f32 %v1560_v34, %v1544_v48  ;;  %v1563_v54 = vadd.f32 %v1561_v40, %v1545_v7  ;;  %v1663_v6 = vpop.permute.xlu0 %1662  ;;  %v1665_v53 = vpop.permute.xlu1 %1664  ;;  %v1644_v34 = vsel %vm7064_vm15, %v5367_v21, %v5344_v46  ;;  %v1615_v46 = vmul.f32 %v1613_v17, %v1612_v5 }
 0x420   : > { %v1633_v32 = vmul.f32 %v1631_v2, %v1630_v55  ;;  %v1647_v27 = vsel %vm7068_vm9, %v1643_v60, 0.0  ;;  %v1648_v62 = vsel %vm7069_vm14, %v1644_v34, 0.0  ;;  %vm7070_vm15 = vcmp.lt.s32.totalorder %v4448_v35, 15 }
 0x421   : > { %v1580_v40 = vadd.f32 %v1578_v45, %v1562_v58  ;;  %v1581_v20 = vadd.f32 %v1579_v19, %v1563_v54  ;;  %2025 = vrot.lane.b32.xlu0 %v4343_v31, %s7060_s0  ;;  %v1686_v17 = vsel %vm7070_vm15, %v1682_v9, 0.0  ;;  %v1700_v45 = vsel %vm7072_vm8, %v5411_v24, %v5429_v15  ;;  %s5910_s0 = sld [smem:[#allocation6 + $0x7b]] }
 0x422   : > { %2046 = vrot.lane.b32.xlu1 %v5593_v16, %s7065_s28  ;;  %v1632_v16 = vmul.f32 %v1631_v2, %v1629_v59  ;;  %v1699_v2 = vsel %vm7071_vm0, %v5409_v38, %v5411_v24  ;;  %v1759_v19 = vstv %s5665_s19  ;;  %v1689_v5 = vmul.f32 %v1687_v57, %v1686_v17  ;;  %s5906_s19 = sld [smem:[#allocation6 + $0x94]] }
 0x423   : > { %v1598_v21 = vadd.f32 %v1596_v42, %v1580_v40  ;;  %v1599_v10 = vadd.f32 %v1597_v37, %v1581_v20  ;;  %v1667_v3 = vpop.permute.xlu0 %1666  ;;  %v5703_v23 = vpop.permute.xlu1 %1790  ;;  %v1650_v42 = vmul.f32 %v1649_v12, %v1647_v27  ;;  %v1651_v37 = vmul.f32 %v1649_v12, %v1648_v62 }
 0x424   : > { %vm7073_vm9 = vcmask 867328   ;;  %v1703_v15 = vsel %vm533_vm1, %v1699_v2, 0.0  ;;  %v1704_v12 = vsel %vm534_vm2, %v1700_v45, 0.0  ;;  %vm7077_vm15 = vcmask 785408  }
 0x425   : > { %v1616_v48 = vadd.f32 %v1614_v63, %v1598_v21  ;;  %v1617_v7 = vadd.f32 %v1615_v46, %v1599_v10  ;;  %2048 = vrot.lane.b32.xlu0 %v5596_v8, %s7065_s28  ;;  %v1717_v38 = vsel %vm7073_vm9, %v5431_v4, %v5444_v41  ;;  %vm7074_vm14 = vmmov %vm7073_vm9  ;;  %v7076_v4 = vld [vmem:[#allocation28_spill] sm:$0xff]  ;;  %vm7079_vm8 = vcmask 891904  }
 0x426   : > { %2050 = vrot.lane.b32.xlu1 %v5599_v14, %s7065_s28  ;;  %v1688_v14 = vmul.f32 %v1687_v57, %v1685_v50  ;;  %v1718_v24 = vsel %vm7074_vm14, %v5444_v41, %v5446_v18  ;;  %v1735_v41 = vsel %vm7077_vm15, %v7076_v4, %v5462_v28  ;;  %vm7078_vm0 = vmmov %vm7077_vm15  ;;  %v1668_v57 = vsel %vm7079_vm8, %v1663_v6, %v1665_v53  ;;  %s5914_s28 = sld [smem:[#allocation6 + $0x6b]] }
 0x427   : > { %v1634_v58 = vadd.f32 %v1632_v16, %v1616_v48  ;;  %v1635_v54 = vadd.f32 %v1633_v32, %v1617_v7  ;;  %v5729_v8 = vpop.permute.xlu0 %1792  ;;  %v5731_v44 = vpop.permute.xlu1 %1794  ;;  %v1736_v18 = vsel %vm7078_vm0, %v5462_v28, %v5490_v30  ;;  %vm7080_vm9 = vmmov %vm7079_vm8  ;;  %v1721_v34 = vsel %vm537_vm3, %v1717_v38, 0.0 }
 0x428   : > { %v1669_v55 = vsel %vm7080_vm9, %v1665_v53, %v1667_v3  ;;  %v1722_v40 = vsel %vm538_vm10, %v1718_v24, 0.0  ;;  %v1706_v46 = vmul.f32 %v1705_v39, %v1703_v15  ;;  %v1707_v30 = vmul.f32 %v1705_v39, %v1704_v12 }
 0x429   : > { %v1652_v59 = vadd.f32 %v1650_v42, %v1634_v58  ;;  %v1653_v60 = vadd.f32 %v1651_v37, %v1635_v54  ;;  %2059 = vrot.lane.b32.xlu0 %v4327_v29, %s7075_s17  ;;  %vm7081_vm14 = vcmask 777216   ;;  %v1739_v53 = vsel %vm539_vm4, %v1735_v41, 0.0 }
 0x42a   : > { %2061 = vrot.lane.b32.xlu1 %v4339_v0, %s7075_s17  ;;  %v1753_v28 = vsel %vm7081_vm14, %v5492_v61, %v5511_v26  ;;  %vm7082_vm15 = vmmov %vm7081_vm14  ;;  %v1740_v21 = vsel %vm540_vm5, %v1736_v18, 0.0  ;;  %v1724_v61 = vmul.f32 %v1723_v49, %v1721_v34  ;;  %v1725_v39 = vmul.f32 %v1723_v49, %v1722_v40 }
 0x42b   : > { %v1672_v20 = vadd.f32 %v1668_v57, %v1652_v59  ;;  %v1673_v47 = vadd.f32 %v1669_v55, %v1653_v60  ;;  %v1824_v9 = vpop.permute.xlu0 %1823  ;;  %v1826_v63 = vpop.permute.xlu1 %1825  ;;  %v1754_v6 = vsel %vm7082_vm15, %v5511_v26, %v5513_v52  ;;  %vm7084_vm0 = vcmask 769024  }
 0x42c   : > { %v1771_v26 = vsel %vm7084_vm0, %v5528_v43, %v5530_v22  ;;  %vm7085_vm8 = vmmov %vm7084_vm0  ;;  %v1757_v16 = vsel %vm535_vm6, %v1753_v28, 0.0  ;;  %vm7086_vm9 = vcmp.ge.s32.totalorder %v4448_v35, 2  ;;  %v1742_v17 = vmul.f32 %v1741_v1, %v1739_v53 }
 0x42d   : > { %v1690_v10 = vadd.f32 %v1688_v14, %v1672_v20  ;;  %v1691_v3 = vadd.f32 %v1689_v5, %v1673_v47  ;;  %2063 = vrot.lane.b32.xlu0 %v4343_v31, %s7075_s17  ;;  %v1772_v52 = vsel %vm7085_vm8, %v5530_v22, %v5557_v56  ;;  %v1758_v32 = vsel %vm7086_vm9, %v1754_v6, 0.0  ;;  %s5916_s17 = sld [smem:[#allocation6 + $0x92]] }
 0x42e   : > { %2077 = vrot.lane.b32.xlu1 %v4327_v29, %s7083_s27  ;;  %v1743_v43 = vmul.f32 %v1741_v1, %v1740_v21  ;;  %vm7087_vm14 = vcmask 752640   ;;  %vm7089_vm0 = vcmp.ge.s32.totalorder %v4440_v51, 1  ;;  %vm7090_vm8 = vcmp.ge.s32.totalorder %v4448_v35, 1 }
 0x42f   : > { %v1708_v27 = vadd.f32 %v1706_v46, %v1690_v10  ;;  %v1709_v62 = vadd.f32 %v1707_v30, %v1691_v3  ;;  %v1840_v49 = vpop.permute.xlu0 %1839  ;;  %v1842_v50 = vpop.permute.xlu1 %1841  ;;  %v1809_v22 = vsel %vm7087_vm14, %v5587_v13, %v5559_v25  ;;  %vm7088_vm15 = vmmov %vm7087_vm14  ;;  %v1775_v48 = vsel %vm7089_vm0, %v1771_v26, 0.0 }
 0x430   : > { %v1810_v56 = vsel %vm7088_vm15, %v5559_v25, %v5625_v36  ;;  %v1776_v7 = vsel %vm7090_vm8, %v1772_v52, 0.0  ;;  %v1760_v13 = vmul.f32 %v1759_v19, %v1757_v16  ;;  %v1761_v1 = vmul.f32 %v1759_v19, %v1758_v32 }
 0x431   : > { %v1726_v2 = vadd.f32 %v1724_v61, %v1708_v27  ;;  %v1727_v45 = vadd.f32 %v1725_v39, %v1709_v62  ;;  %2079 = vrot.lane.b32.xlu0 %v4339_v0, %s7083_s27  ;;  %v1815_v42 = vstv %s5753_s24  ;;  %v1813_v25 = vsel %vm529_vm12, %v1809_v22, 0.0  ;;  %s5919_s24 = sld [smem:[#allocation6 + $0x6c]] }
 0x432   : > { %2081 = vrot.lane.b32.xlu1 %v4343_v31, %s7083_s27  ;;  %vm7091_vm9 = vcmp.lt.s32.totalorder %v4448_v35, 15  ;;  %v1778_v5 = vmul.f32 %v1777_v11, %v1775_v48  ;;  %v1779_v38 = vmul.f32 %v1777_v11, %v1776_v7  ;;  %vm7092_vm14 = vcmask 744448   ;;  %s5921_s27 = sld [smem:[#allocation6 + $0x6f]] }
 0x433   : > { %v1814_v36 = vsel %vm7091_vm9, %v1810_v56, 0.0  ;;  %v1744_v37 = vadd.f32 %v1742_v17, %v1726_v2  ;;  %v1745_v58 = vadd.f32 %v1743_v43, %v1727_v45  ;;  %v1844_v54 = vpop.permute.xlu0 %1843  ;;  %v1858_v14 = vpop.permute.xlu1 %1857  ;;  %v1827_v15 = vsel %vm7092_vm14, %v5589_v33, %v1824_v9  ;;  %vm7093_vm15 = vmmov %vm7092_vm14 }
 0x434   : > { %v1828_v12 = vsel %vm7093_vm15, %v1824_v9, %v1826_v63  ;;  %v1816_v59 = vmul.f32 %v1815_v42, %v1813_v25  ;;  %v1817_v60 = vmul.f32 %v1815_v42, %v1814_v36  ;;  %v1833_v4 = vstv %s5785_s29  ;;  %s5927_s29 = sld [smem:[#allocation6 + $0x90]] }
 0x435   : > { %v1762_v19 = vadd.f32 %v1760_v13, %v1744_v37  ;;  %v1763_v24 = vadd.f32 %v1761_v1, %v1745_v58  ;;  %2095 = vrot.lane.b32.xlu0 %v4327_v29, %s7094_s8  ;;  %vm7095_vm0 = vcmask 736256   ;;  %vm7097_vm9 = vcmask 760832  }
 0x436   : > { %v1845_v18 = vsel %vm7095_vm0, %v1840_v49, %v1842_v50  ;;  %vm7096_vm8 = vmmov %vm7095_vm0  ;;  %v1796_v33 = vsel %vm7097_vm9, %v5703_v23, %v5729_v8  ;;  %v1831_v20 = vsel %vm533_vm1, %v1827_v15, 0.0  ;;  %v1832_v47 = vsel %vm534_vm2, %v1828_v12, 0.0 }
 0x437   : > { %v1780_v41 = vadd.f32 %v1778_v5, %v1762_v19  ;;  %v1781_v11 = vadd.f32 %v1779_v38, %v1763_v24  ;;  %v1846_v57 = vsel %vm7096_vm8, %v1842_v50, %v1844_v54  ;;  %v1860_v55 = vpop.permute.xlu0 %1859  ;;  %v1862_v34 = vpop.permute.xlu1 %1861  ;;  %vm7098_vm14 = vmmov %vm7097_vm9  ;;  %vm7099_vm15 = vcmask 654336  }
 0x438   : > { %v1797_v40 = vsel %vm7098_vm14, %v5729_v8, %v5731_v44  ;;  %v1863_v46 = vsel %vm7099_vm15, %v1858_v14, %v1860_v55  ;;  %vm7100_vm0 = vmmov %vm7099_vm15  ;;  %v1849_v23 = vsel %vm537_vm3, %v1845_v18, 0.0  ;;  %v1851_v28 = vstv %s5810_s16  ;;  %s5930_s16 = sld [smem:[#allocation6 + $0x7e]] }
 0x439   : > { %v1800_v9 = vadd.f32 %v1796_v33, %v1780_v41  ;;  %v1801_v63 = vadd.f32 %v1797_v40, %v1781_v11  ;;  %v1864_v30 = vsel %vm7100_vm0, %v1860_v55, %v1862_v34  ;;  %v1850_v8 = vsel %vm538_vm10, %v1846_v57, 0.0 }
 0x43a   : > { %v1834_v53 = vmul.f32 %v1833_v4, %v1831_v20  ;;  %v1835_v21 = vmul.f32 %v1833_v4, %v1832_v47  ;;  %v5853_v61 = vsel %vm539_vm4, %v1863_v46, 0.0  ;;  %v1869_v39 = vstv %s5820_s3  ;;  %s5940_s3 = sld [smem:[#allocation6 + $0x62]] }
 0x43b   : > { %v1818_v44 = vadd.f32 %v1816_v59, %v1800_v9  ;;  %v1819_v6 = vadd.f32 %v1817_v60, %v1801_v63  ;;  %v1876_v10 = vpop.permute.xlu0 %1875  ;;  %v1878_v3 = vpop.permute.xlu1 %1877  ;;  %v5858_v26 = vsel %vm540_vm5, %v1864_v30, 0.0  ;;  %vm7101_vm8 = vcmask 646144  }
 0x43c   : > { %v1881_v52 = vsel %vm7101_vm8, %v1876_v10, %v1878_v3  ;;  %v1852_v27 = vmul.f32 %v1851_v28, %v1849_v23  ;;  %v1853_v62 = vmul.f32 %v1851_v28, %v1850_v8  ;;  %v1887_v50 = vstv %s5828_s30  ;;  %vm7102_vm9 = vmmov %vm7101_vm8  ;;  %s5944_s30 = sld [smem:[#allocation6 + $0x6e]] }
 0x43d   : > { %v1836_v16 = vadd.f32 %v1834_v53, %v1818_v44  ;;  %v1837_v32 = vadd.f32 %v1835_v21, %v1819_v6  ;;  %v5863_v49 = vsel %vm535_vm6, %v1881_v52, 0.0  ;;  %v1870_v22 = vmul.f32 %v1869_v39, %v5853_v61 }
 0x43e   : > { %v1871_v56 = vmul.f32 %v1869_v39, %v5858_v26  ;;  %vm7103_vm14 = vcmp.ge.s32.totalorder %v4448_v35, 2  ;;  %v1888_v42 = vmul.f32 %v1887_v50, %v5863_v49  ;;  %v1905_v54 = vstv %s5849_s5  ;;  %s5952_s5 = sld [smem:[#allocation6 + $0x64]] }
 0x43f   : > { %v1854_v17 = vadd.f32 %v1852_v27, %v1836_v16  ;;  %v1855_v43 = vadd.f32 %v1853_v62, %v1837_v32  ;;  %v1880_v48 = vpop.permute.xlu0 %1879  ;;  %v1894_v7 = vpop.permute.xlu1 %1893  ;;  %vm7104_vm15 = vcmask 637952   ;;  %vm7106_vm8 = vcmp.ge.s32.totalorder %v4440_v51, 1  ;;  %v7109_v27 = vld [vmem:[#allocation98_spill] sm:$0xff] }
 0x440   : > { %v1882_v2 = vsel %vm7102_vm9, %v1878_v3, %v1880_v48  ;;  %vm7105_vm0 = vmmov %vm7104_vm15  ;;  %vm7107_vm9 = vcmp.ge.s32.totalorder %v4448_v35, 1  ;;  %v1943_v33 = vstv %s3193_s26  ;;  %v2705_v3 = vstv %s5900_s7  ;;  %v7110_v48 = vld [vmem:[#allocation25_spill] sm:$0xff]  ;;  %s5959_s26 = sld [smem:[#allocation6 + $0x7f]] }
 0x441   : > { %v1872_v45 = vadd.f32 %v1870_v22, %v1854_v17  ;;  %v1873_v13 = vadd.f32 %v1871_v56, %v1855_v43  ;;  %v5871_v1 = vsel %vm7103_vm14, %v1882_v2, 0.0  ;;  %vm7108_vm14 = vcmp.lt.s32.totalorder %v4448_v35, 15  ;;  %s5965_s7 = sld [smem:[#allocation6 + $0x80]] }
 0x442   : > { %v1889_v25 = vmul.f32 %v1887_v50, %v5871_v1  ;;  %v1961_v16 = vstv %s5904_s25  ;;  %v2707_v62 = vmul.f32 %v2705_v3, %v7109_v27  ;;  %v2702_v17 = vstv %s5906_s19  ;;  %s5968_s25 = sld [smem:[#allocation6 + $0x81]] }
 0x443   : > { %v1896_v36 = vpop.permute.xlu0 %1895  ;;  %v1898_v37 = vpop.permute.xlu1 %1897  ;;  %v1890_v58 = vadd.f32 %v1888_v42, %v1872_v45  ;;  %v2711_v43 = vstv %s5910_s0  ;;  %v2717_v22 = vstv %s5912_s14  ;;  %s5974_s19 = sld [smem:[#allocation6 + $0x70]] }
 0x444   : > { %v1899_v14 = vsel %vm7104_vm15, %v1894_v7, %v1896_v36  ;;  %v1900_v5 = vsel %vm7105_vm0, %v1896_v36, %v1898_v37  ;;  %v1891_v38 = vadd.f32 %v1889_v25, %v1873_v13  ;;  %v2713_v7 = vmul.f32 %v2711_v43, %v7110_v48  ;;  %v7111_v13 = vld [vmem:[#allocation23_spill] sm:$0xff]  ;;  %v7112_v37 = vld [vmem:[#allocation24_spill] sm:$0xff]  ;;  %s5979_s0 = sld [smem:[#allocation6 + $0x82]] }
 0x445   : > { %v5880_v19 = vsel %vm7106_vm8, %v1899_v14, 0.0  ;;  %v5884_v24 = vsel %vm7107_vm9, %v1900_v5, 0.0  ;;  %v2706_v42 = vmul.f32 %v2705_v3, %v7111_v13  ;;  %v2709_v36 = vadd.f32 %v2707_v62, %v2702_v17  ;;  %v7113_v14 = vld [vmem:[#allocation103_spill] sm:$0xff]  ;;  %s5986_s14 = sld [smem:[#allocation6 + $0x83]] }
 0x446   : > { %v1906_v15 = vmul.f32 %v1905_v54, %v5880_v19  ;;  %v1907_v12 = vmul.f32 %v1905_v54, %v5884_v24  ;;  %v2507_v54 = vstv %s5914_s28  ;;  %v2712_v5 = vmul.f32 %v2711_v43, %v7113_v14  ;;  %s5995_s28 = sld [smem:[#allocation6 + $0x71]] }
 0x447   : > { %v1919_v59 = vpop.permute.xlu0 %1918  ;;  %vm7123_vm15 = vcmask 523264   ;;  %vm7126_vm0 = vcmask 515072   ;;  %vm7128_vm9 = vcmp.ge.s32.totalorder %v4448_v35, 2 }
 0x448   : > { %v1921_v60 = vpop.permute.xlu1 %1920  ;;  %v1908_v4 = vadd.f32 %v1906_v15, %v1890_v58  ;;  %v1909_v41 = vadd.f32 %v1907_v12, %v1891_v38  ;;  %v2719_v58 = vmul.f32 %v2717_v22, %v7112_v37  ;;  %v2513_v38 = vstv %s5919_s24  ;;  %s6008_s24 = sld [smem:[#allocation6 + $0x65]]  ;;  %vm7127_vm8 = vmmov %vm7126_vm0 }
 0x449   : > { %v1924_v57 = vsel %vm1011_vm13, %v1919_v59, %v1921_v60  ;;  %v2509_v15 = vmul.f32 %v2507_v54, %v7110_v48  ;;  %v2715_v12 = vadd.f32 %v2713_v7, %v2709_v36 }
 0x44a   : > { %v1928_v46 = vadd.f32 %v1924_v57, %v1908_v4  ;;  %v2708_v4 = vadd.f32 %v2706_v42, %v2702_v17  ;;  %v2504_v57 = vstv %s5916_s17  ;;  %v7115_v17 = vld [vmem:[#allocation27_spill] sm:$0xff]  ;;  %s5998_s17 = sld [smem:[#allocation6 + $0x4c]] }
 0x44b   : > { %v1923_v11 = vpop.permute.xlu0 %1922 }
 0x44c   : > { %v1932_v18 = vpop.permute.xlu1 %1931  ;;  %v1925_v55 = vsel %vm1011_vm13, %v1921_v60, %v1923_v11 }
 0x44d   : > { %v1929_v30 = vadd.f32 %v1925_v55, %v1909_v41  ;;  %v7114_v41 = vld [vmem:[#allocation22_spill] sm:$0xff]  ;;  %v2545_v55 = vstv %s5921_s27  ;;  %s6015_s27 = sld [smem:[#allocation6 + $0x85]] }
 0x44e   : > { %v2718_v11 = vmul.f32 %v2717_v22, %v7114_v41  ;;  %v2514_v22 = vmul.f32 %v2513_v38, %v7114_v41 }
 0x44f   : > { %v1934_v34 = vpop.permute.xlu0 %1933 }
 0x450   : > { %v1936_v40 = vpop.permute.xlu1 %1935  ;;  %v1937_v20 = vsel %vm1025_vm11, %v1932_v18, %v1934_v34 }
 0x451   : > { %v1938_v47 = vsel %vm1025_vm11, %v1934_v34, %v1936_v40  ;;  %v5894_v9 = vsel %vm529_vm12, %v1937_v20, 0.0  ;;  %v2721_v34 = vadd.f32 %v2719_v58, %v2715_v12  ;;  %v2714_v40 = vadd.f32 %v2712_v5, %v2708_v4  ;;  %v7116_v5 = vld [vmem:[#allocation26_spill] sm:$0xff]  ;;  %v7117_v12 = vld [vmem:[#allocation99_spill] sm:$0xff] }
 0x452   : > { %v5898_v63 = vsel %vm7108_vm14, %v1938_v47, 0.0  ;;  %v1944_v23 = vmul.f32 %v1943_v33, %v5894_v9  ;;  %v2743_v20 = vstv %s5930_s16  ;;  %v2369_v47 = vstv %s5927_s29  ;;  %s6022_s29 = sld [smem:[#allocation6 + $0x73]] }
 0x453   : > { %v1945_v28 = vmul.f32 %v1943_v33, %v5898_v63  ;;  %v1950_v8 = vpop.permute.xlu0 %1949  ;;  %v2515_v33 = vmul.f32 %v2513_v38, %v7112_v37  ;;  %v2720_v3 = vadd.f32 %v2718_v11, %v2714_v40  ;;  %v2745_v43 = vmul.f32 %v2743_v20, %v7115_v17  ;;  %s6027_s16 = sld [smem:[#allocation6 + $0x67]] }
 0x454   : > { %v2731_v44 = vpop.permute.xlu1 %2730  ;;  %v1946_v6 = vadd.f32 %v1944_v23, %v1928_v46  ;;  %v2372_v46 = vstv %s5940_s3  ;;  %v2744_v38 = vmul.f32 %v2743_v20, %v7116_v5  ;;  %vm7121_vm11 = vcmask 605184   ;;  %s6059_s3 = sld [smem:[#allocation6 + $0x74]] }
 0x455   : > { %v5908_v53 = vadd.f32 %v1945_v28, %v1929_v30  ;;  %v2508_v30 = vmul.f32 %v2507_v54, %v7113_v14  ;;  %v2373_v7 = vmul.f32 %v2372_v46, %v7114_v41  ;;  %v2374_v54 = vmul.f32 %v2372_v46, %v7112_v37 }
 0x456   : > { %v2749_v14 = vstv %s5959_s26  ;;  %v2755_v41 = vstv %s5965_s7  ;;  %s6081_s26 = sld [smem:[#allocation6 + $0x4d]]  ;;  %vm7129_vm14 = vcmask 506880  }
 0x457   : > { %v2733_v21 = vpop.permute.xlu0 %2732  ;;  %v2751_v4 = vmul.f32 %v2749_v14, %v7117_v12  ;;  %v2376_v20 = vadd.f32 %v2374_v54, %v2369_v47  ;;  %s6086_s7 = sld [smem:[#allocation6 + $0x4e]] }
 0x458   : > { %v2735_v10 = vpop.permute.xlu1 %2734  ;;  %v2736_v23 = vsel %vm1011_vm13, %v2731_v44, %v2733_v21 }
 0x459   : > { %v2737_v18 = vsel %vm1011_vm13, %v2733_v21, %v2735_v10 }
 0x45a   : > { %v2741_v28 = vadd.f32 %v2737_v18, %v2721_v34  ;;  %v2375_v34 = vadd.f32 %v2373_v7, %v2369_v47  ;;  %v2767_v47 = vstv %s5979_s0  ;;  %s7125_s0 = smov 32  }
 0x45b   : > { %v1952_v39 = vpop.permute.xlu0 %1951 }
 0x45c   : > { %v5923_v52 = vpop.permute.xlu1 %2526  ;;  %v1955_v32 = vsel %vm1044_vm7, %v1950_v8, %v1952_v39  ;;  %v2511_v8 = vadd.f32 %v2509_v15, %v2504_v57  ;;  %v2747_v13 = vadd.f32 %v2745_v43, %v2741_v28  ;;  %v2547_v28 = vmul.f32 %v2545_v55, %v7117_v12 }
 0x45d   : > { %v5934_v50 = vsel %vm533_vm1, %v1955_v32, 0.0  ;;  %v2539_v32 = vstv %s5944_s30  ;;  %v2761_v43 = vstv %s5968_s25  ;;  %s6064_s30 = sld [smem:[#allocation6 + $0x86]]  ;;  %s3577_s25 = smov 16  }
 0x45e   : > { %v1962_v56 = vmul.f32 %v1961_v16, %v5934_v50  ;;  %v2517_v44 = vadd.f32 %v2515_v33, %v2511_v8  ;;  %v2541_v18 = vmul.f32 %v2539_v32, %v7115_v17  ;;  %v2540_v37 = vmul.f32 %v2539_v32, %v7116_v5 }
 0x45f   : > { %v2529_v2 = vpop.permute.xlu0 %2528  ;;  %v2753_v40 = vadd.f32 %v2751_v4, %v2747_v13  ;;  %v2404_v4 = vstv %s6008_s24  ;;  %s3201_s24 = sld [smem:[#allocation6 + $0x52]] }
 0x460   : > { %v2531_v45 = vpop.permute.xlu1 %2530  ;;  %v5946_v25 = vadd.f32 %v1962_v56, %v1946_v6  ;;  %v2740_v56 = vadd.f32 %v2736_v23, %v2720_v3  ;;  %v7119_v3 = vld [vmem:[#allocation29_spill] sm:$0xff] }
 0x461   : > { %v2533_v27 = vsel %vm1011_vm13, %v2529_v2, %v2531_v45  ;;  %v2398_v45 = vstv %s5952_s5  ;;  %v2756_v32 = vmul.f32 %v2755_v41, %v7119_v3  ;;  %v2583_v3 = vstv %s6022_s29  ;;  %s6070_s5 = sld [smem:[#allocation6 + $0x87]]  ;;  %s7143_s29 = smov 45  }
 0x462   : > { %v2537_v42 = vadd.f32 %v2533_v27, %v2517_v44  ;;  %v2399_v33 = vmul.f32 %v2398_v45, %v7116_v5  ;;  %v7120_v27 = vld [vmem:[#allocation31_spill] sm:$0xff] }
 0x463   : > { %v5955_v59 = vpop.permute.xlu0 %2786 }
 0x464   : > { %v5957_v60 = vpop.permute.xlu1 %2788 }
 0x467   : > { %v5977_v6 = vpop.permute.xlu0 %2790 }
 0x468   : > { %v1954_v10 = vpop.permute.xlu1 %1953 }
 0x469   : > { %v1956_v62 = vsel %vm1044_vm7, %v1952_v39, %v1954_v10  ;;  %v2510_v39 = vadd.f32 %v2508_v30, %v2504_v57  ;;  %v2746_v57 = vadd.f32 %v2744_v38, %v2740_v56  ;;  %v7118_v30 = vld [vmem:[#allocation104_spill] sm:$0xff]  ;;  %v2400_v10 = vmul.f32 %v2398_v45, %v7115_v17  ;;  %vm7122_vm7 = vmmov %vm7121_vm11 }
 0x46a   : > { %v5990_v21 = vsel %vm534_vm2, %v1956_v62, 0.0  ;;  %v2546_v23 = vmul.f32 %v2545_v55, %v7118_v30  ;;  %v2750_v8 = vmul.f32 %v2749_v14, %v7118_v30  ;;  %v2757_v62 = vmul.f32 %v2755_v41, %v7120_v27 }
 0x46b   : > { %v1963_v48 = vmul.f32 %v1961_v16, %v5990_v21  ;;  %v2386_v36 = vpop.permute.xlu0 %2385  ;;  %v2532_v16 = vsel %vm1011_vm13, %v5923_v52, %v2529_v2  ;;  %v2516_v11 = vadd.f32 %v2514_v22, %v2510_v39  ;;  %v2551_v22 = vstv %s5974_s19  ;;  %s6101_s19 = sld [smem:[#allocation6 + $0x4f]] }
 0x46c   : > { %v2388_v58 = vpop.permute.xlu1 %2387  ;;  %v2752_v44 = vadd.f32 %v2750_v8, %v2746_v57  ;;  %v2773_v56 = vstv %s5986_s14  ;;  %v2557_v55 = vstv %s5995_s28  ;;  %v1979_v17 = vstv %s5998_s17  ;;  %s7131_s14 = smov 48   ;;  %s3206_s28 = sld [smem:[#allocation6 + $0x57]] }
 0x46d   : > { %v1965_v15 = vadd.f32 %v1963_v48, %v5908_v53  ;;  %v2536_v52 = vadd.f32 %v2532_v16, %v2516_v11  ;;  %v2543_v53 = vadd.f32 %v2541_v18, %v2537_v42  ;;  %v2759_v48 = vadd.f32 %v2757_v62, %v2753_v40  ;;  %s7136_s17 = smov 47  }
 0x46e   : > { %v2391_v42 = vsel %vm1011_vm13, %v2386_v36, %v2388_v58  ;;  %v2553_v38 = vmul.f32 %v2551_v22, %v5871_v1  ;;  %v2763_v36 = vmul.f32 %v2761_v43, %v5858_v26  ;;  %v2799_v8 = vstv %s6015_s27  ;;  %s7140_s27 = smov 46  }
 0x46f   : > { %v2390_v2 = vpop.permute.xlu0 %2389  ;;  %v2542_v7 = vadd.f32 %v2540_v37, %v2536_v52  ;;  %v2549_v39 = vadd.f32 %v2547_v28, %v2543_v53  ;;  %v2395_v57 = vadd.f32 %v2391_v42, %v2375_v34  ;;  %v2552_v28 = vmul.f32 %v2551_v22, %v5863_v49 }
 0x470   : > { %v1968_v46 = vpop.permute.xlu1 %1967  ;;  %v2392_v54 = vsel %vm1011_vm13, %v2388_v58, %v2390_v2  ;;  %v2758_v58 = vadd.f32 %v2756_v32, %v2752_v44  ;;  %v2762_v2 = vmul.f32 %v2761_v43, %v5853_v61  ;;  %v2768_v34 = vmul.f32 %v2767_v47, %v5863_v49 }
 0x471   : > { %v2548_v18 = vadd.f32 %v2546_v23, %v2542_v7  ;;  %v2396_v37 = vadd.f32 %v2392_v54, %v2376_v20  ;;  %v2555_v53 = vadd.f32 %v2553_v38, %v2549_v39  ;;  %v2559_v23 = vmul.f32 %v2557_v55, %v5884_v24 }
 0x472   : > { %v2769_v20 = vmul.f32 %v2767_v47, %v5871_v1  ;;  %v2764_v32 = vadd.f32 %v2762_v2, %v2758_v58  ;;  %v2430_v61 = vstv %s6027_s16  ;;  %v2401_v27 = vadd.f32 %v2399_v33, %v2395_v57  ;;  %s7144_s16 = smov 44  }
 0x473   : > { %v1970_v13 = vpop.permute.xlu0 %1969  ;;  %v2402_v62 = vadd.f32 %v2400_v10, %v2396_v37  ;;  %v2774_v22 = vmul.f32 %v2773_v56, %v5880_v19  ;;  %v2775_v7 = vmul.f32 %v2773_v56, %v5884_v24  ;;  %v2558_v1 = vmul.f32 %v2557_v55, %v5880_v19 }
 0x474   : > { %v1972_v45 = vpop.permute.xlu1 %1971  ;;  %v1973_v14 = vsel %vm7121_vm11, %v1968_v46, %v1970_v13  ;;  %v2765_v46 = vadd.f32 %v2763_v36, %v2759_v48  ;;  %v2405_v39 = vmul.f32 %v2404_v4, %v5880_v19  ;;  %v2406_v33 = vmul.f32 %v2404_v4, %v5884_v24 }
 0x475   : > { %v1974_v5 = vsel %vm7122_vm7, %v1970_v13, %v1972_v45  ;;  %v6037_v16 = vsel %vm537_vm3, %v1973_v14, 0.0  ;;  %v2770_v10 = vadd.f32 %v2768_v34, %v2764_v32  ;;  %v2431_v56 = vmul.f32 %v2430_v61, %v5894_v9  ;;  %vm7132_vm7 = vmmov %vm7129_vm14 }
 0x476   : > { %v6041_v12 = vsel %vm538_vm10, %v1974_v5, 0.0  ;;  %v1980_v41 = vmul.f32 %v1979_v17, %v6037_v16  ;;  %v2771_v48 = vadd.f32 %v2769_v20, %v2765_v46  ;;  %v2407_v54 = vadd.f32 %v2405_v39, %v2401_v27 }
 0x477   : > { %v1981_v11 = vmul.f32 %v1979_v17, %v6041_v12  ;;  %v2571_v40 = vpop.permute.xlu0 %2570  ;;  %v2585_v17 = vmul.f32 %v2583_v3, %v5898_v63  ;;  %v2408_v14 = vadd.f32 %v2406_v33, %v2402_v62  ;;  %v2432_v55 = vmul.f32 %v2430_v61, %v5898_v63 }
 0x478   : > { %v2573_v52 = vpop.permute.xlu1 %2572  ;;  %v6049_v30 = vadd.f32 %v1980_v41, %v5946_v25  ;;  %v2554_v25 = vadd.f32 %v2552_v28, %v2548_v18  ;;  %v2777_v19 = vadd.f32 %v2775_v7, %v2771_v48  ;;  %v2793_v24 = vsel %vm1011_vm13, %v5957_v60, %v5977_v6 }
 0x479   : > { %v6051_v26 = vadd.f32 %v1981_v11, %v1965_v15  ;;  %v2561_v15 = vadd.f32 %v2559_v23, %v2555_v53  ;;  %v2576_v13 = vsel %vm1011_vm13, %v2571_v40, %v2573_v52  ;;  %v2776_v18 = vadd.f32 %v2774_v22, %v2770_v10 }
 0x47a   : > { %v2560_v45 = vadd.f32 %v2558_v1, %v2554_v25  ;;  %v2589_v57 = vstv %s6059_s3  ;;  %v2584_v37 = vmul.f32 %v2583_v3, %v5894_v9  ;;  %v2797_v40 = vadd.f32 %v2793_v24, %v2777_v19  ;;  %s7145_s3 = smov 43  }
 0x47b   : > { %v2575_v43 = vpop.permute.xlu0 %2574  ;;  %v2591_v6 = vmul.f32 %v2589_v57, %v5990_v21  ;;  %v2801_v28 = vmul.f32 %v2799_v8, %v5898_v63  ;;  %v2805_v23 = vstv %s6064_s30  ;;  %v2792_v61 = vsel %vm1011_vm13, %v5955_v59, %v5957_v60  ;;  %s7146_s30 = smov 42  }
 0x47c   : > { %v2418_v44 = vpop.permute.xlu1 %2417  ;;  %v2577_v49 = vsel %vm1011_vm13, %v2573_v52, %v2575_v43  ;;  %v2580_v36 = vadd.f32 %v2576_v13, %v2560_v45  ;;  %v2590_v27 = vmul.f32 %v2589_v57, %v5934_v50  ;;  %v2811_v62 = vstv %s6070_s5  ;;  %s7147_s5 = smov 31  }
 0x47d   : > { %v2581_v47 = vadd.f32 %v2577_v49, %v2561_v15  ;;  %v2796_v43 = vadd.f32 %v2792_v61, %v2776_v18  ;;  %v2803_v15 = vadd.f32 %v2801_v28, %v2797_v40  ;;  %v2807_v63 = vmul.f32 %v2805_v23, %v5990_v21 }
 0x47e   : > { %v2586_v34 = vadd.f32 %v2584_v37, %v2580_v36  ;;  %v2800_v59 = vmul.f32 %v2799_v8, %v5894_v9  ;;  %v1997_v60 = vstv %s6081_s26  ;;  %v2813_v48 = vmul.f32 %v2811_v62, %v6041_v12  ;;  %s3213_s26 = sld [smem:[#allocation6 + $0x5e]] }
 0x47f   : > { %v2420_v42 = vpop.permute.xlu0 %2419  ;;  %v2587_v58 = vadd.f32 %v2585_v17, %v2581_v47  ;;  %v2806_v39 = vmul.f32 %v2805_v23, %v5934_v50  ;;  %v2809_v33 = vadd.f32 %v2807_v63, %v2803_v15  ;;  %v2015_v9 = vstv %s6086_s7  ;;  %s7148_s7 = smov 30  }
 0x480   : > { %v2422_v5 = vpop.permute.xlu1 %2421  ;;  %v2423_v38 = vsel %vm1011_vm13, %v2418_v44, %v2420_v42  ;;  %v2592_v49 = vadd.f32 %v2590_v27, %v2586_v34  ;;  %v2802_v47 = vadd.f32 %v2800_v59, %v2796_v43  ;;  %v2812_v8 = vmul.f32 %v2811_v62, %v6037_v16 }
 0x481   : > { %v2424_v4 = vsel %vm1011_vm13, %v2420_v42, %v2422_v5  ;;  %v2427_v41 = vadd.f32 %v2423_v38, %v2407_v54  ;;  %v2593_v20 = vadd.f32 %v2591_v6, %v2587_v58  ;;  %vm7124_vm13 = vmmov %vm7123_vm15  ;;  %v2815_v45 = vadd.f32 %v2813_v48, %v2809_v33 }
 0x482   : > { %v2428_v11 = vadd.f32 %v2424_v4, %v2408_v14  ;;  %v2594_v54 = vmax.f32 %v2592_v49, 0.0  ;;  %v2033_v16 = vstv %s6101_s19  ;;  %vm7130_vm11 = vcmp.ge.s32.totalorder %v4440_v51, 1  ;;  %s7149_s19 = smov 28  }
 0x483   : > { %v2433_v52 = vadd.f32 %v2431_v56, %v2427_v41  ;;  %v1986_v2 = vpop.permute.xlu0 %1985  ;;  %v2595_v7 = vmax.f32 %v2593_v20, 0.0  ;;  %v2817_v41 = vmax.f32 %v2815_v45, 0.0  ;;  %v2167_v49 = vstv %s3206_s28  ;;  %s7151_s28 = smov 27  }
 0x484   : > { %v2434_v53 = vadd.f32 %v2432_v55, %v2428_v11  ;;  %v1988_v46 = vpop.permute.xlu1 %1987  ;;  %v2808_v55 = vadd.f32 %v2806_v39, %v2802_v47 }
 0x485   : > { %v2435_v32 = vmax.f32 %v2433_v52, 0.0  ;;  %v1991_v25 = vsel %vm7123_vm15, %v1986_v2, %v1988_v46  ;;  %vm7133_vm15 = vcmp.ge.s32.totalorder %v4448_v35, 1 }
 0x486   : > { %v2436_v3 = vmax.f32 %v2434_v53, 0.0  ;;  %v1995_v21 = vsel %vm539_vm4, %v1991_v25, 0.0  ;;  %v2814_v58 = vadd.f32 %v2812_v8, %v2808_v55 }
 0x487   : > { %v1990_v44 = vpop.permute.xlu0 %1989  ;;  %2439 = vrot.lane.b32.xlu1 %v2435_v32, %s3577_s25  ;;  %v1998_v13 = vmul.f32 %v1997_v60, %v1995_v21 }
 0x488   : > { %2441 = vrot.lane.b32.xlu0 %v2436_v3, %s3577_s25  ;;  %v2004_v22 = vpop.permute.xlu1 %2003  ;;  %v1992_v1 = vsel %vm7124_vm13, %v1988_v46, %v1990_v44  ;;  %v2816_v46 = vmax.f32 %v2814_v58, 0.0  ;;  %vm7134_vm13 = vcmask 498688  }
 0x489   : > { %v1996_v50 = vsel %vm540_vm5, %v1992_v1, 0.0  ;;  %v2000_v4 = vadd.f32 %v1998_v13, %v6049_v30  ;;  %v2089_v1 = vstv %s3201_s24  ;;  %v2168_v13 = vmul.f32 %v2167_v49, %v4327_v29  ;;  %s3226_s24 = sld [smem:[#allocation6 + $0x69]] }
 0x48a   : > { %v1999_v38 = vmul.f32 %v1997_v60, %v1996_v50 }
 0x48b   : > { %v2006_v10 = vpop.permute.xlu0 %2005  ;;  %2097 = vrot.lane.b32.xlu1 %v4339_v0, %s7094_s8 }
 0x48c   : > { %2600 = vrot.lane.b32.xlu0 %v2595_v7, %s7125_s0  ;;  %v2008_v12 = vpop.permute.xlu1 %2007  ;;  %v2009_v17 = vsel %vm7126_vm0, %v2004_v22, %v2006_v10  ;;  %v2001_v30 = vadd.f32 %v1999_v38, %v6051_v26  ;;  %vm7135_vm0 = vmmov %vm7134_vm13 }
 0x48d   : > { %v2010_v56 = vsel %vm7127_vm8, %v2006_v10, %v2008_v12  ;;  %v2013_v42 = vsel %vm535_vm6, %v2009_v17, 0.0  ;;  %vm7137_vm8 = vcmask 490496  }
 0x48e   : > { %v2016_v14 = vmul.f32 %v2015_v9, %v2013_v42  ;;  %v2014_v5 = vsel %vm7128_vm9, %v2010_v56, 0.0  ;;  %vm7138_vm9 = vmmov %vm7137_vm8  ;;  %v2169_v42 = vmul.f32 %v2167_v49, %v4339_v0 }
 0x48f   : > { %v2022_v19 = vpop.permute.xlu0 %2021  ;;  %2598 = vrot.lane.b32.xlu1 %v2594_v54, %s7125_s0  ;;  %v2017_v18 = vmul.f32 %v2015_v9, %v2014_v5  ;;  %v2170_v54 = vmul.f32 %v2167_v49, %v4343_v31 }
 0x490   : > { %2099 = vrot.lane.b32.xlu0 %v4343_v31, %s7094_s8  ;;  %v2024_v24 = vpop.permute.xlu1 %2023  ;;  %v2018_v37 = vadd.f32 %v2016_v14, %v2000_v4  ;;  %s6136_s8 = sld [smem:[#allocation6 + $0x51]]  ;;  %v2295_v14 = vstv %s3213_s26 }
 0x491   : > { %v2027_v36 = vsel %vm7129_vm14, %v2022_v19, %v2024_v24  ;;  %v2019_v28 = vadd.f32 %v2017_v18, %v2001_v30  ;;  %vm7139_vm14 = vcmp.lt.s32.totalorder %v4448_v35, 15  ;;  %v2296_v55 = vmul.f32 %v2295_v14, %v4327_v29  ;;  %s6286_s26 = sld [smem:[#allocation6 + $0x55]] }
 0x492   : > { %v2031_v11 = vsel %vm7130_vm11, %v2027_v36, 0.0  ;;  %vm7141_vm11 = vcmask 482304   ;;  %v2298_v5 = vmul.f32 %v2295_v14, %v4343_v31  ;;  %v2297_v19 = vmul.f32 %v2295_v14, %v4339_v0 }
 0x493   : > { %v2034_v57 = vmul.f32 %v2033_v16, %v2031_v11  ;;  %v2026_v40 = vpop.permute.xlu0 %2025  ;;  %2113 = vrot.lane.b32.xlu1 %v4327_v29, %s7131_s14 }
 0x494   : > { %2822 = vrot.lane.b32.xlu0 %v2817_v41, %s7131_s14  ;;  %v2047_v6 = vpop.permute.xlu1 %2046  ;;  %v2028_v52 = vsel %vm7132_vm7, %v2024_v24, %v2026_v40  ;;  %vm7142_vm7 = vmmov %vm7141_vm11  ;;  %v2460_v24 = vstv %s3226_s24  ;;  %s3243_s24 = sld [smem:[#allocation6 + $0x78]] }
 0x495   : > { %v2036_v53 = vadd.f32 %v2034_v57, %v2018_v37  ;;  %v2032_v2 = vsel %vm7133_vm15, %v2028_v52, 0.0  ;;  %vm2443_vm15 = vcmask 130048  }
 0x496   : > { %v2035_v23 = vmul.f32 %v2033_v16, %v2032_v2  ;;  %v2071_v25 = vstv %s6136_s8  ;;  %s7150_s8 = smov 29  }
 0x497   : > { %v2049_v34 = vpop.permute.xlu0 %2048  ;;  %2820 = vrot.lane.b32.xlu1 %v2816_v46, %s7131_s14 }
 0x498   : > { %2115 = vrot.lane.b32.xlu0 %v4339_v0, %s7131_s14  ;;  %v2051_v20 = vpop.permute.xlu1 %2050  ;;  %v2052_v32 = vsel %vm7134_vm13, %v2047_v6, %v2049_v34  ;;  %v2037_v26 = vadd.f32 %v2035_v23, %v2019_v28  ;;  %vm7154_vm13 = vcmask 474112  }
 0x499   : > { %v2053_v3 = vsel %vm7135_vm0, %v2049_v34, %v2051_v20  ;;  %v2056_v61 = vadd.f32 %v2052_v32, %v2036_v53  ;;  %vm7155_vm0 = vmmov %vm7154_vm13 }
 0x49a   : > { %v2057_v27 = vadd.f32 %v2053_v3, %v2037_v26 }
 0x49b   : > { %v2060_v62 = vpop.permute.xlu0 %2059  ;;  %2117 = vrot.lane.b32.xlu1 %v4343_v31, %s7131_s14 }
 0x49c   : > { %2131 = vrot.lane.b32.xlu0 %v4327_v29, %s7136_s17  ;;  %v2062_v43 = vpop.permute.xlu1 %2061 }
 0x49d   : > { %v2065_v15 = vsel %vm7137_vm8, %v2060_v62, %v2062_v43  ;;  %vm7156_vm8 = vcmask 261120  }
 0x49e   : > { %v2069_v63 = vsel %vm529_vm12, %v2065_v15, 0.0 }
 0x49f   : > { %v2072_v44 = vmul.f32 %v2071_v25, %v2069_v63  ;;  %v2064_v22 = vpop.permute.xlu0 %2063  ;;  %2133 = vrot.lane.b32.xlu1 %v4339_v0, %s7136_s17 }
 0x4a0   : > { %2135 = vrot.lane.b32.xlu0 %v4343_v31, %s7136_s17  ;;  %v2078_v59 = vpop.permute.xlu1 %2077  ;;  %v2066_v48 = vsel %vm7138_vm9, %v2062_v43, %v2064_v22  ;;  %s7152_s17 = smov 26   ;;  %vm7157_vm9 = vmmov %vm7156_vm8 }
 0x4a1   : > { %v2074_v60 = vadd.f32 %v2072_v44, %v2056_v61  ;;  %v2070_v7 = vsel %vm7139_vm14, %v2066_v48, 0.0  ;;  %vm7158_vm14 = vmmov %vm7156_vm8 }
 0x4a2   : > { %v2073_v21 = vmul.f32 %v2071_v25, %v2070_v7 }
 0x4a3   : > { %v2080_v47 = vpop.permute.xlu0 %2079  ;;  %2149 = vrot.lane.b32.xlu1 %v4327_v29, %s7140_s27 }
 0x4a4   : > { %2151 = vrot.lane.b32.xlu0 %v4339_v0, %s7140_s27  ;;  %v2082_v39 = vpop.permute.xlu1 %2081  ;;  %v2075_v33 = vadd.f32 %v2073_v21, %v2057_v27  ;;  %v2083_v10 = vsel %vm7141_vm11, %v2078_v59, %v2080_v47  ;;  %vm7159_vm11 = vcmask 392192  }
 0x4a5   : > { %v2084_v9 = vsel %vm7142_vm7, %v2080_v47, %v2082_v39  ;;  %v2087_v12 = vsel %vm533_vm1, %v2083_v10, 0.0  ;;  %vm7160_vm7 = vmmov %vm7159_vm11 }
 0x4a6   : > { %v2088_v8 = vsel %vm534_vm2, %v2084_v9, 0.0  ;;  %v2090_v17 = vmul.f32 %v2089_v1, %v2087_v12 }
 0x4a7   : > { %v2091_v56 = vmul.f32 %v2089_v1, %v2088_v8  ;;  %2153 = vrot.lane.b32.xlu1 %v4343_v31, %s7140_s27  ;;  %v2096_v16 = vpop.permute.xlu0 %2095  ;;  %s6244_s27 = sld [smem:[#allocation6 + $0x53]] }
 0x4a8   : > { %2174 = vrot.lane.b32.xlu0 %v2168_v13, %s7143_s29  ;;  %v6176_v45 = vadd.f32 %v2090_v17, %v2074_v60 }
 0x4a9   : > { %v6178_v50 = vadd.f32 %v2091_v56, %v2075_v33 }
 0x4ab   : > { %2176 = vrot.lane.b32.xlu1 %v2169_v42, %s7143_s29 }
 0x4ac   : > { %2178 = vrot.lane.b32.xlu0 %v2170_v54, %s7143_s29  ;;  %s3241_s29 = sld [smem:[#allocation6 + $0x76]] }
 0x4ad   : > { %v2107_v18 = vstv %s6244_s27  ;;  %s6348_s27 = sld [smem:[#allocation6 + $0x59]] }
 0x4af   : > { %2187 = vrot.lane.b32.xlu1 %v4327_v29, %s7144_s16 }
 0x4b0   : > { %2189 = vrot.lane.b32.xlu0 %v4339_v0, %s7144_s16 }
 0x4b2   : > { %v2618_v53 = vstv %s3241_s29  ;;  %s3265_s29 = sld [smem:[#allocation6 + $0x8c]] }
 0x4b3   : > { %2191 = vrot.lane.b32.xlu1 %v4343_v31, %s7144_s16  ;;  %s7153_s16 = smov 112  }
 0x4b4   : > { %2205 = vrot.lane.b32.xlu0 %v4327_v29, %s7145_s3 }
 0x4b7   : > { %2207 = vrot.lane.b32.xlu1 %v4339_v0, %s7145_s3 }
 0x4b8   : > { %2209 = vrot.lane.b32.xlu0 %v4343_v31, %s7145_s3  ;;  %s3242_s3 = sld [smem:[#allocation6 + $0x77]] }
 0x4bb   : > { %2223 = vrot.lane.b32.xlu1 %v4327_v29, %s7146_s30 }
 0x4bc   : > { %2225 = vrot.lane.b32.xlu0 %v4339_v0, %s7146_s30 }
 0x4be   : > { %v2638_v25 = vstv %s3242_s3  ;;  %s3244_s3 = sld [smem:[#allocation6 + $0x79]] }
 0x4bf   : > { %2227 = vrot.lane.b32.xlu1 %v4343_v31, %s7146_s30  ;;  %s6261_s30 = sld [smem:[#allocation6 + $0x54]] }
 0x4c0   : > { %2241 = vrot.lane.b32.xlu0 %v4327_v29, %s7125_s0 }
 0x4c3   : > { %2243 = vrot.lane.b32.xlu1 %v4339_v0, %s7125_s0 }
 0x4c4   : > { %2245 = vrot.lane.b32.xlu0 %v4343_v31, %s7125_s0 }
 0x4c5   : > { %v2125_v63 = vstv %s6261_s30  ;;  %s3266_s30 = sld [smem:[#allocation6 + $0x8d]] }
 0x4c7   : > { %2259 = vrot.lane.b32.xlu1 %v4327_v29, %s7147_s5 }
 0x4c8   : > { %2261 = vrot.lane.b32.xlu0 %v4339_v0, %s7147_s5 }
 0x4cb   : > { %2263 = vrot.lane.b32.xlu1 %v4343_v31, %s7147_s5  ;;  %s3262_s5 = sld [smem:[#allocation6 + $0x89]] }
 0x4cc   : > { %2277 = vrot.lane.b32.xlu0 %v4327_v29, %s7148_s7 }
 0x4cf   : > { %2279 = vrot.lane.b32.xlu1 %v4339_v0, %s7148_s7 }
 0x4d0   : > { %2281 = vrot.lane.b32.xlu0 %v4343_v31, %s7148_s7  ;;  %s3263_s7 = sld [smem:[#allocation6 + $0x8a]] }
 0x4d1   : > { %v2840_v48 = vstv %s3262_s5  ;;  %s6387_s5 = sld [smem:[#allocation6 + $0x5c]] }
 0x4d3   : > { %2317 = vrot.lane.b32.xlu1 %v4339_v0, %s7149_s19 }
 0x4d4   : > { %2315 = vrot.lane.b32.xlu0 %v4327_v29, %s7149_s19 }
 0x4d7   : > { %2302 = vrot.lane.b32.xlu1 %v2296_v55, %s7150_s8 }
 0x4d8   : > { %2319 = vrot.lane.b32.xlu0 %v4343_v31, %s7149_s19  ;;  %s6301_s19 = sld [smem:[#allocation6 + $0x56]] }
 0x4db   : > { %2306 = vrot.lane.b32.xlu1 %v2298_v5, %s7150_s8 }
 0x4dc   : > { %2304 = vrot.lane.b32.xlu0 %v2297_v19, %s7150_s8  ;;  %s3264_s8 = sld [smem:[#allocation6 + $0x8b]] }
 0x4df   : > { %2335 = vrot.lane.b32.xlu1 %v4339_v0, %s7151_s28 }
 0x4e0   : > { %2333 = vrot.lane.b32.xlu0 %v4327_v29, %s7151_s28 }
 0x4e3   : > { %2353 = vrot.lane.b32.xlu1 %v4339_v0, %s7152_s17 }
 0x4e4   : > { %2337 = vrot.lane.b32.xlu0 %v4343_v31, %s7151_s28  ;;  %s3227_s28 = sld [smem:[#allocation6 + $0x6a]] }
 0x4e8   : > { %2351 = vrot.lane.b32.xlu0 %v4327_v29, %s7152_s17 }
 0x4ec   : > { %2355 = vrot.lane.b32.xlu0 %v4343_v31, %s7152_s17  ;;  %s6332_s17 = sld [smem:[#allocation6 + $0x58]] }
 0x4f9   : > { %v2440_v4 = vpop.permute.xlu1 %2439 }
 0x4fa   : > { %v2442_v38 = vpop.permute.xlu0 %2441  ;;  %v6248_v0 = vsel %vm2443_vm15, 0.0, %v2440_v4 }
 0x4fb   : > { %v6246_v36 = vsel %vm2443_vm15, %v2440_v4, %v2442_v38  ;;  %v2461_v58 = vmul.f32 %v2460_v24, %v6248_v0  ;;  %v6252_v41 = vsel %vm2443_vm15, %v2442_v38, 0.0  ;;  %vm7161_vm15 = vmmov %vm7160_vm7 }
 0x4fc   : > { %v2462_v29 = vmul.f32 %v2460_v24, %v6246_v36  ;;  %v2463_v37 = vmul.f32 %v2460_v24, %v6252_v41 }
 0x4fd   : > { %v2098_v11 = vpop.permute.xlu1 %2097  ;;  %2467 = vrot.lane.b32.xlu1 %v2461_v58, %s7153_s16 }
 0x4fe   : > { %v2601_v31 = vpop.permute.xlu0 %2600  ;;  %2469 = vrot.lane.b32.xlu0 %v2462_v29, %s7153_s16  ;;  %v2101_v57 = vsel %vm7154_vm13, %v2096_v16, %v2098_v11  ;;  %vm7162_vm13 = vmmov %vm7160_vm7  ;;  %v2860_v16 = vstv %s3263_s7  ;;  %s3225_s7 = sld [smem:[#allocation6 + $0x68]] }
 0x4ff   : > { %v2105_v40 = vsel %vm537_vm3, %v2101_v57, 0.0  ;;  %v6277_v26 = vsel %vm7158_vm14, %v2601_v31, 0.0  ;;  %vm7166_vm14 = vcmp.ge.s32.totalorder %v4448_v35, 2 }
 0x500   : > { %v2108_v6 = vmul.f32 %v2107_v18, %v2105_v40  ;;  %v2621_v43 = vmul.f32 %v2618_v53, %v6277_v26  ;;  %v2641_v12 = vmul.f32 %v2638_v25, %v6277_v26 }
 0x501   : > { %v2599_v52 = vpop.permute.xlu1 %2598  ;;  %2471 = vrot.lane.b32.xlu1 %v2463_v37, %s7153_s16 }
 0x502   : > { %v2100_v30 = vpop.permute.xlu0 %2099  ;;  %v6266_v46 = vsel %vm7156_vm8, %v2599_v52, %v2601_v31  ;;  %v6269_v28 = vsel %vm7157_vm9, 0.0, %v2599_v52  ;;  %v2110_v23 = vadd.f32 %v2108_v6, %v6176_v45  ;;  %vm7164_vm8 = vcmask 384000  }
 0x503   : > { %v2102_v2 = vsel %vm7155_vm0, %v2098_v11, %v2100_v30  ;;  %v2619_v20 = vmul.f32 %v2618_v53, %v6269_v28  ;;  %v2620_v32 = vmul.f32 %v2618_v53, %v6266_v46  ;;  %v2640_v15 = vmul.f32 %v2638_v25, %v6266_v46  ;;  %vm7163_vm0 = vmmov %vm7160_vm7 }
 0x504   : > { %v2106_v34 = vsel %vm538_vm10, %v2102_v2, 0.0  ;;  %v2639_v21 = vmul.f32 %v2638_v25, %v6269_v28  ;;  %vm7165_vm9 = vmmov %vm7164_vm8  ;;  %v2161_v31 = vstv %s6301_s19  ;;  %s6454_s19 = sld [smem:[#allocation6 + $0x91]] }
 0x505   : > { %v2109_v3 = vmul.f32 %v2107_v18, %v2106_v34  ;;  %2625 = vrot.lane.b32.xlu0 %v2619_v20, %s7153_s16  ;;  %v2114_v27 = vpop.permute.xlu1 %2113  ;;  %2627 = vrot.lane.b32.xlu1 %v2620_v32, %s7153_s16  ;;  %v2880_v34 = vstv %s3264_s8  ;;  %s3240_s8 = sld [smem:[#allocation6 + $0x75]] }
 0x506   : > { %v2823_v61 = vpop.permute.xlu0 %2822 }
 0x507   : > { %v2111_v62 = vadd.f32 %v2109_v3, %v6178_v50  ;;  %v6298_v47 = vsel %vm7161_vm15, %v2823_v61, 0.0  ;;  %v2143_v50 = vstv %s6286_s26  ;;  %s6408_s26 = sld [smem:[#allocation6 + $0x5d]] }
 0x508   : > { %v2843_v56 = vmul.f32 %v2840_v48, %v6298_v47  ;;  %v2863_v52 = vmul.f32 %v2860_v16, %v6298_v47 }
 0x509   : > { %2629 = vrot.lane.b32.xlu0 %v2621_v43, %s7153_s16  ;;  %v2821_v22 = vpop.permute.xlu1 %2820  ;;  %2647 = vrot.lane.b32.xlu1 %v2640_v15, %s3540_s23 }
 0x50a   : > { %v2116_v44 = vpop.permute.xlu0 %2115  ;;  %v6291_v60 = vsel %vm7160_vm7, 0.0, %v2821_v22  ;;  %v6309_v13 = vsel %vm7163_vm0, %v2821_v22, %v2823_v61  ;;  %vm7168_vm7 = vcmp.ge.s32.totalorder %v4440_v51, 1  ;;  %v2480_v61 = vstv %s3227_s28  ;;  %s3239_s28 = sld [smem:[#allocation6 + $0x93]] }
 0x50b   : > { %v2119_v59 = vsel %vm7159_vm11, %v2114_v27, %v2116_v44  ;;  %v2841_v49 = vmul.f32 %v2840_v48, %v6291_v60  ;;  %v2842_v24 = vmul.f32 %v2840_v48, %v6309_v13  ;;  %v2861_v58 = vmul.f32 %v2860_v16, %v6291_v60 }
 0x50c   : > { %v2123_v7 = vsel %vm539_vm4, %v2119_v59, 0.0  ;;  %vm7167_vm11 = vcmask 375808   ;;  %v2862_v6 = vmul.f32 %v2860_v16, %v6309_v13  ;;  %v2882_v3 = vmul.f32 %v2880_v34, %v6309_v13 }
 0x50d   : > { %v2126_v1 = vmul.f32 %v2125_v63, %v2123_v7  ;;  %2645 = vrot.lane.b32.xlu0 %v2639_v21, %s3540_s23  ;;  %v2118_v33 = vpop.permute.xlu1 %2117  ;;  %2847 = vrot.lane.b32.xlu1 %v2841_v49, %s7153_s16  ;;  %vm7169_vm15 = vmmov %vm7167_vm11  ;;  %vm7171_vm0 = vcmask 367616   ;;  %v2482_v22 = vmul.f32 %v2480_v61, %v6246_v36  ;;  %v2883_v7 = vmul.f32 %v2880_v34, %v6298_v47 }
 0x50e   : > { %v2132_v39 = vpop.permute.xlu0 %2131  ;;  %v2120_v9 = vsel %vm7162_vm13, %v2116_v44, %v2118_v33  ;;  %vm7170_vm13 = vcmp.ge.s32.totalorder %v4448_v35, 1  ;;  %v2199_v49 = vstv %s6332_s17  ;;  %s3261_s17 = sld [smem:[#allocation6 + $0x88]] }
 0x50f   : > { %v2128_v10 = vadd.f32 %v2126_v1, %v2110_v23  ;;  %v2124_v8 = vsel %vm540_vm5, %v2120_v9, 0.0 }
 0x510   : > { %v2127_v17 = vmul.f32 %v2125_v63, %v2124_v8 }
 0x511   : > { %2649 = vrot.lane.b32.xlu0 %v2641_v12, %s3540_s23  ;;  %v2134_v42 = vpop.permute.xlu1 %2133  ;;  %2851 = vrot.lane.b32.xlu1 %v2843_v56, %s7153_s16  ;;  %v2481_v12 = vmul.f32 %v2480_v61, %v6248_v0 }
 0x512   : > { %v2136_v45 = vpop.permute.xlu0 %2135  ;;  %v2129_v54 = vadd.f32 %v2127_v17, %v2111_v62  ;;  %v2137_v14 = vsel %vm7164_vm8, %v2132_v39, %v2134_v42  ;;  %v2881_v62 = vmul.f32 %v2880_v34, %v6291_v60  ;;  %vm7172_vm8 = vmmov %vm7171_vm0  ;;  %v2658_v39 = vstv %s3243_s24  ;;  %s3260_s24 = sld [smem:[#allocation6 + $0x95]] }
 0x513   : > { %v2138_v55 = vsel %vm7165_vm9, %v2134_v42, %v2136_v45  ;;  %v2141_v5 = vsel %vm535_vm6, %v2137_v14, 0.0  ;;  %vm7173_vm9 = vcmask 359424   ;;  %v2659_v9 = vmul.f32 %v2658_v39, %v6269_v28 }
 0x514   : > { %v2142_v19 = vsel %vm7166_vm14, %v2138_v55, 0.0  ;;  %v2144_v38 = vmul.f32 %v2143_v50, %v2141_v5  ;;  %vm7174_vm14 = vmmov %vm7173_vm9  ;;  %v2661_v42 = vmul.f32 %v2658_v39, %v6277_v26  ;;  %v2483_v14 = vmul.f32 %v2480_v61, %v6252_v41 }
 0x515   : > { %v2145_v4 = vmul.f32 %v2143_v50, %v2142_v19  ;;  %2849 = vrot.lane.b32.xlu0 %v2842_v24, %s7153_s16  ;;  %v2150_v11 = vpop.permute.xlu1 %2149  ;;  %2867 = vrot.lane.b32.xlu1 %v2861_v58, %s3540_s23  ;;  %s6357_s16 = sld [smem:[#allocation6 + $0x5a]]  ;;  %v2217_v19 = vstv %s6348_s27  ;;  %v2900_v58 = vstv %s3265_s29  ;;  %s3276_s27 = sshll.u32 %s3616_s13, 10 }
 0x516   : > { %v2152_v29 = vpop.permute.xlu0 %2151  ;;  %v2146_v18 = vadd.f32 %v2144_v38, %v2128_v10  ;;  %s7223_s29 = sshll.u32 %s3707_s6, 6  ;;  %s3000_s13 = scalar_lea.sflag [#allocation4], %s3707_s6 }
 0x517   : > { %v2147_v57 = vadd.f32 %v2145_v4, %v2129_v54  ;;  %v2155_v37 = vsel %vm7167_vm11, %v2150_v11, %v2152_v29  ;;  %vm7175_vm11 = vcmp.lt.s32.totalorder %v4448_v35, 15 }
 0x518   : > { %v2159_v40 = vsel %vm7168_vm7, %v2155_v37, 0.0  ;;  %vm7176_vm7 = vcmask 351232  }
 0x519   : > { %v2162_v30 = vmul.f32 %v2161_v31, %v2159_v40  ;;  %2869 = vrot.lane.b32.xlu0 %v2862_v6, %s3540_s23  ;;  %v2154_v2 = vpop.permute.xlu1 %2153  ;;  %2871 = vrot.lane.b32.xlu1 %v2863_v52, %s3540_s23 }
 0x51a   : > { %v2175_v53 = vpop.permute.xlu0 %2174  ;;  %v2156_v23 = vsel %vm7169_vm15, %v2152_v29, %v2154_v2  ;;  %vm7177_vm15 = vmmov %vm7176_vm7 }
 0x51b   : > { %v2164_v20 = vadd.f32 %v2162_v30, %v2146_v18  ;;  %v2160_v32 = vsel %vm7170_vm13, %v2156_v23, 0.0  ;;  %v2235_v40 = vstv %s6357_s16  ;;  %v2678_v30 = vstv %s3244_s3  ;;  %s173_s16 = scalar_lea.vmem [#allocation7], %s7223_s29 }
 0x51c   : > { %v2163_v27 = vmul.f32 %v2161_v31, %v2160_v32  ;;  %v2902_v31 = vmul.f32 %v2900_v58, %v6309_v13  ;;  %vm7178_vm13 = vcmask 343040   ;;  %v2679_v34 = vmul.f32 %v2678_v30, %v6269_v28  ;;  %s3013_s3 = sshll.u32 %s173_s16, 4  ;;  %s6524_s3 = int_to_ptr.vmem [resolvable:$true] %s3013_s3 }
 0x51d   : > { %2889 = vrot.lane.b32.xlu0 %v2882_v3, %s6960_s20  ;;  %v2177_v43 = vpop.permute.xlu1 %2176  ;;  %2887 = vrot.lane.b32.xlu1 %v2881_v62, %s6960_s20  ;;  %v2901_v32 = vmul.f32 %v2900_v58, %v6291_v60 }
 0x51e   : > { %v2179_v25 = vpop.permute.xlu0 %2178  ;;  %v2165_v15 = vadd.f32 %v2163_v27, %v2147_v57  ;;  %v2180_v63 = vsel %vm7171_vm0, %v2175_v53, %v2177_v43  ;;  %v2660_v57 = vmul.f32 %v2658_v39, %v6266_v46  ;;  %vm7179_vm0 = vmmov %vm7178_vm13 }
 0x51f   : > { %v2181_v44 = vsel %vm7172_vm8, %v2177_v43, %v2179_v25  ;;  %v2184_v59 = vadd.f32 %v2180_v63, %v2164_v20  ;;  %v2681_v25 = vmul.f32 %v2678_v30, %v6277_v26  ;;  %v2903_v63 = vmul.f32 %v2900_v58, %v6298_v47 }
 0x520   : > { %v2185_v48 = vadd.f32 %v2181_v44, %v2165_v15  ;;  %vm7180_vm8 = vcmask 261120   ;;  %v2920_v26 = vstv %s3266_s30 }
 0x521   : > { %2489 = vrot.lane.b32.xlu0 %v2482_v22, %s3540_s23  ;;  %v2188_v1 = vpop.permute.xlu1 %2187  ;;  %2891 = vrot.lane.b32.xlu1 %v2883_v7, %s6960_s20  ;;  %v2922_v39 = vmul.f32 %v2920_v26, %v6309_v13 }
 0x522   : > { %v2190_v21 = vpop.permute.xlu0 %2189 }
 0x523   : > { %v2193_v33 = vsel %vm7173_vm9, %v2188_v1, %v2190_v21  ;;  %vm7181_vm9 = vmmov %vm7180_vm8 }
 0x524   : > { %v2197_v10 = vsel %vm529_vm12, %v2193_v33, 0.0 }
 0x525   : > { %v2200_v8 = vmul.f32 %v2199_v49, %v2197_v10  ;;  %2665 = vrot.lane.b32.xlu0 %v2659_v9, %s6960_s20  ;;  %v2192_v56 = vpop.permute.xlu1 %2191  ;;  %2487 = vrot.lane.b32.xlu1 %v2481_v12, %s3540_s23  ;;  %v2680_v9 = vmul.f32 %v2678_v30, %v6266_v46 }
 0x526   : > { %v2206_v17 = vpop.permute.xlu0 %2205  ;;  %v2194_v50 = vsel %vm7174_vm14, %v2190_v21, %v2192_v56  ;;  %vm7184_vm14 = vcmp.ge.s32.totalorder %v4448_v35, 2 }
 0x527   : > { %v2202_v45 = vadd.f32 %v2200_v8, %v2184_v59  ;;  %v2198_v54 = vsel %vm7175_vm11, %v2194_v50, 0.0  ;;  %v2271_v8 = vstv %s6387_s5  ;;  %s6518_s5 = scalar_lea.hbm %s6570_s2, %s3276_s27 }
 0x528   : > { %v2201_v55 = vmul.f32 %v2199_v49, %v2198_v54 }
 0x529   : > { %2669 = vrot.lane.b32.xlu0 %v2661_v42, %s6960_s20  ;;  %v2208_v16 = vpop.permute.xlu1 %2207  ;;  %2491 = vrot.lane.b32.xlu1 %v2483_v14, %s3540_s23  ;;  %s6378_s23 = sld [smem:[#allocation6 + $0x5b]] }
 0x52a   : > { %v2210_v5 = vpop.permute.xlu0 %2209  ;;  %v2203_v24 = vadd.f32 %v2201_v55, %v2185_v48  ;;  %v2211_v38 = vsel %vm7176_vm7, %v2206_v17, %v2208_v16  ;;  %vm7187_vm7 = vcmp.ge.s32.totalorder %v4440_v51, 1 }
 0x52b   : > { %v2212_v4 = vsel %vm7177_vm15, %v2208_v16, %v2210_v5  ;;  %v2215_v29 = vsel %vm533_vm1, %v2211_v38, 0.0  ;;  %v2921_v5 = vmul.f32 %v2920_v26, %v6291_v60  ;;  %vm7188_vm15 = vcmp.ge.s32.totalorder %v4448_v35, 1 }
 0x52c   : > { %v2216_v41 = vsel %vm534_vm2, %v2212_v4, 0.0  ;;  %v2218_v11 = vmul.f32 %v2217_v19, %v2215_v29 }
 0x52d   : > { %v2219_v18 = vmul.f32 %v2217_v19, %v2216_v41  ;;  %2909 = vrot.lane.b32.xlu0 %v2902_v31, %s7041_s4  ;;  %v2224_v6 = vpop.permute.xlu1 %2223  ;;  %2667 = vrot.lane.b32.xlu1 %v2660_v57, %s6960_s20  ;;  %s3267_s20 = sld [smem:[#allocation6 + $0x8e]]  ;;  %v2923_v41 = vmul.f32 %v2920_v26, %v6298_v47 }
 0x52e   : > { %v2226_v37 = vpop.permute.xlu0 %2225  ;;  %v2220_v52 = vadd.f32 %v2218_v11, %v2202_v45  ;;  %v2289_v11 = vstv %s6408_s26  ;;  %s3578_s26 = smov [#allocation7]  }
 0x52f   : > { %v2221_v53 = vadd.f32 %v2219_v18, %v2203_v24  ;;  %v2229_v2 = vsel %vm7178_vm13, %v2224_v6, %v2226_v37  ;;  %v2253_v22 = vstv %s6378_s23  ;;  %vm7189_vm13 = vcmask 228352  }
 0x530   : > { %v2233_v23 = vsel %vm537_vm3, %v2229_v2, 0.0 }
 0x531   : > { %v2236_v20 = vmul.f32 %v2235_v40, %v2233_v23  ;;  %2685 = vrot.lane.b32.xlu0 %v2679_v34, %s7041_s4  ;;  %v2228_v61 = vpop.permute.xlu1 %2227  ;;  %2907 = vrot.lane.b32.xlu1 %v2901_v32, %s7041_s4 }
 0x532   : > { %v2242_v3 = vpop.permute.xlu0 %2241  ;;  %v2230_v62 = vsel %vm7179_vm0, %v2226_v37, %v2228_v61  ;;  %vm7190_vm0 = vmmov %vm7189_vm13 }
 0x533   : > { %v2238_v27 = vadd.f32 %v2236_v20, %v2220_v52  ;;  %v2234_v43 = vsel %vm538_vm10, %v2230_v62, 0.0  ;;  %v2940_v42 = vstv %s3267_s20  ;;  %s3453_s20 = scalar_lea.vmem %s6524_s3, 1024 }
 0x534   : > { %v2237_v15 = vmul.f32 %v2235_v40, %v2234_v43  ;;  %v2941_v14 = vmul.f32 %v2940_v42, %v6291_v60  ;;  %v2943_v58 = vmul.f32 %v2940_v42, %v6298_v47  ;;  %p3454_p1 = scmp.ne.s32.totalorder %s6524_s3, %s3453_s20 }
 0x535   : > { %2689 = vrot.lane.b32.xlu0 %v2681_v25, %s7041_s4  ;;  %v2244_v59 = vpop.permute.xlu1 %2243  ;;  %2911 = vrot.lane.b32.xlu1 %v2903_v63, %s7041_s4 }
 0x536   : > { %v2246_v44 = vpop.permute.xlu0 %2245  ;;  %v2239_v48 = vadd.f32 %v2237_v15, %v2221_v53  ;;  %v2247_v7 = vsel %vm7180_vm8, %v2242_v3, %v2244_v59  ;;  %v2942_v53 = vmul.f32 %v2940_v42, %v6309_v13  ;;  %vm7191_vm8 = vcmp.lt.s32.totalorder %v4448_v35, 15  ;;  %p3455_p6 = pnand %p3454_p1, %p7232_p7 }
 0x537   : > { %v2248_v21 = vsel %vm7181_vm9, %v2244_v59, %v2246_v44  ;;  %v2251_v49 = vsel %vm539_vm4, %v2247_v7, 0.0  ;;  %vm7182_vm4 = vcmask 252928   ;;  %vm7192_vm9 = vcmask 236544  }
 0x538   : > { %v2252_v1 = vsel %vm540_vm5, %v2248_v21, 0.0  ;;  %v2254_v33 = vmul.f32 %v2253_v22, %v2251_v49  ;;  %vm7183_vm5 = vmmov %vm7182_vm4  ;;  %p3456_p8 = pneg %p3455_p6 }
 0x539   : > { %v2255_v10 = vmul.f32 %v2253_v22, %v2252_v1  ;;  %2929 = vrot.lane.b32.xlu0 %v2922_v39, %s7131_s14  ;;  %v2260_v17 = vpop.permute.xlu1 %2259  ;;  %2687 = vrot.lane.b32.xlu1 %v2680_v9, %s7041_s4  ;;  %s3214_s4 = sld [smem:[#allocation6 + $0x5f]] }
 0x53a   : > { %v2262_v12 = vpop.permute.xlu0 %2261  ;;  %v2256_v56 = vadd.f32 %v2254_v33, %v2238_v27 }
 0x53b   : > { %v2257_v45 = vadd.f32 %v2255_v10, %v2239_v48  ;;  %v2265_v50 = vsel %vm7182_vm4, %v2260_v17, %v2262_v12  ;;  %vm7193_vm4 = vmmov %vm7192_vm9 }
 0x53c   : > { %v2269_v54 = vsel %vm535_vm6, %v2265_v50, 0.0  ;;  %vm7185_vm6 = vcmask 244736  }
 0x53d   : > { %v2272_v55 = vmul.f32 %v2271_v8, %v2269_v54  ;;  %2947 = vrot.lane.b32.xlu0 %v2941_v14, %s7125_s0  ;;  %v2264_v16 = vpop.permute.xlu1 %2263  ;;  %2927 = vrot.lane.b32.xlu1 %v2921_v5, %s7131_s14  ;;  %vm7186_vm11 = vmmov %vm7185_vm6 }
 0x53e   : > { %v2278_v19 = vpop.permute.xlu0 %2277  ;;  %v2266_v38 = vsel %vm7183_vm5, %v2262_v12, %v2264_v16 }
 0x53f   : > { %v2274_v24 = vadd.f32 %v2272_v55, %v2256_v56  ;;  %v2270_v4 = vsel %vm7184_vm14, %v2266_v38, 0.0  ;;  %v2327_v62 = vstv %s3214_s4  ;;  %vm7196_vm14 = vcmask 211968   ;;  %s3457_s4 = sshll.u32 %s3578_s26, 4  ;;  %s3458_s4 = int_to_ptr.vmem [resolvable:$false] %s3457_s4 }
 0x540   : > { %v2273_v29 = vmul.f32 %v2271_v8, %v2270_v4  ;;  %p3460_p9 = scmp.lt.s32.totalorder %s6524_s3, %s3458_s4 }
 0x541   : > { %2951 = vrot.lane.b32.xlu0 %v2943_v58, %s7125_s0  ;;  %v2280_v18 = vpop.permute.xlu1 %2279  ;;  %2931 = vrot.lane.b32.xlu1 %v2923_v41, %s7131_s14  ;;  %s3215_s14 = sld [smem:[#allocation6 + $0x60]] }
 0x542   : > { %v2282_v31 = vpop.permute.xlu0 %2281  ;;  %v2275_v57 = vadd.f32 %v2273_v29, %v2257_v45  ;;  %v2283_v37 = vsel %vm7185_vm6, %v2278_v19, %v2280_v18 }
 0x543   : > { %v2284_v40 = vsel %vm7186_vm11, %v2280_v18, %v2282_v31  ;;  %v2287_v6 = vsel %vm7187_vm7, %v2283_v37, 0.0  ;;  %v2454_v31 = vstv %s3225_s7  ;;  %v2451_v18 = vstv %s6454_s19 }
 0x544   : > { %v2288_v30 = vsel %vm7188_vm15, %v2284_v40, 0.0  ;;  %v2290_v52 = vmul.f32 %v2289_v11, %v2287_v6 }
 0x545   : > { %v2291_v47 = vmul.f32 %v2289_v11, %v2288_v30  ;;  %v2318_v23 = vpop.permute.xlu1 %2317  ;;  %2949 = vrot.lane.b32.xlu1 %v2942_v53, %s7125_s0  ;;  %s3216_s0 = sld [smem:[#allocation6 + $0x61]]  ;;  %v2455_v11 = vmul.f32 %v2454_v31, %v6248_v0 }
 0x546   : > { %v2316_v2 = vpop.permute.xlu0 %2315  ;;  %v2292_v20 = vadd.f32 %v2290_v52, %v2274_v24 }
 0x547   : > { %v2321_v34 = vsel %vm7189_vm13, %v2316_v2, %v2318_v23  ;;  %v2293_v32 = vadd.f32 %v2291_v47, %v2275_v57  ;;  %v2345_v39 = vstv %s3215_s14  ;;  %v2457_v57 = vadd.f32 %v2455_v11, %v2451_v18  ;;  %s3459_s14 = scalar_lea.vmem %s3458_s4, 2048 }
 0x548   : > { %v2325_v25 = vsel %vm529_vm12, %v2321_v34, 0.0  ;;  %vm7194_vm12 = vcmask 220160   ;;  %p3461_p10 = scmp.lt.s32.totalorder %s3459_s14, %s3453_s20 }
 0x549   : > { %v2303_v61 = vpop.permute.xlu1 %2302  ;;  %v2328_v59 = vmul.f32 %v2327_v62, %v2325_v25  ;;  %vm7195_vm5 = vmmov %vm7194_vm12 }
 0x54a   : > { %v2320_v3 = vpop.permute.xlu0 %2319  ;;  %p3462_p2 = por %p3461_p10, %p3460_p9 }
 0x54b   : > { %v2322_v27 = vsel %vm7190_vm0, %v2318_v23, %v2320_v3  ;;  %v2363_v54 = vstv %s3216_s0  ;;  %vm7206_vm0 = vcmask 654336  }
 0x54c   : > { %v2326_v43 = vsel %vm7191_vm8, %v2322_v27, 0.0  ;;  %vm7207_vm8 = vmmov %vm7206_vm0  ;;  %p3463_p0 = pnand %p3462_p2, %p3456_p8 }
 0x54d   : > { %v2307_v63 = vpop.permute.xlu1 %2306  ;;  %v2329_v48 = vmul.f32 %v2327_v62, %v2326_v43 }
 0x54e   : > { %v2305_v15 = vpop.permute.xlu0 %2304 }
 0x54f   : > { %v2308_v44 = vsel %vm7192_vm9, %v2303_v61, %v2305_v15  ;;  %v2309_v22 = vsel %vm7193_vm4, %v2305_v15, %v2307_v63  ;;  %v2456_v15 = vmul.f32 %v2454_v31, %v6246_v36 }
 0x550   : > { %v2312_v7 = vadd.f32 %v2308_v44, %v2292_v20  ;;  %v2313_v21 = vadd.f32 %v2309_v22, %v2293_v32 }
 0x551   : > { %v2336_v33 = vpop.permute.xlu1 %2335 }
 0x552   : > { %v2330_v26 = vadd.f32 %v2328_v59, %v2312_v7  ;;  %v2331_v49 = vadd.f32 %v2329_v48, %v2313_v21  ;;  %v2334_v1 = vpop.permute.xlu0 %2333  ;;  %v2458_v48 = vadd.f32 %v2456_v15, %v2451_v18 }
 0x553   : > { %v2339_v10 = vsel %vm7194_vm12, %v2334_v1, %v2336_v33  ;;  %vm7210_vm12 = vcmask 523264  }
 0x554   : > { %v2343_v9 = vsel %vm533_vm1, %v2339_v10, 0.0  ;;  %vm7197_vm1 = vmmov %vm7196_vm14 }
 0x555   : > { %v2346_v12 = vmul.f32 %v2345_v39, %v2343_v9  ;;  %v2354_v42 = vpop.permute.xlu1 %2353  ;;  %v2612_v9 = vstv %s3240_s8 }
 0x556   : > { %v2338_v8 = vpop.permute.xlu0 %2337 }
 0x557   : > { %v2348_v17 = vadd.f32 %v2346_v12, %v2330_v26  ;;  %v2340_v56 = vsel %vm7195_vm5, %v2336_v33, %v2338_v8  ;;  %vm7211_vm5 = vmmov %vm7210_vm12 }
 0x558   : > { %v2344_v45 = vsel %vm534_vm2, %v2340_v56, 0.0  ;;  %vm7198_vm2 = vcmask 916480   ;;  %v2614_v56 = vmul.f32 %v2612_v9, %v6266_v46 }
 0x559   : > { %v2347_v50 = vmul.f32 %v2345_v39, %v2344_v45  ;;  %vm7202_vm11 = vmmov %vm7198_vm2 }
 0x55a   : > { %v2352_v14 = vpop.permute.xlu0 %2351  ;;  %vm7203_vm7 = vmmov %vm7198_vm2 }
 0x55b   : > { %v2349_v55 = vadd.f32 %v2347_v50, %v2331_v49  ;;  %v2357_v5 = vsel %vm7196_vm14, %v2352_v14, %v2354_v42  ;;  %v2609_v50 = vstv %s3239_s28  ;;  %vm7208_vm9 = vmmov %vm7198_vm2 }
 0x55c   : > { %v2361_v19 = vsel %vm537_vm3, %v2357_v5, 0.0  ;;  %vm7200_vm3 = vcmask 785408   ;;  %vm7209_vm4 = vmmov %vm7198_vm2 }
 0x55d   : > { %v2364_v16 = vmul.f32 %v2363_v54, %v2361_v19  ;;  %vm7201_vm6 = vmmov %vm7200_vm3  ;;  %v2616_v19 = vadd.f32 %v2614_v56, %v2609_v50 }
 0x55e   : > { %v2356_v24 = vpop.permute.xlu0 %2355  ;;  %vm7204_vm15 = vmmov %vm7200_vm3 }
 0x55f   : > { %v2366_v38 = vadd.f32 %v2364_v16, %v2348_v17  ;;  %v2358_v4 = vsel %vm7197_vm1, %v2354_v42, %v2356_v24  ;;  %v2613_v17 = vmul.f32 %v2612_v9, %v6269_v28  ;;  %vm7205_vm13 = vmmov %vm7200_vm3 }
 0x560   : > { %v2362_v58 = vsel %vm538_vm10, %v2358_v4, 0.0  ;;  %vm7199_vm10 = vmmov %vm7198_vm2 }
 0x561   : > { %v2365_v29 = vmul.f32 %v2363_v54, %v2362_v58  ;;  %v2615_v5 = vadd.f32 %v2613_v17, %v2609_v50  ;;  %vm7212_vm14 = vmmov %vm7200_vm3 }
 0x562   : > { %vm7213_vm1 = vmmov %vm7200_vm3 }
 0x563   : > { %v2367_v41 = vadd.f32 %v2365_v29, %v2349_v55 }
 0x56f   : > { %v2468_v37 = vpop.permute.xlu1 %2467 }
 0x570   : > { %v2470_v51 = vpop.permute.xlu0 %2469 }
 0x571   : > { %v2473_v40 = vsel %vm7198_vm2, %v2468_v37, %v2470_v51  ;;  %vm7214_vm2 = vmmov %vm7206_vm0 }
 0x572   : > { %v2477_v6 = vadd.f32 %v2473_v40, %v2457_v57  ;;  %v2831_v57 = vstv %s3260_s24 }
 0x573   : > { %v2472_v30 = vpop.permute.xlu1 %2471 }
 0x574   : > { %v2474_v22 = vsel %vm7199_vm10, %v2470_v51, %v2472_v30  ;;  %vm7215_vm10 = vmmov %vm7206_vm0 }
 0x575   : > { %v2478_v26 = vadd.f32 %v2474_v22, %v2458_v48 }
 0x577   : > { %v2626_v52 = vpop.permute.xlu0 %2625  ;;  %v2628_v35 = vpop.permute.xlu1 %2627 }
 0x578   : > { %v2631_v14 = vsel %vm7202_vm11, %v2626_v52, %v2628_v35  ;;  %vm7218_vm11 = vcmask 392192  }
 0x579   : > { %v2635_v28 = vadd.f32 %v2631_v14, %v2615_v5 }
 0x57b   : > { %v2630_v47 = vpop.permute.xlu0 %2629  ;;  %v2648_v53 = vpop.permute.xlu1 %2647 }
 0x57c   : > { %v2632_v55 = vsel %vm7203_vm7, %v2628_v35, %v2630_v47  ;;  %vm7219_vm7 = vmmov %vm7218_vm11 }
 0x57d   : > { %v2636_v58 = vadd.f32 %v2632_v55, %v2616_v19 }
 0x57f   : > { %v2646_v2 = vpop.permute.xlu0 %2645  ;;  %v2848_v23 = vpop.permute.xlu1 %2847 }
 0x580   : > { %v2651_v16 = vsel %vm7204_vm15, %v2646_v2, %v2648_v53  ;;  %vm7220_vm15 = vcmask 261120  }
 0x581   : > { %v2655_v31 = vadd.f32 %v2651_v16, %v2635_v28 }
 0x583   : > { %v2650_v34 = vpop.permute.xlu0 %2649  ;;  %v2852_v20 = vpop.permute.xlu1 %2851 }
 0x584   : > { %v2652_v24 = vsel %vm7205_vm13, %v2648_v53, %v2650_v34  ;;  %vm7221_vm13 = vmmov %vm7220_vm15 }
 0x585   : > { %v2656_v11 = vadd.f32 %v2652_v24, %v2636_v58 }
 0x587   : > { %v2850_v32 = vpop.permute.xlu0 %2849  ;;  %v6459_v3 = vpop.permute.xlu1 %2867 }
 0x588   : > { %v2853_v52 = vsel %vm7208_vm9, %v2848_v23, %v2850_v32  ;;  %v2854_v35 = vsel %vm7209_vm4, %v2850_v32, %v2852_v20 }
 0x58b   : > { %v6461_v0 = vpop.permute.xlu0 %2869  ;;  %v6463_v61 = vpop.permute.xlu1 %2871 }
 0x58f   : > { %v6465_v27 = vpop.permute.xlu0 %2889  ;;  %v6467_v62 = vpop.permute.xlu1 %2887 }
 0x590   : > { %v2893_v22 = vsel %vm7214_vm2, %v6467_v62, %v6465_v27 }
 0x593   : > { %v2490_v25 = vpop.permute.xlu0 %2489  ;;  %v6469_v43 = vpop.permute.xlu1 %2891 }
 0x597   : > { %v2666_v63 = vpop.permute.xlu0 %2665  ;;  %v2488_v44 = vpop.permute.xlu1 %2487 }
 0x598   : > { %v2493_v59 = vsel %vm7200_vm3, %v2488_v44, %v2490_v25  ;;  %vm7216_vm3 = vmmov %vm7211_vm5 }
 0x599   : > { %v2497_v7 = vadd.f32 %v2493_v59, %v2477_v6  ;;  %v2894_v59 = vsel %vm7215_vm10, %v6465_v27, %v6469_v43 }
 0x59b   : > { %v2670_v21 = vpop.permute.xlu0 %2669  ;;  %v2499_v49 = vmax.f32 %v2497_v7, 0.0  ;;  %v2492_v1 = vpop.permute.xlu1 %2491 }
 0x59c   : > { %v2494_v39 = vsel %vm7201_vm6, %v2490_v25, %v2492_v1  ;;  %vm7217_vm6 = vmmov %vm7216_vm3 }
 0x59d   : > { %v2501_v33 = vadd.f32 %v2499_v49, %v2366_v38  ;;  %v2498_v10 = vadd.f32 %v2494_v39, %v2478_v26  ;;  %v2834_v38 = vstv %s3261_s17 }
 0x59e   : > { %v2835_v18 = vmul.f32 %v2834_v38, %v6291_v60  ;;  %v2836_v51 = vmul.f32 %v2834_v38, %v6309_v13  ;;  %v2873_v60 = vsel %vm7212_vm14, %v6459_v3, %v6461_v0  ;;  %v2874_v13 = vsel %vm7213_vm1, %v6461_v0, %v6463_v61 }
 0x59f   : > { %v2910_v36 = vpop.permute.xlu0 %2909  ;;  %v2500_v12 = vmax.f32 %v2498_v10, 0.0  ;;  %v2668_v8 = vpop.permute.xlu1 %2667 }
 0x5a0   : > { %v2671_v29 = vsel %vm7206_vm0, %v2666_v63, %v2668_v8  ;;  %v2837_v2 = vadd.f32 %v2835_v18, %v2831_v57  ;;  %v2838_v34 = vadd.f32 %v2836_v51, %v2831_v57  ;;  %v7225_v51 = vld [vmem:[#allocation11_spill] sm:$0xff] }
 0x5a1   : > { %v2502_v45 = vadd.f32 %v2500_v12, %v2367_v41  ;;  %v2672_v41 = vsel %vm7207_vm8, %v2668_v8, %v2670_v21  ;;  %v2675_v37 = vadd.f32 %v2671_v29, %v2655_v31 }
 0x5a2   : > { %v2676_v40 = vadd.f32 %v2672_v41, %v2656_v11  ;;  %v2857_v63 = vadd.f32 %v2853_v52, %v2837_v2  ;;  %v2858_v23 = vadd.f32 %v2854_v35, %v2838_v34  ;;  %v7224_v11 = vld [vmem:[#allocation13_spill] sm:$0xff]  ;;  %v7228_v52 = vld [vmem:[#allocation14_spill] sm:$0xff]  ;;  %v7230_v2 = vld [vmem:[#allocation16_spill] sm:$0xff] }
 0x5a3   : > { %v2686_v42 = vpop.permute.xlu0 %2685  ;;  %v2908_v54 = vpop.permute.xlu1 %2907 }
 0x5a4   : > { %v2877_v48 = vadd.f32 %v2873_v60, %v2857_v63  ;;  %v2878_v7 = vadd.f32 %v2874_v13, %v2858_v23  ;;  %v2913_v0 = vsel %vm7216_vm3, %v2908_v54, %v2910_v36 }
 0x5a6   : > { %v2897_v49 = vadd.f32 %v2893_v22, %v2877_v48  ;;  %v2898_v1 = vadd.f32 %v2894_v59, %v2878_v7 }
 0x5a7   : > { %v2690_v4 = vpop.permute.xlu0 %2689  ;;  %v2912_v46 = vpop.permute.xlu1 %2911 }
 0x5a8   : > { %v2914_v61 = vsel %vm7217_vm6, %v2910_v36, %v2912_v46  ;;  %v2917_v9 = vadd.f32 %v2913_v0, %v2897_v49 }
 0x5a9   : > { %v2918_v12 = vadd.f32 %v2914_v61, %v2898_v1 }
 0x5ab   : > { %v2930_v6 = vpop.permute.xlu0 %2929  ;;  %v2688_v30 = vpop.permute.xlu1 %2687 }
 0x5ac   : > { %v2691_v47 = vsel %vm7210_vm12, %v2686_v42, %v2688_v30  ;;  %v2692_v53 = vsel %vm7211_vm5, %v2688_v30, %v2690_v4  ;;  %v7222_v4 = vlaneseq }
 0x5ad   : > { %v2695_v25 = vadd.f32 %v2691_v47, %v2675_v37  ;;  %v2696_v15 = vadd.f32 %v2692_v53, %v2676_v40  ;;  %v7226_v37 = vld [vmem:[#allocation15_spill] sm:$0xff]  ;;  %v7229_v47 = vld [vmem:[#allocation12_spill] sm:$0xff] }
 0x5ae   : > { %v2976_v28 = vshrl.u32 %v7222_v4, 7 }
 0x5af   : > { %v2697_v44 = vmax.f32 %v2695_v25, 0.0  ;;  %v2698_v20 = vmax.f32 %v2696_v15, 0.0  ;;  %v2928_v32 = vpop.permute.xlu1 %2927  ;;  %v2948_v26 = vpop.permute.xlu0 %2947  ;;  %v7231_v25 = vld [vmem:[#allocation18_spill] sm:$0xff] }
 0x5b0   : > { %v2933_v10 = vsel %vm7218_vm11, %v2928_v32, %v2930_v6  ;;  %v2977_v58 = vsub.s32 0, %v2976_v28 }
 0x5b1   : > { %v2699_v3 = vadd.f32 %v2697_v44, %v2501_v33  ;;  %v2700_v21 = vadd.f32 %v2698_v20, %v2502_v45  ;;  %v2937_v8 = vadd.f32 %v2933_v10, %v2917_v9 }
 0x5b3   : > { %v2932_v39 = vpop.permute.xlu1 %2931  ;;  %v2952_v27 = vpop.permute.xlu0 %2951 }
 0x5b4   : > { %v2934_v62 = vsel %vm7219_vm7, %v2930_v6, %v2932_v39  ;;  %v7227_v6 = vld [vmem:[#allocation17_spill] sm:$0xff] }
 0x5b5   : > { %v2938_v43 = vadd.f32 %v2934_v62, %v2918_v12 }
 0x5b7   : > { %v2950_v17 = vpop.permute.xlu1 %2949 }
 0x5b8   : > { %v2953_v33 = vsel %vm7220_vm15, %v2948_v26, %v2950_v17  ;;  %v2954_v56 = vsel %vm7221_vm13, %v2950_v17, %v2952_v27 }
 0x5b9   : > { %v2957_v45 = vadd.f32 %v2953_v33, %v2937_v8  ;;  %v2958_v50 = vadd.f32 %v2954_v56, %v2938_v43 }
 0x5bb   : > { %v2959_v36 = vmax.f32 %v2957_v45, 0.0  ;;  %v2960_v42 = vmax.f32 %v2958_v50, 0.0 }
 0x5bd   : > { %v2961_v54 = vadd.f32 %v2959_v36, %v2699_v3  ;;  %v2962_v14 = vadd.f32 %v2960_v42, %v2700_v21 }
 0x5bf   : > { %v3268_v55 = vmul.f32 -1.442695, %v2961_v54  ;;  %v3269_v5 = vmul.f32 -1.442695, %v2962_v14 }
 0x5c1   : > { %3406 = vpow2.f32 %v3268_v55 }
 0x5c2   : > { %3408 = vpow2.f32 %v3269_v5 }
 0x5ce   : > { %v3407_v19 = vpop.eup %3406 }
 0x5cf   : > { %v3409_v16 = vpop.eup %3408  ;;  %v2969_v24 = vadd.f32 1.0, %v3407_v19 }
 0x5d0   : > { %v2970_v38 = vadd.f32 1.0, %v3409_v16 }
 0x5d1   : > { %3410 = vrcp.f32 %v2969_v24 }
 0x5d2   : > { %3412 = vrcp.f32 %v2970_v38 }
 0x5de   : > { %v3411_v46 = vpop.eup %3410 }
 0x5df   : > { %v3413_v29 = vpop.eup %3412  ;;  %v2978_v41 = vrot.slane %v3411_v46, %v2977_v58 }
 0x5e0   : > { %v2982_v31 = vrot.slane %v3413_v29, %v2977_v58 }
 0x5e1   : > { %v2983_v18 = vmul.f32 %v2978_v41, %v7224_v11  ;;  %v2985_v57 = vmul.f32 %v2978_v41, %v7225_v51  ;;  %v2987_v40 = vmul.f32 %v2978_v41, %v7226_v37  ;;  %v2989_v30 = vmul.f32 %v2978_v41, %v7227_v6 }
 0x5e2   : > { %v2984_v35 = vmul.f32 %v2982_v31, %v7228_v52  ;;  %v2986_v53 = vmul.f32 %v2982_v31, %v7229_v47  ;;  %v2988_v34 = vmul.f32 %v2982_v31, %v7230_v2  ;;  %v2990_v15 = vmul.f32 %v2982_v31, %v7231_v25 }
 0x5e3   : > { %2991 = vst [vmem:[%s173_s16] sm:$0xff] %v2983_v18  ;;  %2993 = vst [vmem:[%s173_s16 + $0x10] sm:$0xff] %v2985_v57 }
 0x5e4   : > { %2995 = vst [vmem:[%s173_s16 + $0x20] sm:$0xff] %v2987_v40  ;;  %2997 = vst [vmem:[%s173_s16 + $0x30] sm:$0xff] %v2989_v30 }
 0x5e5   : > { %2992 = vst [vmem:[%s173_s16 + $0x8] sm:$0xff] %v2984_v35  ;;  %2994 = vst [vmem:[%s173_s16 + $0x18] sm:$0xff] %v2986_v53 }
 0x5e6   : > { %2996 = vst [vmem:[%s173_s16 + $0x28] sm:$0xff] %v2988_v34  ;;  %2998 = vst [vmem:[%s173_s16 + $0x38] sm:$0xff] %v2990_v15 }
 0x5e7   : > { %3466 = shalt.err (!%p3463_p0)
}
 0x5e8   : > { %s3467_s0 = scalar_lea.hbm %s6518_s5, 1024  ;;  %s3471_s8 = scalar_lea.hbm %s6570_s2, 2048 }
 0x5e9   : > { %p3468_p3 = scmp.ne.s32.totalorder %s6518_s5, %s3467_s0  ;;  %p3472_p11 = scmp.lt.s32.totalorder %s6518_s5, %s6570_s2 }
 0x5ea   : > { %p3473_p12 = scmp.lt.s32.totalorder %s3471_s8, %s3467_s0 }
 0x5eb   : > { %p3469_p5 = pnand %p3468_p3, %p7232_p7 }
 0x5ec   : > { %p3474_p13 = por %p3473_p12, %p3472_p11 }
 0x5ed   : > { %p3470_p4 = pneg %p3469_p5 }
 0x5ef   : > { %p3475_p1 = pnand %p3474_p13, %p3470_p4 }
 0x5f1   : > { %3478 = shalt.err (!%p3475_p1)
}
 0x5f2   : > { %s3579_s24 = smov 256  }
 0x5f3   : > { %3283 = dma.vmem_to_hbm [thread:$0]  (%p7232_p7), %s6524_s3, 1024, %s6518_s5, %s3000_s13, %s3579_s24, %s3579_s24, %s3577_s25  }
 0x5f4 PF: > { %s3028_s27 = sand.u32 1, %s3509_s9   ;;  %p7233_p6 = scmp.ne.s32.totalorder %s6766_s22, 0 }
 0x5f5   : > { %p7234_p8 = scmp.ge.s32.totalorder %s3521_s12, 2  ;;  %s3029_s29 = scalar_lea.sflag [#allocation4], %s3028_s27 }
 0x5f7   : > { %p3294_p9 = pnand %p7234_p8, %p7233_p6 }
 0x5f9   : > { %p3295_p10 = pneg %p3294_p9 }
 0x5fb   : > { %3504 = dma.done.wait (%p3295_p10), %s3029_s29, 1024  }
 0x5fc   : > { %3506 = vsyncadd (%p3295_p10), %s3029_s29, 4294966272  ;;  %p16_p2 = scmp.ge.s32.totalorder %s3620_s15, 4   ;;  %s7235_s9 = smov %s3513_s10 }
 0x5fd   : > { %s7236_s10 = smov %s3517_s11  ;;  %s7237_s11 = smov %s3632_s18 }
 0x5fe   : > { %s7238_s12 = smov %s3620_s15  ;;  %18 = sbr.rel (!%p16_p2) target bundleno = 8 (0x8), region = 78 }
 0x603   :  { %3034 = vsyncpa [#allocation3], 1 }
 0x604   :  { %3036 = vsyncpa [#allocation3 + $0x1], 1 }
 0x605   :  { %3037 = vsyncpa [#allocation4], 1 }
 0x606   :  { %3039 = vsyncpa [#allocation4 + $0x1], 1 }
 0x607   :  { %3040 = vsyncpa [#allocation5], 1 }
 0x608   :  { %3042 = vsyncpa [#allocation5 + $0x1], 1 }

</bundles_post_ra>
